<compile_context>
chip_gen: v7x
topology: tpu7x:2x2x1
jax: 0.10.0
libtpu: 0.0.40
codegen_flags: <defaults>
</compile_context>

<pallas_src>
import functools

import jax
import jax.numpy as jnp
from jax.experimental import pallas as pl
from jax.experimental.pallas import tpu as pltpu


_VMEM_LIMIT_BYTES = 48 * 1024 * 1024   # headroom below v7x's 64 MiB physical VMEM


def _compiler_params(dim_sem):
    return pltpu.CompilerParams(dimension_semantics=dim_sem,
                                vmem_limit_bytes=_VMEM_LIMIT_BYTES)


def _largest_divisor_leq(n, cap, multiple=1):
    """Largest d with d | n, d <= cap, multiple | d.  Falls back to n."""
    cap = min(max(cap, 1), n)
    for d in range(cap, 0, -1):
        if n % d == 0 and d % multiple == 0:
            return d
    return n


# ----------------------------- Pallas kernels -----------------------------

def _upconv_kernel(x_ref, wt_ref, wb_ref, b_ref, o_ref):
    """ConvTranspose2d(k=2, s=2) as one MXU matmul, 2x2 pixel-shuffle fused.

    x_ref:  (TR*W, Cu)       TR input image-rows of flattened pixels
    wt_ref: (Cu, 2*Co)       taps for output-row phase di=0, columns (dj, co)
    wb_ref: (Cu, 2*Co)       taps for output-row phase di=1
    b_ref:  (1, 2*Co)        bias tiled over dj                     (f32)
    o_ref:  (TR, 2, W, 2*Co) -> reshapes (free, contiguous) to (2*TR, 2*W, Co)
    """
    tr, _, w, c2 = o_ref.shape
    x = x_ref[...]
    top = jnp.dot(x, wt_ref[...], preferred_element_type=jnp.float32) + b_ref[...]
    bot = jnp.dot(x, wb_ref[...], preferred_element_type=jnp.float32) + b_ref[...]
    o_ref[:, 0, :, :] = top.reshape(tr, w, c2).astype(o_ref.dtype)
    o_ref[:, 1, :, :] = bot.reshape(tr, w, c2).astype(o_ref.dtype)


def _conv_stats_kernel(a_ref, b_ref, w_ref, bias_ref, o_ref, psum_ref, psq_ref):
    """3x3 conv (pad=1) as ONE big-K MXU dot + per-tile BN partial sums.

    a_ref:    (1, TH, Wp, Cin)   TH padded rows of the zero-padded input
    b_ref:    (1, 2,  Wp, Cin)   the 2-row halo below this row band
    w_ref:    (9*Cin, Co)        HWIO weight flattened, rows ordered (di,dj,c)
    bias_ref: (1, Co)            conv bias (f32)
    o_ref:    (1, TH, TW, Co)    pre-BN conv output (f32)
    psum_ref: (1, 1, 8, Co)      per-tile sum   (replicated over the 8 rows)
    psq_ref:  (1, 1, 8, Co)      per-tile sumsq (replicated over the 8 rows)
    """
    _, th, wp, cin = a_ref.shape
    tw = wp - 2
    co = o_ref.shape[-1]

    band = jnp.concatenate([a_ref[0], b_ref[0]], axis=0)        # (TH+2, Wp, Cin)

    taps = []
    for di in range(3):                                         # static, unrolled
        for dj in range(3):
            taps.append(band[di:di + th, dj:dj + tw, :].reshape(th * tw, cin))
    patch = jnp.concatenate(taps, axis=-1)                      # (TH*TW, 9*Cin)

    acc = jnp.dot(patch, w_ref[...], preferred_element_type=jnp.float32)
    acc = acc + bias_ref[...]                                   # (TH*TW, Co) f32

    o_ref[...] = acc.reshape(1, th, tw, co).astype(o_ref.dtype)

    s = jnp.sum(acc, axis=0, keepdims=True)                     # (1, Co) f32
    sq = jnp.sum(acc * acc, axis=0, keepdims=True)              # (1, Co) f32
    psum_ref[...] = jnp.broadcast_to(s.reshape(1, 1, 1, co), (1, 1, 8, co))
    psq_ref[...] = jnp.broadcast_to(sq.reshape(1, 1, 1, co), (1, 1, 8, co))


def _bn_relu_kernel(x_ref, scale_ref, shift_ref, o_ref):
    """y = max(x * scale + shift, 0) on a lane-dense (rows, W*Co) view."""
    o_ref[...] = jnp.maximum(x_ref[...] * scale_ref[...] + shift_ref[...],
                             0.0).astype(o_ref.dtype)


# ---------------------------- parameter setup ------------------------------

def init_decoder_params(key, in_channels, out_channels, upsample=True):
    ks = jax.random.split(key, 4)
    params = {}

    # Conv2d(in_channels, out_channels, k=3, padding=1): torch weight (O, I, 3, 3)
    bound = 1.0 / jnp.sqrt(in_channels * 9.0)
    conv_w_oihw = jax.random.uniform(ks[0], (out_channels, in_channels, 3, 3),
                                     jnp.float32, -bound, bound)
    params["conv_w_hwio"] = jnp.transpose(conv_w_oihw, (2, 3, 1, 0))  # (3,3,I,O)
    params["conv_b"] = jax.random.uniform(ks[1], (out_channels,),
                                          jnp.float32, -bound, bound)

    # BatchNorm2d(out_channels): torch default affine init
    params["bn_gamma"] = jnp.ones((out_channels,), jnp.float32)
    params["bn_beta"] = jnp.zeros((out_channels,), jnp.float32)

    if upsample:
        # ConvTranspose2d(out_channels, out_channels, k=2, s=2): weight (I, O, 2, 2)
        bu = 1.0 / jnp.sqrt(out_channels * 4.0)
        params["up_w"] = jax.random.uniform(ks[2],
                                            (out_channels, out_channels, 2, 2),
                                            jnp.float32, -bu, bu)
        params["up_b"] = jax.random.uniform(ks[3], (out_channels,),
                                            jnp.float32, -bu, bu)
    return params


# ------------------------------ forward pass -------------------------------

@functools.partial(jax.jit, static_argnames=("upsample", "compute_dtype"))
def decoder_layer_forward(params, x, skip=None, upsample=True,
                          compute_dtype=jnp.bfloat16):
    """x, skip: NHWC float32.  Returns NHWC float32.

    compute_dtype: dtype of MXU operands / stored activations (bf16 on v6e/v7x
    for 2x MXU throughput and half the HBM traffic; jnp.float32 reproduces the
    exact f32 PyTorch numerics).  Accumulation and BN statistics stay f32.
    """
    cdt = compute_dtype
    f32 = jnp.float32

    # ---------------- stage 1: ConvTranspose2d(k=2, s=2) ----------------
    if upsample:
        N, H, W, Cu = x.shape
        up_w = params["up_w"]                              # (Cu, Co, 2, 2)
        Co_up = up_w.shape[1]
        wperm = jnp.transpose(up_w, (0, 2, 3, 1))          # (Cu, di, dj, Co)
        w_top = wperm[:, 0].reshape(Cu, 2 * Co_up).astype(cdt)
        w_bot = wperm[:, 1].reshape(Cu, 2 * Co_up).astype(cdt)
        b_row = jnp.tile(params["up_b"], 2).reshape(1, 2 * Co_up).astype(f32)

        NH = N * H
        tr = _largest_divisor_leq(NH, max(1, 1024 // max(W, 1)))
        if tr != NH and (tr * W) % 8 != 0:
            tr = NH                                        # keep blocks sublane-aligned
        x2 = x.reshape(NH * W, Cu).astype(cdt)

        up4 = pl.pallas_call(
            _upconv_kernel,
            out_shape=jax.ShapeDtypeStruct((NH, 2, W, 2 * Co_up), cdt),
            grid=(NH // tr,),
            in_specs=[pl.BlockSpec((tr * W, Cu), lambda g: (g, 0)),
                      pl.BlockSpec((Cu, 2 * Co_up), lambda g: (0, 0)),
                      pl.BlockSpec((Cu, 2 * Co_up), lambda g: (0, 0)),
                      pl.BlockSpec((1, 2 * Co_up), lambda g: (0, 0))],
            out_specs=pl.BlockSpec((tr, 2, W, 2 * Co_up), lambda g: (g, 0, 0, 0)),
            compiler_params=_compiler_params(("parallel",)),
        )(x2, w_top, w_bot, b_row)
        # (NH, 2, W, 2*Co) is bit-identical to (N, 2H, 2W, Co): free reshape.
        x = up4.reshape(N, 2 * H, 2 * W, Co_up)
    else:
        x = x.astype(cdt)

    # Remaining XLA glue: channel concat + 1-pixel zero pad (one fused copy).
    if skip is not None:
        x = jnp.concatenate([x, skip.astype(cdt)], axis=-1)
    N, HC, WC, Cin = x.shape
    Co = params["conv_b"].shape[0]
    assert HC % 2 == 0, "conv-input height must be even (always true after 2x upsample)"
    xpad = jnp.pad(x, ((0, 0), (1, 1), (1, 1), (0, 0)))     # (N, HC+2, WC+2, Cin)

    # ------------- stage 2: 3x3 conv + per-tile BN partial sums -------------
    w9 = params["conv_w_hwio"].reshape(9 * Cin, Co).astype(cdt)
    bias_row = params["conv_b"].reshape(1, Co).astype(f32)

    th = _largest_divisor_leq(HC, max(2, 1024 // max(WC, 1)), multiple=2)
    th_half = th // 2
    n_rb = HC // th
    wp = WC + 2

    conv_out, psum, psq = pl.pallas_call(
        _conv_stats_kernel,
        out_shape=(jax.ShapeDtypeStruct((N, HC, WC, Co), f32),
                   jax.ShapeDtypeStruct((N, n_rb, 8, Co), f32),
                   jax.ShapeDtypeStruct((N, n_rb, 8, Co), f32)),
        grid=(N, n_rb),
        in_specs=[
            # row band [i*TH, (i+1)*TH) of the padded image
            pl.BlockSpec((1, th, wp, Cin), lambda n, i: (n, i, 0, 0)),
            # 2-row halo just below the band (same padded array, 2nd spec)
            pl.BlockSpec((1, 2, wp, Cin),
                         lambda n, i: (n, (i + 1) * th_half, 0, 0)),
            pl.BlockSpec((9 * Cin, Co), lambda n, i: (0, 0)),
            pl.BlockSpec((1, Co), lambda n, i: (0, 0)),
        ],
        out_specs=(pl.BlockSpec((1, th, WC, Co), lambda n, i: (n, i, 0, 0)),
                   pl.BlockSpec((1, 1, 8, Co), lambda n, i: (n, i, 0, 0)),
                   pl.BlockSpec((1, 1, 8, Co), lambda n, i: (n, i, 0, 0))),
        compiler_params=_compiler_params(("parallel", "parallel")),
    )(xpad, xpad, w9, bias_row)

    # ---------- finalize BN stats (tiny per-channel math, f32) ----------
    m_total = float(N * HC * WC)
    csum = psum[:, :, 0, :].sum(axis=(0, 1))                # (Co,)
    csq = psq[:, :, 0, :].sum(axis=(0, 1))                  # (Co,)
    mean = csum / m_total
    var = csq / m_total - mean * mean                       # biased, training-mode BN
    inv = jax.lax.rsqrt(var + 1e-5)
    scale = params["bn_gamma"] * inv
    shift = params["bn_beta"] - mean * scale

    # ------------- stage 3: normalize + ReLU (lane-dense view) -------------
    rows = N * HC
    lanes = WC * Co
    cf = conv_out.reshape(rows, lanes)                      # free, contiguous
    scale_row = jnp.tile(scale, WC).reshape(1, lanes).astype(f32)
    shift_row = jnp.tile(shift, WC).reshape(1, lanes).astype(f32)

    tb = _largest_divisor_leq(rows, max(8, (1 << 20) // max(lanes * 4, 1)),
                              multiple=8)
    out2 = pl.pallas_call(
        _bn_relu_kernel,
        out_shape=jax.ShapeDtypeStruct((rows, lanes), f32),
        grid=(rows // tb,),
        in_specs=[pl.BlockSpec((tb, lanes), lambda g: (g, 0)),
                  pl.BlockSpec((1, lanes), lambda g: (0, 0)),
                  pl.BlockSpec((1, lanes), lambda g: (0, 0))],
        out_specs=pl.BlockSpec((tb, lanes), lambda g: (g, 0)),
        compiler_params=_compiler_params(("parallel",)),
    )(cf, scale_row, shift_row)

    return out2.reshape(N, HC, WC, Co)


# --------------------------- pure-JAX reference ----------------------------

def decoder_layer_reference(params, x, skip=None, upsample=True):
    """Exact float32 forward of the PyTorch module (NHWC)."""
    if upsample:
        N, H, W, Cu = x.shape
        up_w = params["up_w"]
        Co = up_w.shape[1]
        y = jnp.zeros((N, 2 * H, 2 * W, Co), jnp.float32)
        for di in range(2):
            for dj in range(2):
                v = jnp.einsum("nijc,cd->nijd", x, up_w[:, :, di, dj]) + params["up_b"]
                y = y.at[:, di::2, dj::2, :].set(v)
        x = y
    if skip is not None:
        x = jnp.concatenate([x, skip], axis=-1)
    N, H, W, Cin = x.shape
    w = params["conv_w_hwio"]
    Co = w.shape[-1]
    xp = jnp.pad(x, ((0, 0), (1, 1), (1, 1), (0, 0)))
    y = jnp.zeros((N, H, W, Co), jnp.float32)
    for di in range(3):
        for dj in range(3):
            y = y + jnp.einsum("nijc,cd->nijd",
                               xp[:, di:di + H, dj:dj + W, :], w[di, dj])
    y = y + params["conv_b"]
    mean = jnp.mean(y, axis=(0, 1, 2), keepdims=True)
    var = jnp.mean((y - mean) ** 2, axis=(0, 1, 2), keepdims=True)
    y = (y - mean) * jax.lax.rsqrt(var + 1e-5) * params["bn_gamma"] + params["bn_beta"]
    return jnp.maximum(y, 0.0)


# ----------------------------------- main -----------------------------------

if __name__ == "__main__":
    in_channels, out_channels = 8, 4
    N, H, W = 2, 8, 8                     # x spatial size before the 2x upsample

    key = jax.random.PRNGKey(0)
    kp, kx, ks = jax.random.split(key, 3)
    params = init_decoder_params(kp, in_channels, out_channels, upsample=True)

    # As in the PyTorch module: self.up expects out_channels input channels and
    # cat([up(x), skip]) must have in_channels channels for self.conv.
    x = jax.random.normal(kx, (N, H, W, out_channels), jnp.float32)
    skip = jax.random.normal(ks, (N, 2 * H, 2 * W, in_channels - out_channels),
                             jnp.float32)

    ref = decoder_layer_reference(params, x, skip=skip, upsample=True)

    # 1) f32 path: bit-for-bit module semantics, tight check of the kernel logic.
    out_f32 = decoder_layer_forward(params, x, skip=skip, upsample=True,
                                    compute_dtype=jnp.float32)
    out_f32 = jax.block_until_ready(out_f32)
    assert out_f32.shape == (N, 2 * H, 2 * W, out_channels), out_f32.shape
    err32 = float(jnp.max(jnp.abs(out_f32 - ref)))
    assert err32 < 1e-4, f"f32 path max err {err32}"

    # 2) bf16 path (default / production on v6e & v7x): bf16 MXU operands and
    #    bf16 activation storage, f32 accumulation + f32 BN stats.  Tolerance
    #    reflects bf16 input rounding only.
    out_bf16 = decoder_layer_forward(params, x, skip=skip, upsample=True,
                                     compute_dtype=jnp.bfloat16)
    out_bf16 = jax.block_until_ready(out_bf16)
    assert out_bf16.shape == (N, 2 * H, 2 * W, out_channels), out_bf16.shape
    err16 = float(jnp.max(jnp.abs(out_bf16 - ref)))
    assert err16 < 3e-2, f"bf16 path max err {err16}"

    print("KERNEL_OK")
</pallas_src>

<mosaic_0001>
module attributes {stable_mosaic.version = 11 : i64} {
  func.func @_upconv_kernel(%arg0: i32, %arg1: memref<128x4xf32, #tpu.memory_space<vmem>>, %arg2: memref<4x8xf32, #tpu.memory_space<vmem>>, %arg3: memref<4x8xf32, #tpu.memory_space<vmem>>, %arg4: memref<1x8xf32, #tpu.memory_space<vmem>>, %arg5: memref<16x2x8x8xf32, #tpu.memory_space<vmem>>) attributes {dimension_semantics = [#tpu.dimension_semantics<parallel>], iteration_bounds = array<i64: 1>, scalar_prefetch = 0 : i64, scratch_operands = 0 : i64, tpu.core_type = #tpu.core_type<tc>, window_params = [{transform_indices = @transform_0, window_bounds = array<i64: 128, 4>}, {pipeline_mode = #tpu.pipeline_mode<synchronous>, transform_indices = @transform_1, window_bounds = array<i64: 4, 8>}, {pipeline_mode = #tpu.pipeline_mode<synchronous>, transform_indices = @transform_2, window_bounds = array<i64: 4, 8>}, {pipeline_mode = #tpu.pipeline_mode<synchronous>, transform_indices = @transform_3, window_bounds = array<i64: 1, 8>}, {transform_indices = @transform_4, window_bounds = array<i64: 16, 2, 8, 8>}]} {
    %c0 = arith.constant 0 : index
    %c0_0 = arith.constant 0 : index
    %0 = vector.load %arg1[%c0, %c0_0] : memref<128x4xf32, #tpu.memory_space<vmem>>, vector<128x4xf32>
    %c0_1 = arith.constant 0 : index
    %c0_2 = arith.constant 0 : index
    %1 = vector.load %arg2[%c0_1, %c0_2] : memref<4x8xf32, #tpu.memory_space<vmem>>, vector<4x8xf32>
    %cst = arith.constant dense<0.000000e+00> : vector<128x8xf32>
    %2 = tpu.matmul %0, %1, %cst {dimension_numbers = #tpu.dot_dimension_numbers<[1], [0], [0], [1], [0, 0, 1, 1], [], []>} : vector<128x4xf32>, vector<4x8xf32>, vector<128x8xf32> -> vector<128x8xf32>
    %c0_3 = arith.constant 0 : index
    %c0_4 = arith.constant 0 : index
    %3 = vector.load %arg4[%c0_3, %c0_4] : memref<1x8xf32, #tpu.memory_space<vmem>>, vector<1x8xf32>
    %4 = vector.broadcast %3 : vector<1x8xf32> to vector<128x8xf32>
    %5 = arith.addf %2, %4 : vector<128x8xf32>
    %c0_5 = arith.constant 0 : index
    %c0_6 = arith.constant 0 : index
    %6 = vector.load %arg3[%c0_5, %c0_6] : memref<4x8xf32, #tpu.memory_space<vmem>>, vector<4x8xf32>
    %cst_7 = arith.constant dense<0.000000e+00> : vector<128x8xf32>
    %7 = tpu.matmul %0, %6, %cst_7 {dimension_numbers = #tpu.dot_dimension_numbers<[1], [0], [0], [1], [0, 0, 1, 1], [], []>} : vector<128x4xf32>, vector<4x8xf32>, vector<128x8xf32> -> vector<128x8xf32>
    %c0_8 = arith.constant 0 : index
    %c0_9 = arith.constant 0 : index
    %8 = vector.load %arg4[%c0_8, %c0_9] : memref<1x8xf32, #tpu.memory_space<vmem>>, vector<1x8xf32>
    %9 = vector.broadcast %8 : vector<1x8xf32> to vector<128x8xf32>
    %10 = arith.addf %7, %9 : vector<128x8xf32>
    %11 = vector.shape_cast %5 : vector<128x8xf32> to vector<16x8x8xf32>
    %c0_10 = arith.constant 0 : index
    %c0_11 = arith.constant 0 : index
    %c0_12 = arith.constant 0 : index
    %c0_13 = arith.constant 0 : index
    %12 = vector.load %arg5[%c0_10, %c0_11, %c0_12, %c0_13] : memref<16x2x8x8xf32, #tpu.memory_space<vmem>>, vector<16x1x8x8xf32>
    %13 = vector.shape_cast %12 : vector<16x1x8x8xf32> to vector<16x8x8xf32>
    %14 = vector.shape_cast %11 : vector<16x8x8xf32> to vector<16x1x8x8xf32>
    tpu.vector_store %arg5[%c0_10, %c0_11, %c0_12, %c0_13], %14 {strides = array<i32>} : memref<16x2x8x8xf32, #tpu.memory_space<vmem>>, vector<16x1x8x8xf32>,
    %15 = vector.shape_cast %10 : vector<128x8xf32> to vector<16x8x8xf32>
    %c0_14 = arith.constant 0 : index
    %c1 = arith.constant 1 : index
    %c0_15 = arith.constant 0 : index
    %c0_16 = arith.constant 0 : index
    %16 = vector.load %arg5[%c0_14, %c1, %c0_15, %c0_16] : memref<16x2x8x8xf32, #tpu.memory_space<vmem>>, vector<16x1x8x8xf32>
    %17 = vector.shape_cast %16 : vector<16x1x8x8xf32> to vector<16x8x8xf32>
    %18 = vector.shape_cast %15 : vector<16x8x8xf32> to vector<16x1x8x8xf32>
    tpu.vector_store %arg5[%c0_14, %c1, %c0_15, %c0_16], %18 {strides = array<i32>} : memref<16x2x8x8xf32, #tpu.memory_space<vmem>>, vector<16x1x8x8xf32>,
    return
  }
  func.func @transform_0(%arg0: i32) -> (i32, i32) {
    %c0_i32 = arith.constant 0 : i32
    %c0_i32_0 = arith.constant 0 : i32
    return %arg0, %c0_i32 : i32, i32
  }
  func.func @transform_1(%arg0: i32) -> (i32, i32) {
    %c0_i32 = arith.constant 0 : i32
    %c0_i32_0 = arith.constant 0 : i32
    %c0_i32_1 = arith.constant 0 : i32
    return %c0_i32, %c0_i32_0 : i32, i32
  }
  func.func @transform_2(%arg0: i32) -> (i32, i32) {
    %c0_i32 = arith.constant 0 : i32
    %c0_i32_0 = arith.constant 0 : i32
    %c0_i32_1 = arith.constant 0 : i32
    return %c0_i32, %c0_i32_0 : i32, i32
  }
  func.func @transform_3(%arg0: i32) -> (i32, i32) {
    %c0_i32 = arith.constant 0 : i32
    %c0_i32_0 = arith.constant 0 : i32
    %c0_i32_1 = arith.constant 0 : i32
    return %c0_i32, %c0_i32_0 : i32, i32
  }
  func.func @transform_4(%arg0: i32) -> (i32, i32, i32, i32) {
    %c0_i32 = arith.constant 0 : i32
    %c0_i32_0 = arith.constant 0 : i32
    %c0_i32_1 = arith.constant 0 : i32
    %c0_i32_2 = arith.constant 0 : i32
    return %arg0, %c0_i32, %c0_i32_0, %c0_i32_1 : i32, i32, i32, i32
  }
}

module attributes {stable_mosaic.version = 11 : i64} {
  func.func @_conv_stats_kernel(%arg0: i32, %arg1: i32, %arg2: memref<1x16x18x8xf32, #tpu.memory_space<vmem>>, %arg3: memref<1x2x18x8xf32, #tpu.memory_space<vmem>>, %arg4: memref<72x4xf32, #tpu.memory_space<vmem>>, %arg5: memref<1x4xf32, #tpu.memory_space<vmem>>, %arg6: memref<1x16x16x4xf32, #tpu.memory_space<vmem>>, %arg7: memref<1x1x8x4xf32, #tpu.memory_space<vmem>>, %arg8: memref<1x1x8x4xf32, #tpu.memory_space<vmem>>) attributes {dimension_semantics = [#tpu.dimension_semantics<parallel>, #tpu.dimension_semantics<parallel>], iteration_bounds = array<i64: 2, 1>, scalar_prefetch = 0 : i64, scratch_operands = 0 : i64, tpu.core_type = #tpu.core_type<tc>, window_params = [{transform_indices = @transform_0, window_bounds = array<i64: 1, 16, 18, 8>}, {transform_indices = @transform_1, window_bounds = array<i64: 1, 2, 18, 8>}, {pipeline_mode = #tpu.pipeline_mode<synchronous>, transform_indices = @transform_2, window_bounds = array<i64: 72, 4>}, {pipeline_mode = #tpu.pipeline_mode<synchronous>, transform_indices = @transform_3, window_bounds = array<i64: 1, 4>}, {transform_indices = @transform_4, window_bounds = array<i64: 1, 16, 16, 4>}, {transform_indices = @transform_5, window_bounds = array<i64: 1, 1, 8, 4>}, {transform_indices = @transform_6, window_bounds = array<i64: 1, 1, 8, 4>}]} {
    %c0 = arith.constant 0 : index
    %c0_0 = arith.constant 0 : index
    %c0_1 = arith.constant 0 : index
    %c0_2 = arith.constant 0 : index
    %0 = vector.load %arg2[%c0, %c0_0, %c0_1, %c0_2] : memref<1x16x18x8xf32, #tpu.memory_space<vmem>>, vector<1x16x18x8xf32>
    %1 = vector.shape_cast %0 : vector<1x16x18x8xf32> to vector<16x18x8xf32>
    %c0_3 = arith.constant 0 : index
    %c0_4 = arith.constant 0 : index
    %c0_5 = arith.constant 0 : index
    %c0_6 = arith.constant 0 : index
    %2 = vector.load %arg3[%c0_3, %c0_4, %c0_5, %c0_6] : memref<1x2x18x8xf32, #tpu.memory_space<vmem>>, vector<1x2x18x8xf32>
    %3 = vector.shape_cast %2 : vector<1x2x18x8xf32> to vector<2x18x8xf32>
    %4 = tpu.concatenate %1, %3 in 0 : vector<16x18x8xf32>, vector<2x18x8xf32> -> vector<18x18x8xf32>
    %5 = vector.extract_strided_slice %4 {offsets = [0, 0, 0], sizes = [16, 16, 8], strides = [1, 1, 1]} : vector<18x18x8xf32> to vector<16x16x8xf32>
    %6 = vector.shape_cast %5 : vector<16x16x8xf32> to vector<256x8xf32>
    %7 = vector.extract_strided_slice %4 {offsets = [0, 1, 0], sizes = [16, 16, 8], strides = [1, 1, 1]} : vector<18x18x8xf32> to vector<16x16x8xf32>
    %8 = vector.shape_cast %7 : vector<16x16x8xf32> to vector<256x8xf32>
    %9 = vector.extract_strided_slice %4 {offsets = [0, 2, 0], sizes = [16, 16, 8], strides = [1, 1, 1]} : vector<18x18x8xf32> to vector<16x16x8xf32>
    %10 = vector.shape_cast %9 : vector<16x16x8xf32> to vector<256x8xf32>
    %11 = vector.extract_strided_slice %4 {offsets = [1, 0, 0], sizes = [16, 16, 8], strides = [1, 1, 1]} : vector<18x18x8xf32> to vector<16x16x8xf32>
    %12 = vector.shape_cast %11 : vector<16x16x8xf32> to vector<256x8xf32>
    %13 = vector.extract_strided_slice %4 {offsets = [1, 1, 0], sizes = [16, 16, 8], strides = [1, 1, 1]} : vector<18x18x8xf32> to vector<16x16x8xf32>
    %14 = vector.shape_cast %13 : vector<16x16x8xf32> to vector<256x8xf32>
    %15 = vector.extract_strided_slice %4 {offsets = [1, 2, 0], sizes = [16, 16, 8], strides = [1, 1, 1]} : vector<18x18x8xf32> to vector<16x16x8xf32>
    %16 = vector.shape_cast %15 : vector<16x16x8xf32> to vector<256x8xf32>
    %17 = vector.extract_strided_slice %4 {offsets = [2, 0, 0], sizes = [16, 16, 8], strides = [1, 1, 1]} : vector<18x18x8xf32> to vector<16x16x8xf32>
    %18 = vector.shape_cast %17 : vector<16x16x8xf32> to vector<256x8xf32>
    %19 = vector.extract_strided_slice %4 {offsets = [2, 1, 0], sizes = [16, 16, 8], strides = [1, 1, 1]} : vector<18x18x8xf32> to vector<16x16x8xf32>
    %20 = vector.shape_cast %19 : vector<16x16x8xf32> to vector<256x8xf32>
    %21 = vector.extract_strided_slice %4 {offsets = [2, 2, 0], sizes = [16, 16, 8], strides = [1, 1, 1]} : vector<18x18x8xf32> to vector<16x16x8xf32>
    %22 = vector.shape_cast %21 : vector<16x16x8xf32> to vector<256x8xf32>
    %23 = tpu.concatenate %6, %8, %10, %12, %14, %16, %18, %20, %22 in 1 : vector<256x8xf32>, vector<256x8xf32>, vector<256x8xf32>, vector<256x8xf32>, vector<256x8xf32>, vector<256x8xf32>, vector<256x8xf32>, vector<256x8xf32>, vector<256x8xf32> -> vector<256x72xf32>
    %c0_7 = arith.constant 0 : index
    %c0_8 = arith.constant 0 : index
    %24 = vector.load %arg4[%c0_7, %c0_8] : memref<72x4xf32, #tpu.memory_space<vmem>>, vector<72x4xf32>
    %cst = arith.constant dense<0.000000e+00> : vector<256x4xf32>
    %25 = tpu.matmul %23, %24, %cst {dimension_numbers = #tpu.dot_dimension_numbers<[1], [0], [0], [1], [0, 0, 1, 1], [], []>} : vector<256x72xf32>, vector<72x4xf32>, vector<256x4xf32> -> vector<256x4xf32>
    %c0_9 = arith.constant 0 : index
    %c0_10 = arith.constant 0 : index
    %26 = vector.load %arg5[%c0_9, %c0_10] : memref<1x4xf32, #tpu.memory_space<vmem>>, vector<1x4xf32>
    %27 = vector.broadcast %26 : vector<1x4xf32> to vector<256x4xf32>
    %28 = arith.addf %25, %27 : vector<256x4xf32>
    %29 = vector.shape_cast %28 : vector<256x4xf32> to vector<1x16x16x4xf32>
    %c0_11 = arith.constant 0 : index
    %c0_12 = arith.constant 0 : index
    %c0_13 = arith.constant 0 : index
    %c0_14 = arith.constant 0 : index
    %30 = vector.load %arg6[%c0_11, %c0_12, %c0_13, %c0_14] : memref<1x16x16x4xf32, #tpu.memory_space<vmem>>, vector<1x16x16x4xf32>
    tpu.vector_store %arg6[%c0_11, %c0_12, %c0_13, %c0_14], %29 {strides = array<i32>} : memref<1x16x16x4xf32, #tpu.memory_space<vmem>>, vector<1x16x16x4xf32>,
    %cst_15 = arith.constant dense<0.000000e+00> : vector<4xf32>
    %31 = vector.multi_reduction <add>, %28, %cst_15 [0] : vector<256x4xf32> to vector<4xf32>
    %32 = vector.shape_cast %31 : vector<4xf32> to vector<1x4xf32>
    %33 = arith.mulf %28, %28 : vector<256x4xf32>
    %cst_16 = arith.constant dense<0.000000e+00> : vector<4xf32>
    %34 = vector.multi_reduction <add>, %33, %cst_16 [0] : vector<256x4xf32> to vector<4xf32>
    %35 = vector.shape_cast %34 : vector<4xf32> to vector<1x4xf32>
    %36 = vector.shape_cast %32 : vector<1x4xf32> to vector<1x1x1x4xf32>
    %37 = vector.shape_cast %36 : vector<1x1x1x4xf32> to vector<1x1x1x4xf32>
    %38 = vector.broadcast %37 : vector<1x1x1x4xf32> to vector<1x1x8x4xf32>
    %c0_17 = arith.constant 0 : index
    %c0_18 = arith.constant 0 : index
    %c0_19 = arith.constant 0 : index
    %c0_20 = arith.constant 0 : index
    %39 = vector.load %arg7[%c0_17, %c0_18, %c0_19, %c0_20] : memref<1x1x8x4xf32, #tpu.memory_space<vmem>>, vector<1x1x8x4xf32>
    tpu.vector_store %arg7[%c0_17, %c0_18, %c0_19, %c0_20], %38 {strides = array<i32>} : memref<1x1x8x4xf32, #tpu.memory_space<vmem>>, vector<1x1x8x4xf32>,
    %40 = vector.shape_cast %35 : vector<1x4xf32> to vector<1x1x1x4xf32>
    %41 = vector.shape_cast %40 : vector<1x1x1x4xf32> to vector<1x1x1x4xf32>
    %42 = vector.broadcast %41 : vector<1x1x1x4xf32> to vector<1x1x8x4xf32>
    %c0_21 = arith.constant 0 : index
    %c0_22 = arith.constant 0 : index
    %c0_23 = arith.constant 0 : index
    %c0_24 = arith.constant 0 : index
    %43 = vector.load %arg8[%c0_21, %c0_22, %c0_23, %c0_24] : memref<1x1x8x4xf32, #tpu.memory_space<vmem>>, vector<1x1x8x4xf32>
    tpu.vector_store %arg8[%c0_21, %c0_22, %c0_23, %c0_24], %42 {strides = array<i32>} : memref<1x1x8x4xf32, #tpu.memory_space<vmem>>, vector<1x1x8x4xf32>,
    return
  }
  func.func @transform_0(%arg0: i32, %arg1: i32) -> (i32, i32, i32, i32) {
    %c0_i32 = arith.constant 0 : i32
    %c0_i32_0 = arith.constant 0 : i32
    %c0_i32_1 = arith.constant 0 : i32
    return %arg0, %arg1, %c0_i32, %c0_i32_0 : i32, i32, i32, i32
  }
  func.func @transform_1(%arg0: i32, %arg1: i32) -> (i32, i32, i32, i32) {
    %c1_i32 = arith.constant 1 : i32
    %0 = arith.addi %arg1, %c1_i32 : i32
    %c8_i32 = arith.constant 8 : i32
    %1 = arith.muli %0, %c8_i32 : i32
    %c0_i32 = arith.constant 0 : i32
    %c0_i32_0 = arith.constant 0 : i32
    %c0_i32_1 = arith.constant 0 : i32
    return %arg0, %1, %c0_i32, %c0_i32_0 : i32, i32, i32, i32
  }
  func.func @transform_2(%arg0: i32, %arg1: i32) -> (i32, i32) {
    %c0_i32 = arith.constant 0 : i32
    %c0_i32_0 = arith.constant 0 : i32
    %c0_i32_1 = arith.constant 0 : i32
    return %c0_i32, %c0_i32_0 : i32, i32
  }
  func.func @transform_3(%arg0: i32, %arg1: i32) -> (i32, i32) {
    %c0_i32 = arith.constant 0 : i32
    %c0_i32_0 = arith.constant 0 : i32
    %c0_i32_1 = arith.constant 0 : i32
    return %c0_i32, %c0_i32_0 : i32, i32
  }
  func.func @transform_4(%arg0: i32, %arg1: i32) -> (i32, i32, i32, i32) {
    %c0_i32 = arith.constant 0 : i32
    %c0_i32_0 = arith.constant 0 : i32
    %c0_i32_1 = arith.constant 0 : i32
    return %arg0, %arg1, %c0_i32, %c0_i32_0 : i32, i32, i32, i32
  }
  func.func @transform_5(%arg0: i32, %arg1: i32) -> (i32, i32, i32, i32) {
    %c0_i32 = arith.constant 0 : i32
    %c0_i32_0 = arith.constant 0 : i32
    %c0_i32_1 = arith.constant 0 : i32
    return %arg0, %arg1, %c0_i32, %c0_i32_0 : i32, i32, i32, i32
  }
  func.func @transform_6(%arg0: i32, %arg1: i32) -> (i32, i32, i32, i32) {
    %c0_i32 = arith.constant 0 : i32
    %c0_i32_0 = arith.constant 0 : i32
    %c0_i32_1 = arith.constant 0 : i32
    return %arg0, %arg1, %c0_i32, %c0_i32_0 : i32, i32, i32, i32
  }
}

module attributes {stable_mosaic.version = 11 : i64} {
  func.func @_bn_relu_kernel(%arg0: i32, %arg1: memref<32x64xf32, #tpu.memory_space<vmem>>, %arg2: memref<1x64xf32, #tpu.memory_space<vmem>>, %arg3: memref<1x64xf32, #tpu.memory_space<vmem>>, %arg4: memref<32x64xf32, #tpu.memory_space<vmem>>) attributes {dimension_semantics = [#tpu.dimension_semantics<parallel>], iteration_bounds = array<i64: 1>, scalar_prefetch = 0 : i64, scratch_operands = 0 : i64, tpu.core_type = #tpu.core_type<tc>, window_params = [{transform_indices = @transform_0, window_bounds = array<i64: 32, 64>}, {pipeline_mode = #tpu.pipeline_mode<synchronous>, transform_indices = @transform_1, window_bounds = array<i64: 1, 64>}, {pipeline_mode = #tpu.pipeline_mode<synchronous>, transform_indices = @transform_2, window_bounds = array<i64: 1, 64>}, {transform_indices = @transform_3, window_bounds = array<i64: 32, 64>}]} {
    %c0 = arith.constant 0 : index
    %c0_0 = arith.constant 0 : index
    %0 = vector.load %arg1[%c0, %c0_0] : memref<32x64xf32, #tpu.memory_space<vmem>>, vector<32x64xf32>
    %c0_1 = arith.constant 0 : index
    %c0_2 = arith.constant 0 : index
    %1 = vector.load %arg2[%c0_1, %c0_2] : memref<1x64xf32, #tpu.memory_space<vmem>>, vector<1x64xf32>
    %2 = vector.broadcast %1 : vector<1x64xf32> to vector<32x64xf32>
    %3 = arith.mulf %0, %2 : vector<32x64xf32>
    %c0_3 = arith.constant 0 : index
    %c0_4 = arith.constant 0 : index
    %4 = vector.load %arg3[%c0_3, %c0_4] : memref<1x64xf32, #tpu.memory_space<vmem>>, vector<1x64xf32>
    %5 = vector.broadcast %4 : vector<1x64xf32> to vector<32x64xf32>
    %6 = arith.addf %3, %5 : vector<32x64xf32>
    %cst = arith.constant 0.000000e+00 : f32
    %7 = vector.broadcast %cst : f32 to vector<32x64xf32>
    %8 = arith.maximumf %6, %7 : vector<32x64xf32>
    %c0_5 = arith.constant 0 : index
    %c0_6 = arith.constant 0 : index
    %9 = vector.load %arg4[%c0_5, %c0_6] : memref<32x64xf32, #tpu.memory_space<vmem>>, vector<32x64xf32>
    tpu.vector_store %arg4[%c0_5, %c0_6], %8 {strides = array<i32>} : memref<32x64xf32, #tpu.memory_space<vmem>>, vector<32x64xf32>,
    return
  }
  func.func @transform_0(%arg0: i32) -> (i32, i32) {
    %c0_i32 = arith.constant 0 : i32
    %c0_i32_0 = arith.constant 0 : i32
    return %arg0, %c0_i32 : i32, i32
  }
  func.func @transform_1(%arg0: i32) -> (i32, i32) {
    %c0_i32 = arith.constant 0 : i32
    %c0_i32_0 = arith.constant 0 : i32
    %c0_i32_1 = arith.constant 0 : i32
    return %c0_i32, %c0_i32_0 : i32, i32
  }
  func.func @transform_2(%arg0: i32) -> (i32, i32) {
    %c0_i32 = arith.constant 0 : i32
    %c0_i32_0 = arith.constant 0 : i32
    %c0_i32_1 = arith.constant 0 : i32
    return %c0_i32, %c0_i32_0 : i32, i32
  }
  func.func @transform_3(%arg0: i32) -> (i32, i32) {
    %c0_i32 = arith.constant 0 : i32
    %c0_i32_0 = arith.constant 0 : i32
    return %arg0, %c0_i32 : i32, i32
  }
}

</mosaic_0001>

<bundles_post_ra>
// kernel: tile.18
= control target key start
LH: loop header
LB: loop body
LE: loop exit
PB: predicated region body
PF: predicated region fallthrough
CT: control target
= control target key end

     0   :  { %s22_s0 = inlined_call_operand.vmem [shape: f32[4], index: 0, kind: input, shape index: {}]   ;;  %s23_s1 = inlined_call_operand.vmem [shape: f32[2,4], index: 1, kind: output, shape index: {}]  }
   0x1   :  { %v4_v0 = vld [vmem:[%s22_s0] ss:$0 sm:$0xff] }
   0x2   :  { %5 = vst [vmem:[%s23_s1] sm:$0x3] %v4_v0 }

// kernel: squeeze.4
= control target key start
LH: loop header
LB: loop body
LE: loop exit
PB: predicated region body
PF: predicated region fallthrough
CT: control target
= control target key end

     0   :  { %vm21_vm0 = vcmask 31744   ;;  %vm27_vm1 = vcmask 64544   ;;  %s67_s0 = inlined_call_operand.vmem [shape: f32[4,1,2,4], index: 0, kind: input, shape index: {}]   ;;  %s68_s1 = inlined_call_operand.vmem [shape: f32[4,8], index: 1, kind: output, shape index: {}]  }
   0x1   :  { %v37_v0 = vld [vmem:[%s67_s0 + $0x6] sm:$0x3]  ;;  %v38_v1 = vld [vmem:[%s67_s0 + $0x4] sm:$0x3]  ;;  %v39_v2 = vld [vmem:[%s67_s0 + $0x2] sm:$0x3] }
   0x2   :  { %8 = vst [vmem:[#allocation1 + $0x18] sm:$0x3] %v37_v0  ;;  %13 = vst [vmem:[#allocation1 + $0x10] sm:$0x3] %v38_v1  ;;  %v18_v3 = vld [vmem:[%s67_s0] sm:$0x3] }
   0x3   :  { %17 = vst [vmem:[#allocation1 + $0x8] sm:$0x3] %v39_v2  ;;  %19 = vst [vmem:[#allocation1] sm:$0x3] %v18_v3  ;;  %s41_s0 = smov 4  }
   0xa   :  { %v24_v4 = vld [vmem:[#allocation1 + $0x1] ss:$8 sm:$0xf]   ;;  %v20_v5 = vld [vmem:[#allocation1] ss:$8 sm:$0xf]  }
   0xb   :  { %25 = vrot.lane.b32.xlu0 %v24_v4, %s41_s0  ;;  %22 = vst.msk [vmem:[#allocation0] sm:$0xf] %vm21_vm0, %v20_v5  }
  0x7d   :  { %v26_v6 = vpop.permute.xlu0 %25  }
  0x7e   :  { %28 = vst.msk [vmem:[#allocation0] sm:$0xf] %vm27_vm1, %v26_v6  }
  0x85   :  { %v32_v7 = vld [vmem:[#allocation0] sm:$0xf] }
  0x86   :  { %34 = vst [vmem:[%s68_s1] sm:$0xf] %v32_v7 }

// kernel: tile.19
= control target key start
LH: loop header
LB: loop body
LE: loop exit
PB: predicated region body
PF: predicated region fallthrough
CT: control target
= control target key end

     0   :  { %vm7_vm0 = vcmask 31744   ;;  %vm13_vm1 = vcmask 64544   ;;  %s39_s0 = inlined_call_operand.vmem [shape: f32[2,4], index: 0, kind: input, shape index: {}]   ;;  %s40_s1 = inlined_call_operand.vmem [shape: f32[1,8], index: 1, kind: output, shape index: {}]  }
   0x1   :  { %v4_v0 = vld [vmem:[%s39_s0] sm:$0x3]  ;;  %s22_s0 = smov 4  }
   0x2   :  { %5 = vst [vmem:[#allocation1] sm:$0x3] %v4_v0 }
   0x9   :  { %v10_v1 = vld [vmem:[#allocation1 + $0x1] sm:$0x1]   ;;  %v6_v2 = vld [vmem:[#allocation1] sm:$0x1]  }
   0xa   :  { %11 = vrot.lane.b32.xlu0 %v10_v1, %s22_s0  ;;  %8 = vst.msk [vmem:[#allocation0] sm:$0x1] %vm7_vm0, %v6_v2  }
  0x7c   :  { %v12_v3 = vpop.permute.xlu0 %11  }
  0x7d   :  { %14 = vst.msk [vmem:[#allocation0] sm:$0x1] %vm13_vm1, %v12_v3  }
  0x84   :  { %v18_v4 = vld [vmem:[#allocation0] sm:$0x1] }
  0x85   :  { %20 = vst [vmem:[%s40_s1] sm:$0x1] %v18_v4 }

// kernel: tile.23
= control target key start
LH: loop header
LB: loop body
LE: loop exit
PB: predicated region body
PF: predicated region fallthrough
CT: control target
= control target key end

     0   :  { %s28_s0 = inlined_call_operand.vmem [shape: f32[4], index: 0, kind: input, shape index: {}]   ;;  %s29_s1 = inlined_call_operand.vmem [shape: f32[16,4], index: 1, kind: output, shape index: {}]  }
   0x1   :  { %v4_v0 = vld [vmem:[%s28_s0] ss:$0 sm:$0xff] }
   0x2   :  { %5 = vst [vmem:[%s29_s1] sm:$0xff] %v4_v0  ;;  %8 = vst [vmem:[%s29_s1 + $0x8] sm:$0xff] %v4_v0 }

// kernel: tile.24
= control target key start
LH: loop header
LB: loop body
LE: loop exit
PB: predicated region body
PF: predicated region fallthrough
CT: control target
= control target key end

     0   :  { %s131_s10 = smov 60   ;;  %s132_s11 = smov 52   ;;  %vm3_vm0 = vcmask 31744   ;;  %vm9_vm1 = vcmask 523744   ;;  %vm15_vm2 = vcmask 490944   ;;  %vm21_vm3 = vcmask 458144   ;;  %s207_s0 = inlined_call_operand.vmem [shape: f32[16,4], index: 0, kind: input, shape index: {}]   ;;  %s208_s1 = inlined_call_operand.vmem [shape: f32[1,64], index: 1, kind: output, shape index: {}]  }
   0x1   :  { %v101_v0 = vld [vmem:[%s207_s0 + $0xf] sm:$0x1]   ;;  %v103_v1 = vld [vmem:[%s207_s0 + $0xd] sm:$0x1]   ;;  %v102_v2 = vld [vmem:[%s207_s0 + $0xe] sm:$0x1]  }
   0x2   :  { %7 = vrot.lane.b32.xlu0 %v101_v0, %s131_s10  ;;  %19 = vrot.lane.b32.xlu1 %v103_v1, %s132_s11  ;;  %v104_v3 = vld [vmem:[%s207_s0 + $0xc] sm:$0x1]   ;;  %s133_s16 = smov 56   ;;  %s134_s17 = smov 48   ;;  %v105_v4 = vld [vmem:[%s207_s0 + $0xb] sm:$0x1]  }
   0x3   :  { %v106_v5 = vld [vmem:[%s207_s0 + $0xa] sm:$0x1]   ;;  %v2_v6 = vld [vmem:[%s207_s0] sm:$0x1]   ;;  %s135_s24 = smov 44   ;;  %s136_s25 = smov 40  }
   0x4   :  { %4 = vst.msk [vmem:[#allocation0] sm:$0x1] %vm3_vm0, %v2_v6   ;;  %v107_v7 = vld [vmem:[%s207_s0 + $0x9] sm:$0x1]   ;;  %v108_v8 = vld [vmem:[%s207_s0 + $0x8] sm:$0x1]  }
   0x5   :  { %s137_s30 = smov 36   ;;  %s138_s2 = smov 32   ;;  %v109_v9 = vld [vmem:[%s207_s0 + $0x7] sm:$0x1]   ;;  %v110_v10 = vld [vmem:[%s207_s0 + $0x6] sm:$0x1]  }
   0x6   :  { %13 = vrot.lane.b32.xlu0 %v102_v2, %s133_s16  ;;  %25 = vrot.lane.b32.xlu1 %v104_v3, %s134_s17  ;;  %s139_s7 = smov 28   ;;  %s140_s8 = smov 24   ;;  %v111_v11 = vld [vmem:[%s207_s0 + $0x5] sm:$0x1]   ;;  %v112_v12 = vld [vmem:[%s207_s0 + $0x4] sm:$0x1]  }
   0x7   :  { %s141_s13 = smov 20   ;;  %s142_s14 = smov 16   ;;  %v113_v13 = vld [vmem:[%s207_s0 + $0x3] sm:$0x1]   ;;  %v114_v14 = vld [vmem:[%s207_s0 + $0x2] sm:$0x1]  }
   0x8   :  { %s143_s19 = smov 12   ;;  %s144_s20 = smov 8   ;;  %v115_v15 = vld [vmem:[%s207_s0 + $0x1] sm:$0x1]   ;;  %vm27_vm4 = vcmask 425344   ;;  %vm33_vm5 = vcmask 392544  }
   0x9   :  { %s145_s0 = smov 4   ;;  %vm39_vm6 = vcmask 359744   ;;  %vm45_vm7 = vcmask 326944   ;;  %vm51_vm8 = vcmask 294144   ;;  %vm57_vm9 = vcmask 261344  }
   0xa   :  { %31 = vrot.lane.b32.xlu0 %v105_v4, %s135_s24  ;;  %37 = vrot.lane.b32.xlu1 %v106_v5, %s136_s25  ;;  %vm63_vm10 = vcmask 228544   ;;  %vm69_vm11 = vcmask 195744   ;;  %vm75_vm12 = vcmask 162944   ;;  %vm81_vm13 = vcmask 130144  }
   0xb   :  { %vm87_vm14 = vcmask 97344   ;;  %vm93_vm15 = vcmask 64544  }
   0xe   :  { %43 = vrot.lane.b32.xlu0 %v107_v7, %s137_s30  ;;  %49 = vrot.lane.b32.xlu1 %v108_v8, %s138_s2 }
  0x12   :  { %55 = vrot.lane.b32.xlu0 %v109_v9, %s139_s7  ;;  %61 = vrot.lane.b32.xlu1 %v110_v10, %s140_s8 }
  0x16   :  { %67 = vrot.lane.b32.xlu0 %v111_v11, %s141_s13  ;;  %73 = vrot.lane.b32.xlu1 %v112_v12, %s142_s14 }
  0x1a   :  { %79 = vrot.lane.b32.xlu0 %v113_v13, %s143_s19  ;;  %85 = vrot.lane.b32.xlu1 %v114_v14, %s144_s20 }
  0x1e   :  { %91 = vrot.lane.b32.xlu0 %v115_v15, %s145_s0 }
  0x74   :  { %v8_v16 = vpop.permute.xlu0 %7   ;;  %v20_v17 = vpop.permute.xlu1 %19  }
  0x75   :  { %10 = vst.msk [vmem:[#allocation0] sm:$0x1] %vm9_vm1, %v8_v16  }
  0x78   :  { %v14_v18 = vpop.permute.xlu0 %13   ;;  %v26_v19 = vpop.permute.xlu1 %25  }
  0x79   :  { %16 = vst.msk [vmem:[#allocation0] sm:$0x1] %vm15_vm2, %v14_v18  }
  0x7a   :  { %22 = vst.msk [vmem:[#allocation0] sm:$0x1] %vm21_vm3, %v20_v17  }
  0x7b   :  { %28 = vst.msk [vmem:[#allocation0] sm:$0x1] %vm27_vm4, %v26_v19  }
  0x7c   :  { %v32_v20 = vpop.permute.xlu0 %31   ;;  %v38_v21 = vpop.permute.xlu1 %37  }
  0x7d   :  { %34 = vst.msk [vmem:[#allocation0] sm:$0x1] %vm33_vm5, %v32_v20  }
  0x7e   :  { %40 = vst.msk [vmem:[#allocation0] sm:$0x1] %vm39_vm6, %v38_v21  }
  0x80   :  { %v44_v22 = vpop.permute.xlu0 %43   ;;  %v50_v23 = vpop.permute.xlu1 %49  }
  0x81   :  { %46 = vst.msk [vmem:[#allocation0] sm:$0x1] %vm45_vm7, %v44_v22  }
  0x82   :  { %52 = vst.msk [vmem:[#allocation0] sm:$0x1] %vm51_vm8, %v50_v23  }
  0x84   :  { %v56_v24 = vpop.permute.xlu0 %55   ;;  %v62_v25 = vpop.permute.xlu1 %61  }
  0x85   :  { %58 = vst.msk [vmem:[#allocation0] sm:$0x1] %vm57_vm9, %v56_v24  }
  0x86   :  { %64 = vst.msk [vmem:[#allocation0] sm:$0x1] %vm63_vm10, %v62_v25  }
  0x88   :  { %v68_v26 = vpop.permute.xlu0 %67   ;;  %v74_v27 = vpop.permute.xlu1 %73  }
  0x89   :  { %70 = vst.msk [vmem:[#allocation0] sm:$0x1] %vm69_vm11, %v68_v26  }
  0x8a   :  { %76 = vst.msk [vmem:[#allocation0] sm:$0x1] %vm75_vm12, %v74_v27  }
  0x8c   :  { %v80_v28 = vpop.permute.xlu0 %79   ;;  %v86_v29 = vpop.permute.xlu1 %85  }
  0x8d   :  { %82 = vst.msk [vmem:[#allocation0] sm:$0x1] %vm81_vm13, %v80_v28  }
  0x8e   :  { %88 = vst.msk [vmem:[#allocation0] sm:$0x1] %vm87_vm14, %v86_v29  }
  0x90   :  { %v92_v30 = vpop.permute.xlu0 %91  }
  0x91   :  { %94 = vst.msk [vmem:[#allocation0] sm:$0x1] %vm93_vm15, %v92_v30  }
  0x98   :  { %v98_v31 = vld [vmem:[#allocation0] sm:$0x1] }
  0x99   :  { %100 = vst [vmem:[%s208_s1] sm:$0x1] %v98_v31 }

// kernel: decoder_layer_forward.3
= control target key start
LH: loop header
LB: loop body
LE: loop exit
PB: predicated region body
PF: predicated region fallthrough
CT: control target
= control target key end

     0   :  { %vm90_vm0 = vcmask 1043456   ;;  %vm41_vm1 = vcmask 31744   ;;  %vm388_vm2 = vcmask 64512   ;;  %s839_s1 = inlined_call_operand.vmem [shape: f32[4,8], index: 1, kind: input, shape index: {}]   ;;  %s840_s2 = inlined_call_operand.vmem [shape: f32[4,8], index: 2, kind: input, shape index: {}]   ;;  %s841_s0 = inlined_call_operand.vmem [shape: f32[128,4], index: 0, kind: input, shape index: {}]   ;;  %s842_s3 = inlined_call_operand.vmem [shape: f32[1,8], index: 3, kind: input, shape index: {}]   ;;  %s843_s4 = inlined_call_operand.vmem [shape: f32[16,2,8,8], index: 4, kind: output, shape index: {}]  }
   0x1   :  { %v33_v0 = vld [vmem:[%s839_s1] sm:$0xf]  ;;  %v18_v3 = vld [vmem:[%s841_s0 + $0x8] sm:$0xff]  ;;  %v19_v4 = vld [vmem:[%s841_s0 + $0x10] sm:$0xff] }
   0x2   :  { %v239_v1 = vld [vmem:[%s840_s2] sm:$0xf]  ;;  %511 = vmatprep.subr.msk.mxu0 %vm90_vm0, %v33_v0  ;;  %v20_v5 = vld [vmem:[%s841_s0 + $0x18] sm:$0xff]  ;;  %v22_v7 = vld [vmem:[%s841_s0 + $0x28] sm:$0xff] }
   0x3   :  { %v17_v2 = vld [vmem:[%s841_s0] sm:$0xff]  ;;  %537 = vmatprep.subr.msk.mxu1 %vm90_vm0, %v239_v1  ;;  %512 = vmatpush3.msk.msra.mxu0 %vm90_vm0, %v33_v0  ;;  %v23_v8 = vld [vmem:[%s841_s0 + $0x30] sm:$0xff]  ;;  %v24_v9 = vld [vmem:[%s841_s0 + $0x38] sm:$0xff] }
   0x4   :  { %513 = vmatprep.mubr.msk.f32.mxu0 %vm41_vm1, %v17_v2  ;;  %538 = vmatpush3.msk.msra.mxu1 %vm90_vm0, %v239_v1  ;;  %v21_v6 = vld [vmem:[%s841_s0 + $0x20] sm:$0xff]  ;;  %v26_v11 = vld [vmem:[%s841_s0 + $0x48] sm:$0xff]  ;;  %v27_v12 = vld [vmem:[%s841_s0 + $0x50] sm:$0xff] }
   0x5   :  { %539 = vmatprep.mubr.msk.f32.mxu1 %vm41_vm1, %v17_v2  ;;  %514 = vmatmul.mubr.msk.f32.vlgmr.msra.gmra.mrb[0].mxu0 %vm41_vm1, %v18_v3  ;;  %v25_v10 = vld [vmem:[%s841_s0 + $0x40] sm:$0xff]  ;;  %v28_v13 = vld [vmem:[%s841_s0 + $0x58] sm:$0xff]  ;;  %v30_v15 = vld [vmem:[%s841_s0 + $0x68] sm:$0xff] }
   0x6   :  { %540 = vmatmul.mubr.msk.f32.vlgmr.msra.gmra.mrb[0].mxu1 %vm41_vm1, %v18_v3  ;;  %516 = vmatprep.mubr.msk.f32.mxu0 %vm41_vm1, %v19_v4  ;;  %v29_v14 = vld [vmem:[%s841_s0 + $0x60] sm:$0xff]  ;;  %v31_v16 = vld [vmem:[%s841_s0 + $0x70] sm:$0xff]  ;;  %v32_v17 = vld [vmem:[%s841_s0 + $0x78] sm:$0xff] }
   0x7   :  { %542 = vmatprep.mubr.msk.f32.mxu1 %vm41_vm1, %v19_v4  ;;  %v677_v18 = vld [vmem:[%s842_s3] ss:$0 sm:$0xff] }
   0x9   :  { %517 = vmatmul.mubr.msk.f32.gmra.mrb[2].mxu0 %vm41_vm1, %v20_v5 }
   0xa   :  { %543 = vmatmul.mubr.msk.f32.gmra.mrb[2].mxu1 %vm41_vm1, %v20_v5  ;;  %519 = vmatprep.mubr.msk.f32.mxu0 %vm41_vm1, %v21_v6 }
   0xb   :  { %545 = vmatprep.mubr.msk.f32.mxu1 %vm41_vm1, %v21_v6 }
   0xd   :  { %520 = vmatmul.mubr.msk.f32.gmra.mrb[4].mxu0 %vm41_vm1, %v22_v7 }
   0xe   :  { %546 = vmatmul.mubr.msk.f32.gmra.mrb[4].mxu1 %vm41_vm1, %v22_v7  ;;  %522 = vmatprep.mubr.msk.f32.mxu0 %vm41_vm1, %v23_v8 }
   0xf   :  { %548 = vmatprep.mubr.msk.f32.mxu1 %vm41_vm1, %v23_v8 }
  0x11   :  { %523 = vmatmul.mubr.msk.f32.gmra.mrb[6].mxu0 %vm41_vm1, %v24_v9 }
  0x12   :  { %549 = vmatmul.mubr.msk.f32.gmra.mrb[6].mxu1 %vm41_vm1, %v24_v9  ;;  %525 = vmatprep.mubr.msk.f32.mxu0 %vm41_vm1, %v25_v10 }
  0x13   :  { %551 = vmatprep.mubr.msk.f32.mxu1 %vm41_vm1, %v25_v10 }
  0x15   :  { %526 = vmatmul.mubr.msk.f32.gmra.mrb[8].mxu0 %vm41_vm1, %v26_v11 }
  0x16   :  { %552 = vmatmul.mubr.msk.f32.gmra.mrb[8].mxu1 %vm41_vm1, %v26_v11  ;;  %528 = vmatprep.mubr.msk.f32.mxu0 %vm41_vm1, %v27_v12 }
  0x17   :  { %554 = vmatprep.mubr.msk.f32.mxu1 %vm41_vm1, %v27_v12 }
  0x19   :  { %529 = vmatmul.mubr.msk.f32.gmra.mrb[10].mxu0 %vm41_vm1, %v28_v13 }
  0x1a   :  { %555 = vmatmul.mubr.msk.f32.gmra.mrb[10].mxu1 %vm41_vm1, %v28_v13  ;;  %531 = vmatprep.mubr.msk.f32.mxu0 %vm41_vm1, %v29_v14 }
  0x1b   :  { %557 = vmatprep.mubr.msk.f32.mxu1 %vm41_vm1, %v29_v14 }
  0x1d   :  { %532 = vmatmul.mubr.msk.f32.gmra.mrb[12].mxu0 %vm41_vm1, %v30_v15 }
  0x1e   :  { %558 = vmatmul.mubr.msk.f32.gmra.mrb[12].mxu1 %vm41_vm1, %v30_v15  ;;  %534 = vmatprep.mubr.msk.f32.mxu0 %vm41_vm1, %v31_v16 }
  0x1f   :  { %560 = vmatprep.mubr.msk.f32.mxu1 %vm41_vm1, %v31_v16 }
  0x21   :  { %535 = vmatmul.mubr.msk.f32.gmra.mrb[14].mxu0 %vm41_vm1, %v32_v17 }
  0x22   :  { %561 = vmatmul.mubr.msk.f32.gmra.mrb[14].mxu1 %vm41_vm1, %v32_v17 }
  0xd8   :  { %v515_v19 = vpop.f32.mrb[0].mxu0 }
  0xd9   :  { %v541_v20 = vpop.f32.mrb[0].mxu1  ;;  %v166_v21 = vadd.f32 %v515_v19, %v677_v18  ;;  %v160_v23 = vpop.f32.mrb[1].mxu0 }
  0xda   :  { %v315_v22 = vadd.f32 %v541_v20, %v677_v18  ;;  %v309_v24 = vpop.f32.mrb[1].mxu1  ;;  %v161_v25 = vadd.f32 %v677_v18, %v160_v23 }
  0xdb   :  { %v310_v26 = vadd.f32 %v677_v18, %v309_v24  ;;  %390 = vst.msk [vmem:[%s843_s4 + $0x10] sm:$0xff] %vm388_vm2, %v166_v21 }
  0xdc   :  { %462 = vst.msk [vmem:[%s843_s4 + $0x18] sm:$0xff] %vm388_vm2, %v315_v22  ;;  %389 = vst.msk [vmem:[%s843_s4] sm:$0xff] %vm388_vm2, %v161_v25  ;;  %v518_v27 = vpop.f32.mrb[2].mxu0 }
  0xdd   :  { %461 = vst.msk [vmem:[%s843_s4 + $0x8] sm:$0xff] %vm388_vm2, %v310_v26  ;;  %v544_v28 = vpop.f32.mrb[2].mxu1  ;;  %v176_v29 = vadd.f32 %v518_v27, %v677_v18  ;;  %v170_v31 = vpop.f32.mrb[3].mxu0 }
  0xde   :  { %v325_v30 = vadd.f32 %v544_v28, %v677_v18  ;;  %v319_v32 = vpop.f32.mrb[3].mxu1  ;;  %v171_v33 = vadd.f32 %v677_v18, %v170_v31 }
  0xdf   :  { %v320_v34 = vadd.f32 %v677_v18, %v319_v32  ;;  %392 = vst.msk [vmem:[%s843_s4 + $0x30] sm:$0xff] %vm388_vm2, %v176_v29 }
  0xe0   :  { %464 = vst.msk [vmem:[%s843_s4 + $0x38] sm:$0xff] %vm388_vm2, %v325_v30  ;;  %391 = vst.msk [vmem:[%s843_s4 + $0x20] sm:$0xff] %vm388_vm2, %v171_v33  ;;  %v521_v35 = vpop.f32.mrb[4].mxu0 }
  0xe1   :  { %463 = vst.msk [vmem:[%s843_s4 + $0x28] sm:$0xff] %vm388_vm2, %v320_v34  ;;  %v547_v36 = vpop.f32.mrb[4].mxu1  ;;  %v186_v37 = vadd.f32 %v521_v35, %v677_v18  ;;  %v180_v39 = vpop.f32.mrb[5].mxu0 }
  0xe2   :  { %v335_v38 = vadd.f32 %v547_v36, %v677_v18  ;;  %v329_v40 = vpop.f32.mrb[5].mxu1  ;;  %v181_v41 = vadd.f32 %v677_v18, %v180_v39 }
  0xe3   :  { %v330_v42 = vadd.f32 %v677_v18, %v329_v40  ;;  %394 = vst.msk [vmem:[%s843_s4 + $0x50] sm:$0xff] %vm388_vm2, %v186_v37 }
  0xe4   :  { %466 = vst.msk [vmem:[%s843_s4 + $0x58] sm:$0xff] %vm388_vm2, %v335_v38  ;;  %393 = vst.msk [vmem:[%s843_s4 + $0x40] sm:$0xff] %vm388_vm2, %v181_v41  ;;  %v524_v43 = vpop.f32.mrb[6].mxu0 }
  0xe5   :  { %465 = vst.msk [vmem:[%s843_s4 + $0x48] sm:$0xff] %vm388_vm2, %v330_v42  ;;  %v550_v44 = vpop.f32.mrb[6].mxu1  ;;  %v196_v45 = vadd.f32 %v524_v43, %v677_v18  ;;  %v190_v47 = vpop.f32.mrb[7].mxu0 }
  0xe6   :  { %v345_v46 = vadd.f32 %v550_v44, %v677_v18  ;;  %v339_v48 = vpop.f32.mrb[7].mxu1  ;;  %v191_v49 = vadd.f32 %v677_v18, %v190_v47 }
  0xe7   :  { %v340_v50 = vadd.f32 %v677_v18, %v339_v48  ;;  %396 = vst.msk [vmem:[%s843_s4 + $0x70] sm:$0xff] %vm388_vm2, %v196_v45 }
  0xe8   :  { %468 = vst.msk [vmem:[%s843_s4 + $0x78] sm:$0xff] %vm388_vm2, %v345_v46  ;;  %395 = vst.msk [vmem:[%s843_s4 + $0x60] sm:$0xff] %vm388_vm2, %v191_v49  ;;  %v527_v51 = vpop.f32.mrb[8].mxu0 }
  0xe9   :  { %467 = vst.msk [vmem:[%s843_s4 + $0x68] sm:$0xff] %vm388_vm2, %v340_v50  ;;  %v553_v52 = vpop.f32.mrb[8].mxu1  ;;  %v206_v53 = vadd.f32 %v527_v51, %v677_v18  ;;  %v200_v55 = vpop.f32.mrb[9].mxu0 }
  0xea   :  { %v355_v54 = vadd.f32 %v553_v52, %v677_v18  ;;  %v349_v56 = vpop.f32.mrb[9].mxu1  ;;  %v201_v57 = vadd.f32 %v677_v18, %v200_v55 }
  0xeb   :  { %v350_v58 = vadd.f32 %v677_v18, %v349_v56  ;;  %398 = vst.msk [vmem:[%s843_s4 + $0x90] sm:$0xff] %vm388_vm2, %v206_v53 }
  0xec   :  { %470 = vst.msk [vmem:[%s843_s4 + $0x98] sm:$0xff] %vm388_vm2, %v355_v54  ;;  %397 = vst.msk [vmem:[%s843_s4 + $0x80] sm:$0xff] %vm388_vm2, %v201_v57  ;;  %v530_v59 = vpop.f32.mrb[10].mxu0 }
  0xed   :  { %469 = vst.msk [vmem:[%s843_s4 + $0x88] sm:$0xff] %vm388_vm2, %v350_v58  ;;  %v556_v60 = vpop.f32.mrb[10].mxu1  ;;  %v216_v61 = vadd.f32 %v530_v59, %v677_v18  ;;  %v210_v63 = vpop.f32.mrb[11].mxu0 }
  0xee   :  { %v365_v62 = vadd.f32 %v556_v60, %v677_v18  ;;  %v359_v0 = vpop.f32.mrb[11].mxu1  ;;  %v211_v1 = vadd.f32 %v677_v18, %v210_v63 }
  0xef   :  { %v360_v2 = vadd.f32 %v677_v18, %v359_v0  ;;  %400 = vst.msk [vmem:[%s843_s4 + $0xb0] sm:$0xff] %vm388_vm2, %v216_v61 }
  0xf0   :  { %472 = vst.msk [vmem:[%s843_s4 + $0xb8] sm:$0xff] %vm388_vm2, %v365_v62  ;;  %399 = vst.msk [vmem:[%s843_s4 + $0xa0] sm:$0xff] %vm388_vm2, %v211_v1  ;;  %v533_v3 = vpop.f32.mrb[12].mxu0 }
  0xf1   :  { %471 = vst.msk [vmem:[%s843_s4 + $0xa8] sm:$0xff] %vm388_vm2, %v360_v2  ;;  %v559_v4 = vpop.f32.mrb[12].mxu1  ;;  %v226_v5 = vadd.f32 %v533_v3, %v677_v18  ;;  %v220_v7 = vpop.f32.mrb[13].mxu0 }
  0xf2   :  { %v375_v6 = vadd.f32 %v559_v4, %v677_v18  ;;  %v369_v8 = vpop.f32.mrb[13].mxu1  ;;  %v221_v9 = vadd.f32 %v677_v18, %v220_v7 }
  0xf3   :  { %v370_v10 = vadd.f32 %v677_v18, %v369_v8  ;;  %402 = vst.msk [vmem:[%s843_s4 + $0xd0] sm:$0xff] %vm388_vm2, %v226_v5 }
  0xf4   :  { %474 = vst.msk [vmem:[%s843_s4 + $0xd8] sm:$0xff] %vm388_vm2, %v375_v6  ;;  %401 = vst.msk [vmem:[%s843_s4 + $0xc0] sm:$0xff] %vm388_vm2, %v221_v9  ;;  %v536_v11 = vpop.f32.mrb[14].mxu0 }
  0xf5   :  { %473 = vst.msk [vmem:[%s843_s4 + $0xc8] sm:$0xff] %vm388_vm2, %v370_v10  ;;  %v562_v12 = vpop.f32.mrb[14].mxu1  ;;  %v236_v13 = vadd.f32 %v536_v11, %v677_v18  ;;  %v230_v15 = vpop.f32.mrb[15].mxu0 }
  0xf6   :  { %v385_v14 = vadd.f32 %v562_v12, %v677_v18  ;;  %v379_v16 = vpop.f32.mrb[15].mxu1  ;;  %v231_v17 = vadd.f32 %v677_v18, %v230_v15 }
  0xf7   :  { %v380_v19 = vadd.f32 %v677_v18, %v379_v16  ;;  %404 = vst.msk [vmem:[%s843_s4 + $0xf0] sm:$0xff] %vm388_vm2, %v236_v13 }
  0xf8   :  { %476 = vst.msk [vmem:[%s843_s4 + $0xf8] sm:$0xff] %vm388_vm2, %v385_v14  ;;  %403 = vst.msk [vmem:[%s843_s4 + $0xe0] sm:$0xff] %vm388_vm2, %v231_v17 }
  0xf9   :  { %475 = vst.msk [vmem:[%s843_s4 + $0xe8] sm:$0xff] %vm388_vm2, %v380_v19 }

// kernel: decoder_layer_forward.5
= control target key start
LH: loop header
LB: loop body
LE: loop exit
PB: predicated region body
PF: predicated region fallthrough
CT: control target
= control target key end

     0   :  { %vm44_vm0 = vcmask 523264   ;;  %s105_s0 = inlined_call_operand.vmem [shape: f32[32,64], index: 0, kind: input, shape index: {}]   ;;  %s106_s1 = inlined_call_operand.vmem [shape: f32[1,64], index: 1, kind: input, shape index: {}]   ;;  %s107_s2 = inlined_call_operand.vmem [shape: f32[1,64], index: 2, kind: input, shape index: {}]   ;;  %s108_s3 = inlined_call_operand.vmem [shape: f32[32,64], index: 3, kind: output, shape index: {}]  }
   0x1   :  { %v14_v0 = vld [vmem:[%s105_s0] sm:$0xff]  ;;  %v15_v4 = vld [vmem:[%s105_s0 + $0x8] sm:$0xff]  ;;  %v16_v5 = vld [vmem:[%s105_s0 + $0x10] sm:$0xff] }
   0x2   :  { %v53_v1 = vld [vmem:[%s106_s1] ss:$0 sm:$0xff]  ;;  %v17_v6 = vld [vmem:[%s105_s0 + $0x18] sm:$0xff] }
   0x3   :  { %v54_v2 = vld [vmem:[%s107_s2] ss:$0 sm:$0xff]  ;;  %v25_v3 = vmul.f32 %v53_v1, %v14_v0  ;;  %v26_v7 = vmul.f32 %v53_v1, %v15_v4  ;;  %v27_v8 = vmul.f32 %v53_v1, %v16_v5  ;;  %v28_v9 = vmul.f32 %v53_v1, %v17_v6 }
   0x5   :  { %v36_v10 = vadd.f32 %v54_v2, %v25_v3  ;;  %v37_v11 = vadd.f32 %v54_v2, %v26_v7  ;;  %v38_v12 = vadd.f32 %v54_v2, %v27_v8  ;;  %v39_v13 = vadd.f32 %v54_v2, %v28_v9 }
   0x7   :  { %v40_v14 = vmax.f32 %v36_v10, 0.0  ;;  %v41_v15 = vmax.f32 %v37_v11, 0.0  ;;  %v42_v16 = vmax.f32 %v38_v12, 0.0  ;;  %v43_v17 = vmax.f32 %v39_v13, 0.0 }
   0x9   :  { %45 = vst.msk [vmem:[%s108_s3] sm:$0xff] %vm44_vm0, %v40_v14  ;;  %46 = vst.msk [vmem:[%s108_s3 + $0x8] sm:$0xff] %vm44_vm0, %v41_v15 }
   0xa   :  { %47 = vst.msk [vmem:[%s108_s3 + $0x10] sm:$0xff] %vm44_vm0, %v42_v16  ;;  %48 = vst.msk [vmem:[%s108_s3 + $0x18] sm:$0xff] %vm44_vm0, %v43_v17 }

// kernel: decoder_layer_forward.4
= control target key start
LH: loop header
LB: loop body
LE: loop exit
PB: predicated region body
PF: predicated region fallthrough
CT: control target
= control target key end

     0   :  { %s2780_s21 = smov 0   ;;  %s2782_s22 = smov 0   ;;  %s4515_s0 = inlined_call_operand.vmem [shape: f32[2,18,18,8], index: 0, kind: input, shape index: {}, may-alias: {0,1}]   ;;  %s4516_s1 = inlined_call_operand.vmem [shape: f32[2,18,18,8], index: 1, kind: input, shape index: {}, may-alias: {0,1}]   ;;  %s4517_s2 = inlined_call_operand.vmem [shape: f32[72,4], index: 2, kind: input, shape index: {}]   ;;  %s4518_s3 = inlined_call_operand.vmem [shape: f32[1,4], index: 3, kind: input, shape index: {}]   ;;  %s4519_s4 = inlined_call_operand.vmem [shape: f32[2,16,16,4], index: 4, kind: output, shape index: {0}]   ;;  %s4520_s5 = inlined_call_operand.vmem [shape: f32[2,1,8,4], index: 5, kind: output, shape index: {1}]   ;;  %s4521_s6 = inlined_call_operand.vmem [shape: f32[2,1,8,4], index: 6, kind: output, shape index: {2}]  }
   0x1   :  { %s2784_s23 = smov 0  }
   0x2 LB: > { %s29_s24 = sadd.s32 1, %s2731_s22  ;;  %p2479_p0 = scmp.ge.s32.totalorder %s2735_s23, 1  ;;  %s2735_s23 = sphi %s2784_s23, %s17_s23   ;;  %s2731_s22 = sphi %s2782_s22, %s4727_s22   ;;  %s2727_s21 = sphi %s2780_s21, %s4726_s21  }
   0x3   : > { %p31_p1 = scmp.ge.s32.totalorder %s29_s24, 2  ;;  %p279_p2 = scmp.lt.s32.totalorder %s2735_s23, 3 }
   0x5   : > { %s4729_s24 = smov (%p31_p1, %s29_s24), 0  ;;  %p280_p3 = pnand %p2479_p0, %p279_p2 }
   0x7   : > { %283 = sbr.rel (%p280_p3) target bundleno = 885 (0x375), region = 36 }
   0xe   : > { %p356_p4 = scmp.lt.s32.totalorder %s2727_s21, 1  ;;  %vm513_vm0 = vcmask 1046528   ;;  %s2737_s29 = smov 8   ;;  %vm594_vm1 = vcmask 1045504   ;;  %vm1469_vm2 = vcmask 64512   ;;  %vm1502_vm3 = vcmask 130048  }
   0xf   : > { %s2738_s30 = smov 16   ;;  %s2739_s7 = smov 24   ;;  %vm1535_vm4 = vcmask 195584   ;;  %vm1568_vm5 = vcmask 261120   ;;  %vm1601_vm6 = vcmask 326656   ;;  %vm1634_vm7 = vcmask 392192  }
  0x10   : > { %s4731_s21 = smov (!%p356_p4, %s2727_s21), 1  ;;  %s2740_s16 = smov 32   ;;  %vm1667_vm8 = vcmask 457728   ;;  %vm1700_vm9 = vcmask 523264   ;;  %vm1749_vm10 = vcmask 588800   ;;  %vm2071_vm11 = vcmask 31744  }
  0x11   : > { %s2657_s25 = smul.u32 432, %s4731_s21  ;;  %s2741_s26 = smov 40  }
  0x12   : > { %s2742_s9 = smov 48   ;;  %s2743_s12 = smov 56  }
  0x13   : > { %s2806_s28 = scalar_lea.vmem %s4515_s0, %s2657_s25  ;;  %s2744_s13 = smov 64  }
  0x14   : > { %v2809_v0 = vld [vmem:[%s2806_s28 + $0x18] sm:$0xff]  ;;  %v2812_v1 = vld [vmem:[%s2806_s28 + $0x20] sm:$0xff]  ;;  %v2820_v5 = vld [vmem:[%s2806_s28 + $0x8] sm:$0xff] }
  0x15   : > { %v2815_v2 = vld [vmem:[%s2806_s28] sm:$0xff]  ;;  %v519_v3 = vrot.slane %v2809_v0, 1  ;;  %v520_v4 = vrot.slane %v2812_v1, 1  ;;  %v2824_v7 = vld [vmem:[%s2806_s28 + $0x28] sm:$0x3]  ;;  %v515_v8 = vrot.slane %v2820_v5, 1 }
  0x16   : > { %v514_v6 = vrot.slane %v2815_v2, 1  ;;  %v522_v9 = vrot.slane %v2824_v7, 1  ;;  %v2829_v10 = vld [vmem:[%s2806_s28 + $0x10] sm:$0x3]  ;;  %v2832_v11 = vld [vmem:[%s2806_s28 + $0x38] sm:$0xff]  ;;  %v2862_v24 = vld [vmem:[%s2806_s28 + $0x48] sm:$0xff] }
  0x17   : > { %v2835_v12 = vsel %vm513_vm0, %v519_v3, %v520_v4  ;;  %v517_v13 = vrot.slane %v2829_v10, 1  ;;  %v2839_v14 = vld [vmem:[%s2806_s28 + $0x40] sm:$0x3]  ;;  %v2842_v15 = vld [vmem:[%s2806_s28 + $0x30] sm:$0xff]  ;;  %v525_v18 = vrot.slane %v2832_v11, 1  ;;  %v529_v29 = vrot.slane %v2862_v24, 1 }
  0x18   : > { %705 = vrot.lane.b32.xlu1 %v2835_v12, %s2737_s29  ;;  %v516_v16 = vsel %vm513_vm0, %v514_v6, %v515_v8  ;;  %v2849_v17 = vsel %vm513_vm0, %v520_v4, %v522_v9  ;;  %v527_v19 = vrot.slane %v2839_v14, 1  ;;  %v524_v21 = vrot.slane %v2842_v15, 1  ;;  %v2856_v22 = vld [vmem:[%s2806_s28 + $0x50] sm:$0xff]  ;;  %v2859_v23 = vld [vmem:[%s2806_s28 + $0x58] sm:$0x3]  ;;  %v2877_v30 = vld [vmem:[%s2806_s28 + $0x68] sm:$0xff] }
  0x19   : > { %701 = vrot.lane.b32.xlu0 %v516_v16, %s2737_s29  ;;  %v518_v20 = vsel %vm513_vm0, %v515_v8, %v517_v13  ;;  %v530_v26 = vrot.slane %v2856_v22, 1  ;;  %v532_v27 = vrot.slane %v2859_v23, 1  ;;  %v2880_v31 = vld [vmem:[%s2806_s28 + $0x70] sm:$0x3]  ;;  %v2883_v32 = vld [vmem:[%s2806_s28 + $0x60] sm:$0xff]  ;;  %v535_v34 = vrot.slane %v2877_v30, 1 }
  0x1a   : > { %v2868_v25 = vsel %vm513_vm0, %v525_v18, %v527_v19  ;;  %v2873_v28 = vsel %vm513_vm0, %v524_v21, %v525_v18  ;;  %v537_v35 = vrot.slane %v2880_v31, 1  ;;  %v534_v37 = vrot.slane %v2883_v32, 1  ;;  %v2899_v38 = vld [vmem:[%s2806_s28 + $0x80] sm:$0xff]  ;;  %v2902_v39 = vld [vmem:[%s2806_s28 + $0x88] sm:$0x3]  ;;  %v2905_v40 = vld [vmem:[%s2806_s28 + $0x78] sm:$0xff] }
  0x1b   : > { %v2890_v33 = vsel %vm513_vm0, %v530_v26, %v532_v27  ;;  %v2895_v36 = vsel %vm513_vm0, %v529_v29, %v530_v26  ;;  %v540_v42 = vrot.slane %v2899_v38, 1  ;;  %v542_v43 = vrot.slane %v2902_v39, 1  ;;  %v2921_v46 = vld [vmem:[%s2806_s28 + $0x98] sm:$0xff]  ;;  %v2924_v47 = vld [vmem:[%s2806_s28 + $0xa0] sm:$0x3]  ;;  %v2927_v48 = vld [vmem:[%s2806_s28 + $0x90] sm:$0xff] }
  0x1c   : > { %707 = vrot.lane.b32.xlu1 %v2849_v17, %s2737_s29  ;;  %4610 = vst [vmem:[#allocation2_spill] sm:$0xff] %v2890_v33  ;;  %v2912_v41 = vsel %vm513_vm0, %v535_v34, %v537_v35  ;;  %v2917_v44 = vsel %vm513_vm0, %v534_v37, %v535_v34  ;;  %v539_v45 = vrot.slane %v2905_v40, 1  ;;  %v545_v50 = vrot.slane %v2921_v46, 1  ;;  %v2943_v54 = vld [vmem:[%s2806_s28 + $0xb0] sm:$0xff]  ;;  %v2946_v55 = vld [vmem:[%s2806_s28 + $0xb8] sm:$0x3] }
  0x1d   : > { %703 = vrot.lane.b32.xlu0 %v518_v20, %s2737_s29  ;;  %4611 = vst [vmem:[#allocation3_spill] sm:$0xff] %v2912_v41  ;;  %4612 = vst [vmem:[#allocation4_spill] sm:$0xff] %v2917_v44  ;;  %v2934_v49 = vsel %vm513_vm0, %v540_v42, %v542_v43  ;;  %v547_v51 = vrot.slane %v2924_v47, 1  ;;  %v544_v53 = vrot.slane %v2927_v48, 1  ;;  %v2949_v56 = vld [vmem:[%s2806_s28 + $0xa8] sm:$0xff]  ;;  %v550_v58 = vrot.slane %v2943_v54, 1 }
  0x1e   : > { %4613 = vst [vmem:[#allocation5_spill] sm:$0xff] %v2934_v49  ;;  %v2939_v52 = vsel %vm513_vm0, %v539_v45, %v540_v42  ;;  %v552_v59 = vrot.slane %v2946_v55, 1  ;;  %v549_v61 = vrot.slane %v2949_v56, 1  ;;  %v2965_v62 = vld [vmem:[%s2806_s28 + $0xc8] sm:$0xff]  ;;  %v2968_v63 = vld [vmem:[%s2806_s28 + $0xd0] sm:$0x3] }
  0x1f   : > { %4614 = vst [vmem:[#allocation6_spill] sm:$0xff] %v2939_v52  ;;  %v2956_v57 = vsel %vm513_vm0, %v545_v50, %v547_v51  ;;  %v2961_v60 = vsel %vm513_vm0, %v544_v53, %v545_v50  ;;  %v2971_v3 = vld [vmem:[%s2806_s28 + $0xc0] sm:$0xff]  ;;  %v555_v6 = vrot.slane %v2965_v62, 1  ;;  %v557_v8 = vrot.slane %v2968_v63, 1  ;;  %v2990_v18 = vld [vmem:[%s2806_s28 + $0xe8] sm:$0x3] }
  0x20   : > { %711 = vrot.lane.b32.xlu1 %v2868_v25, %s2737_s29  ;;  %4615 = vst [vmem:[#allocation7_spill] sm:$0xff] %v2956_v57  ;;  %4616 = vst [vmem:[#allocation8_spill] sm:$0xff] %v2961_v60  ;;  %v2978_v4 = vsel %vm513_vm0, %v550_v58, %v552_v59  ;;  %v2983_v9 = vsel %vm513_vm0, %v549_v61, %v550_v58  ;;  %v554_v13 = vrot.slane %v2971_v3, 1  ;;  %v2987_v16 = vld [vmem:[%s2806_s28 + $0xe0] sm:$0xff]  ;;  %v2993_v19 = vld [vmem:[%s2806_s28 + $0xd8] sm:$0xff]  ;;  %v562_v26 = vrot.slane %v2990_v18, 1 }
  0x21   : > { %709 = vrot.lane.b32.xlu0 %v2873_v28, %s2737_s29  ;;  %4617 = vst [vmem:[#allocation9_spill] sm:$0xff] %v2978_v4  ;;  %4618 = vst [vmem:[#allocation10_spill] sm:$0xff] %v2983_v9  ;;  %v3000_v20 = vsel %vm513_vm0, %v555_v6, %v557_v8  ;;  %v560_v21 = vrot.slane %v2987_v16, 1  ;;  %v559_v29 = vrot.slane %v2993_v19, 1  ;;  %v3009_v34 = vld [vmem:[%s2806_s28 + $0xf8] sm:$0xff]  ;;  %v3015_v37 = vld [vmem:[%s2806_s28 + $0xf0] sm:$0xff] }
  0x22   : > { %4619 = vst [vmem:[#allocation11_spill] sm:$0xff] %v3000_v20  ;;  %v3005_v27 = vsel %vm513_vm0, %v554_v13, %v555_v6  ;;  %v3012_v35 = vld [vmem:[%s2806_s28 + $0x100] sm:$0x3]  ;;  %v565_v43 = vrot.slane %v3009_v34, 1  ;;  %v564_v51 = vrot.slane %v3015_v37, 1  ;;  %v3031_v53 = vld [vmem:[%s2806_s28 + $0x110] sm:$0xff] }
  0x23   : > { %4620 = vst [vmem:[#allocation12_spill] sm:$0xff] %v3005_v27  ;;  %v3022_v42 = vsel %vm513_vm0, %v560_v21, %v562_v26  ;;  %v567_v45 = vrot.slane %v3012_v35, 1  ;;  %v3027_v50 = vsel %vm513_vm0, %v559_v29, %v560_v21  ;;  %v3034_v58 = vld [vmem:[%s2806_s28 + $0x118] sm:$0x3]  ;;  %v3037_v59 = vld [vmem:[%s2806_s28 + $0x108] sm:$0xff]  ;;  %v570_v6 = vrot.slane %v3031_v53, 1 }
  0x24   : > { %715 = vrot.lane.b32.xlu1 %v2890_v33, %s2737_s29  ;;  %4621 = vst [vmem:[#allocation13_spill] sm:$0xff] %v3022_v42  ;;  %4622 = vst [vmem:[#allocation14_spill] sm:$0xff] %v3027_v50  ;;  %v572_v8 = vrot.slane %v3034_v58, 1  ;;  %v3049_v13 = vsel %vm513_vm0, %v564_v51, %v565_v43  ;;  %v569_v21 = vrot.slane %v3037_v59, 1  ;;  %v3053_v26 = vld [vmem:[%s2806_s28 + $0x128] sm:$0xff] }
  0x25   : > { %713 = vrot.lane.b32.xlu0 %v2895_v36, %s2737_s29  ;;  %v3044_v61 = vsel %vm513_vm0, %v565_v43, %v567_v45  ;;  %4624 = vst [vmem:[#allocation16_spill] sm:$0xff] %v3049_v13  ;;  %v3056_v29 = vld [vmem:[%s2806_s28 + $0x130] sm:$0x3]  ;;  %v575_v43 = vrot.slane %v3053_v26, 1 }
  0x26   : > { %4623 = vst [vmem:[#allocation15_spill] sm:$0xff] %v3044_v61  ;;  %v3066_v45 = vsel %vm513_vm0, %v570_v6, %v572_v8  ;;  %v577_v51 = vrot.slane %v3056_v29, 1 }
  0x27   : > { %4625 = vst [vmem:[#allocation17_spill] sm:$0xff] %v3066_v45 }
  0x28   : > { %719 = vrot.lane.b32.xlu1 %v2912_v41, %s2737_s29  ;;  %v3088_v8 = vsel %vm513_vm0, %v575_v43, %v577_v51  ;;  %v3122_v41 = vld [vmem:[%s2806_s28 + $0x178] sm:$0x3] }
  0x29   : > { %717 = vrot.lane.b32.xlu0 %v2917_v44, %s2737_s29  ;;  %4627 = vst [vmem:[#allocation19_spill] sm:$0xff] %v3088_v8 }
  0x2c   : > { %723 = vrot.lane.b32.xlu1 %v2934_v49, %s2737_s29 }
  0x2d   : > { %721 = vrot.lane.b32.xlu0 %v2939_v52, %s2737_s29  ;;  %v3119_v52 = vld [vmem:[%s2806_s28 + $0x170] sm:$0xff] }
  0x30   : > { %727 = vrot.lane.b32.xlu1 %v2956_v57, %s2737_s29  ;;  %v3097_v57 = vld [vmem:[%s2806_s28 + $0x158] sm:$0xff] }
  0x31   : > { %725 = vrot.lane.b32.xlu0 %v2961_v60, %s2737_s29 }
  0x34   : > { %731 = vrot.lane.b32.xlu1 %v2978_v4, %s2737_s29 }
  0x35   : > { %729 = vrot.lane.b32.xlu0 %v2983_v9, %s2737_s29 }
  0x38   : > { %735 = vrot.lane.b32.xlu1 %v3000_v20, %s2737_s29 }
  0x39   : > { %733 = vrot.lane.b32.xlu0 %v3005_v27, %s2737_s29  ;;  %v3075_v27 = vld [vmem:[%s2806_s28 + $0x140] sm:$0xff] }
  0x3c   : > { %739 = vrot.lane.b32.xlu1 %v3022_v42, %s2737_s29  ;;  %v3059_v42 = vld [vmem:[%s2806_s28 + $0x120] sm:$0xff] }
  0x3d   : > { %737 = vrot.lane.b32.xlu0 %v3027_v50, %s2737_s29  ;;  %v3071_v50 = vsel %vm513_vm0, %v569_v21, %v570_v6  ;;  %v574_v20 = vrot.slane %v3059_v42, 1  ;;  %v580_v6 = vrot.slane %v3075_v27, 1 }
  0x3e   : > { %4626 = vst [vmem:[#allocation18_spill] sm:$0xff] %v3071_v50 }
  0x3f   : > { %v3093_v4 = vsel %vm513_vm0, %v574_v20, %v575_v43  ;;  %v585_v20 = vrot.slane %v3097_v57, 1 }
  0x40   : > { %743 = vrot.lane.b32.xlu1 %v3044_v61, %s2737_s29  ;;  %v3078_v61 = vld [vmem:[%s2806_s28 + $0x148] sm:$0x3]  ;;  %4628 = vst [vmem:[#allocation20_spill] sm:$0xff] %v3093_v4 }
  0x41   : > { %741 = vrot.lane.b32.xlu0 %v3049_v13, %s2737_s29  ;;  %v3081_v13 = vld [vmem:[%s2806_s28 + $0x138] sm:$0xff]  ;;  %v582_v21 = vrot.slane %v3078_v61, 1 }
  0x42   : > { %v579_v9 = vrot.slane %v3081_v13, 1 }
  0x43   : > { %v3110_v51 = vsel %vm513_vm0, %v580_v6, %v582_v21 }
  0x44   : > { %747 = vrot.lane.b32.xlu1 %v3066_v45, %s2737_s29  ;;  %v3100_v45 = vld [vmem:[%s2806_s28 + $0x160] sm:$0x3]  ;;  %4629 = vst [vmem:[#allocation21_spill] sm:$0xff] %v3110_v51  ;;  %v3115_v60 = vsel %vm513_vm0, %v579_v9, %v580_v6  ;;  %v590_v9 = vrot.slane %v3119_v52, 1  ;;  %v592_v6 = vrot.slane %v3122_v41, 1 }
  0x45   : > { %745 = vrot.lane.b32.xlu0 %v3071_v50, %s2737_s29  ;;  %v3103_v50 = vld [vmem:[%s2806_s28 + $0x150] sm:$0xff]  ;;  %v587_v43 = vrot.slane %v3100_v45, 1  ;;  %4630 = vst [vmem:[#allocation22_spill] sm:$0xff] %v3115_v60 }
  0x46   : > { %v584_v49 = vrot.slane %v3103_v50, 1 }
  0x47   : > { %v3132_v21 = vsel %vm513_vm0, %v585_v20, %v587_v43  ;;  %v596_v43 = vrot.slane %v2820_v5, 2  ;;  %v603_v5 = vrot.slane %v2824_v7, 2  ;;  %v605_v7 = vrot.slane %v2842_v15, 2 }
  0x48   : > { %751 = vrot.lane.b32.xlu1 %v3088_v8, %s2737_s29  ;;  %v3125_v8 = vld [vmem:[%s2806_s28 + $0x168] sm:$0xff]  ;;  %4631 = vst [vmem:[#allocation23_spill] sm:$0xff] %v3132_v21 }
  0x49   : > { %749 = vrot.lane.b32.xlu0 %v3093_v4, %s2737_s29  ;;  %v3137_v4 = vsel %vm513_vm0, %v584_v49, %v585_v20  ;;  %v589_v44 = vrot.slane %v3125_v8, 1  ;;  %v595_v49 = vrot.slane %v2815_v2, 2 }
  0x4a   : > { %4632 = vst [vmem:[#allocation24_spill] sm:$0xff] %v3137_v4 }
  0x4b   : > { %v3150_v33 = vsel %vm513_vm0, %v589_v44, %v590_v9  ;;  %v600_v44 = vrot.slane %v2809_v0, 2 }
  0x4c   : > { %755 = vrot.lane.b32.xlu1 %v3110_v51, %s2737_s29  ;;  %v3145_v51 = vsel %vm513_vm0, %v590_v9, %v592_v6  ;;  %4634 = vst [vmem:[#allocation26_spill] sm:$0xff] %v3150_v33  ;;  %v601_v6 = vrot.slane %v2812_v1, 2  ;;  %v606_v9 = vrot.slane %v2832_v11, 2 }
  0x4d   : > { %753 = vrot.lane.b32.xlu0 %v3115_v60, %s2737_s29  ;;  %4633 = vst [vmem:[#allocation25_spill] sm:$0xff] %v3145_v51  ;;  %v598_v60 = vrot.slane %v2829_v10, 2  ;;  %v597_v10 = vsel %vm594_vm1, %v595_v49, %v596_v43  ;;  %v611_v49 = vrot.slane %v2856_v22, 2 }
  0x4e   : > { %v3165_v2 = vsel %vm594_vm1, %v601_v6, %v603_v5 }
  0x4f   : > { %v599_v20 = vsel %vm594_vm1, %v596_v43, %v598_v60  ;;  %v608_v60 = vrot.slane %v2839_v14, 2  ;;  %v3183_v14 = vsel %vm594_vm1, %v605_v7, %v606_v9  ;;  %v621_v7 = vrot.slane %v2899_v38, 2 }
  0x50   : > { %759 = vrot.lane.b32.xlu1 %v3132_v21, %s2737_s29  ;;  %v633_v21 = vrot.slane %v2946_v55, 2 }
  0x51   : > { %757 = vrot.lane.b32.xlu0 %v3137_v4, %s2737_s29  ;;  %v3178_v43 = vsel %vm594_vm1, %v606_v9, %v608_v60  ;;  %v615_v9 = vrot.slane %v2883_v32, 2  ;;  %v638_v4 = vrot.slane %v2968_v63, 2 }
  0x54   : > { %763 = vrot.lane.b32.xlu1 %v3145_v51, %s2737_s29  ;;  %v3170_v51 = vsel %vm594_vm1, %v600_v44, %v601_v6  ;;  %v610_v6 = vrot.slane %v2862_v24, 2  ;;  %v618_v44 = vrot.slane %v2880_v31, 2 }
  0x55   : > { %761 = vrot.lane.b32.xlu0 %v3150_v33, %s2737_s29  ;;  %v628_v33 = vrot.slane %v2924_v47, 2 }
  0x58   : > { %799 = vrot.lane.b32.xlu1 %v599_v20, %s2738_s30  ;;  %v613_v20 = vrot.slane %v2859_v23, 2  ;;  %v3196_v23 = vsel %vm594_vm1, %v610_v6, %v611_v49 }
  0x59   : > { %797 = vrot.lane.b32.xlu0 %v597_v10, %s2738_s30  ;;  %v616_v10 = vrot.slane %v2877_v30, 2 }
  0x5a   : > { %v3191_v5 = vsel %vm594_vm1, %v611_v49, %v613_v20  ;;  %v623_v20 = vrot.slane %v2902_v39, 2  ;;  %v620_v49 = vrot.slane %v2905_v40, 2 }
  0x5b   : > { %v3204_v60 = vsel %vm594_vm1, %v616_v10, %v618_v44  ;;  %v3209_v31 = vsel %vm594_vm1, %v615_v9, %v616_v10  ;;  %v626_v44 = vrot.slane %v2921_v46, 2  ;;  %v625_v10 = vrot.slane %v2927_v48, 2 }
  0x5c   : > { %803 = vrot.lane.b32.xlu1 %v3165_v2, %s2738_s30  ;;  %v3217_v6 = vsel %vm594_vm1, %v621_v7, %v623_v20  ;;  %v3222_v39 = vsel %vm594_vm1, %v620_v49, %v621_v7  ;;  %v631_v20 = vrot.slane %v2943_v54, 2  ;;  %v630_v7 = vrot.slane %v2949_v56, 2 }
  0x5d   : > { %801 = vrot.lane.b32.xlu0 %v3170_v51, %s2738_s30  ;;  %v3230_v9 = vsel %vm594_vm1, %v626_v44, %v628_v33  ;;  %v3235_v47 = vsel %vm594_vm1, %v625_v10, %v626_v44  ;;  %v636_v33 = vrot.slane %v2965_v62, 2  ;;  %v635_v44 = vrot.slane %v2971_v3, 2 }
  0x5e   : > { %4635 = vst [vmem:[#allocation27_spill] sm:$0xff] %v3230_v9  ;;  %v3243_v49 = vsel %vm594_vm1, %v631_v20, %v633_v21  ;;  %v3248_v55 = vsel %vm594_vm1, %v630_v7, %v631_v20  ;;  %v641_v21 = vrot.slane %v2987_v16, 2  ;;  %v640_v20 = vrot.slane %v2993_v19, 2 }
  0x5f   : > { %4636 = vst [vmem:[#allocation28_spill] sm:$0xff] %v3243_v49  ;;  %4637 = vst [vmem:[#allocation29_spill] sm:$0xff] %v3248_v55  ;;  %v3256_v10 = vsel %vm594_vm1, %v636_v33, %v638_v4  ;;  %v3261_v63 = vsel %vm594_vm1, %v635_v44, %v636_v33  ;;  %v646_v4 = vrot.slane %v3009_v34, 2  ;;  %v645_v33 = vrot.slane %v3015_v37, 2 }
  0x60   : > { %807 = vrot.lane.b32.xlu1 %v3178_v43, %s2738_s30  ;;  %4638 = vst [vmem:[#allocation30_spill] sm:$0xff] %v3256_v10  ;;  %4639 = vst [vmem:[#allocation31_spill] sm:$0xff] %v3261_v63 }
  0x61   : > { %805 = vrot.lane.b32.xlu0 %v3183_v14, %s2738_s30 }
  0x64   : > { %811 = vrot.lane.b32.xlu1 %v3191_v5, %s2738_s30 }
  0x65   : > { %809 = vrot.lane.b32.xlu0 %v3196_v23, %s2738_s30 }
  0x68   : > { %815 = vrot.lane.b32.xlu1 %v3204_v60, %s2738_s30 }
  0x69   : > { %813 = vrot.lane.b32.xlu0 %v3209_v31, %s2738_s30 }
  0x6c   : > { %819 = vrot.lane.b32.xlu1 %v3217_v6, %s2738_s30 }
  0x6d   : > { %817 = vrot.lane.b32.xlu0 %v3222_v39, %s2738_s30 }
  0x70   : > { %823 = vrot.lane.b32.xlu1 %v3230_v9, %s2738_s30  ;;  %v643_v9 = vrot.slane %v2990_v18, 2  ;;  %v3274_v18 = vsel %vm594_vm1, %v640_v20, %v641_v21 }
  0x71   : > { %821 = vrot.lane.b32.xlu0 %v3235_v47, %s2738_s30  ;;  %4641 = vst [vmem:[#allocation33_spill] sm:$0xff] %v3274_v18 }
  0x72   : > { %v3269_v7 = vsel %vm594_vm1, %v641_v21, %v643_v9  ;;  %v651_v9 = vrot.slane %v3031_v53, 2  ;;  %v650_v21 = vrot.slane %v3037_v59, 2 }
  0x73   : > { %4640 = vst [vmem:[#allocation32_spill] sm:$0xff] %v3269_v7 }
  0x74   : > { %827 = vrot.lane.b32.xlu1 %v3243_v49, %s2738_s30  ;;  %v648_v49 = vrot.slane %v3012_v35, 2  ;;  %v3287_v35 = vsel %vm594_vm1, %v645_v33, %v646_v4 }
  0x75   : > { %825 = vrot.lane.b32.xlu0 %v3248_v55, %s2738_s30  ;;  %4643 = vst [vmem:[#allocation35_spill] sm:$0xff] %v3287_v35 }
  0x76   : > { %v3282_v44 = vsel %vm594_vm1, %v646_v4, %v648_v49  ;;  %v656_v49 = vrot.slane %v3053_v26, 2  ;;  %v655_v4 = vrot.slane %v3059_v42, 2 }
  0x77   : > { %4642 = vst [vmem:[#allocation34_spill] sm:$0xff] %v3282_v44 }
  0x78   : > { %831 = vrot.lane.b32.xlu1 %v3256_v10, %s2738_s30  ;;  %v653_v10 = vrot.slane %v3034_v58, 2  ;;  %v3300_v58 = vsel %vm594_vm1, %v650_v21, %v651_v9 }
  0x79   : > { %829 = vrot.lane.b32.xlu0 %v3261_v63, %s2738_s30  ;;  %4645 = vst [vmem:[#allocation37_spill] sm:$0xff] %v3300_v58  ;;  %v1737_v63 = vld [vmem:[%s4517_s2 + $0x20] sm:$0xff] }
  0x7a   : > { %v3295_v20 = vsel %vm594_vm1, %v651_v9, %v653_v10  ;;  %v661_v10 = vrot.slane %v3075_v27, 2  ;;  %v660_v9 = vrot.slane %v3081_v13, 2 }
  0x7b   : > { %4644 = vst [vmem:[#allocation36_spill] sm:$0xff] %v3295_v20 }
  0x7c   : > { %835 = vrot.lane.b32.xlu1 %v3269_v7, %s2738_s30  ;;  %v658_v7 = vrot.slane %v3056_v29, 2  ;;  %v3313_v29 = vsel %vm594_vm1, %v655_v4, %v656_v49 }
  0x7d   : > { %833 = vrot.lane.b32.xlu0 %v3274_v18, %s2738_s30  ;;  %4647 = vst [vmem:[#allocation39_spill] sm:$0xff] %v3313_v29  ;;  %v1735_v18 = vld [vmem:[%s4517_s2 + $0x10] sm:$0xff] }
  0x7e   : > { %v3308_v33 = vsel %vm594_vm1, %v656_v49, %v658_v7  ;;  %v666_v7 = vrot.slane %v3097_v57, 2  ;;  %v665_v49 = vrot.slane %v3103_v50, 2 }
  0x7f   : > { %4646 = vst [vmem:[#allocation38_spill] sm:$0xff] %v3308_v33 }
  0x80   : > { %839 = vrot.lane.b32.xlu1 %v3282_v44, %s2738_s30  ;;  %v663_v44 = vrot.slane %v3078_v61, 2  ;;  %v3328_v61 = vsel %vm594_vm1, %v660_v9, %v661_v10  ;;  %v670_v9 = vrot.slane %v3125_v8, 2 }
  0x81   : > { %837 = vrot.lane.b32.xlu0 %v3287_v35, %s2738_s30  ;;  %4650 = vst [vmem:[#allocation42_spill] sm:$0xff] %v3328_v61 }
  0x82   : > { %v3321_v21 = vsel %vm594_vm1, %v661_v10, %v663_v44  ;;  %v3345_v10 = vsel %vm594_vm1, %v665_v49, %v666_v7 }
  0x83   : > { %4648 = vst [vmem:[#allocation40_spill] sm:$0xff] %v3321_v21  ;;  %4654 = vst [vmem:[#allocation46_spill] sm:$0xff] %v3345_v10 }
  0x84   : > { %843 = vrot.lane.b32.xlu1 %v3295_v20, %s2738_s30  ;;  %v668_v20 = vrot.slane %v3100_v45, 2  ;;  %v671_v45 = vrot.slane %v3119_v52, 2 }
  0x85   : > { %841 = vrot.lane.b32.xlu0 %v3300_v58, %s2738_s30 }
  0x86   : > { %v3338_v44 = vsel %vm594_vm1, %v666_v7, %v668_v20 }
  0x87   : > { %4652 = vst [vmem:[#allocation44_spill] sm:$0xff] %v3338_v44 }
  0x88   : > { %847 = vrot.lane.b32.xlu1 %v3308_v33, %s2738_s30  ;;  %v673_v33 = vrot.slane %v3122_v41, 2  ;;  %v3360_v41 = vsel %vm594_vm1, %v670_v9, %v671_v45 }
  0x89   : > { %845 = vrot.lane.b32.xlu0 %v3313_v29, %s2738_s30  ;;  %4658 = vst [vmem:[#allocation50_spill] sm:$0xff] %v3360_v41 }
  0x8a   : > { %v3325_v58 = vpop.permute.xlu1 %705  ;;  %v3355_v20 = vsel %vm594_vm1, %v671_v45, %v673_v33 }
  0x8b   : > { %4649 = vst [vmem:[#allocation41_spill] sm:$0xff] %v3325_v58  ;;  %v3331_v4 = vpop.permute.xlu0 %701  ;;  %4656 = vst [vmem:[#allocation48_spill] sm:$0xff] %v3355_v20 }
  0x8c   : > { %4651 = vst [vmem:[#allocation43_spill] sm:$0xff] %v3331_v4  ;;  %851 = vrot.lane.b32.xlu1 %v3321_v21, %s2738_s30 }
  0x8d   : > { %849 = vrot.lane.b32.xlu0 %v3328_v61, %s2738_s30  ;;  %v1733_v61 = vld [vmem:[%s4517_s2] sm:$0xff] }
  0x8e   : > { %v3342_v29 = vpop.permute.xlu1 %707 }
  0x8f   : > { %4653 = vst [vmem:[#allocation45_spill] sm:$0xff] %v3342_v29  ;;  %v3348_v35 = vpop.permute.xlu0 %703  ;;  %v1736_v29 = vld [vmem:[%s4517_s2 + $0x18] sm:$0xff] }
  0x90   : > { %4655 = vst [vmem:[#allocation47_spill] sm:$0xff] %v3348_v35  ;;  %855 = vrot.lane.b32.xlu1 %v3338_v44, %s2738_s30 }
  0x91   : > { %853 = vrot.lane.b32.xlu0 %v3345_v10, %s2738_s30 }
  0x92   : > { %v3357_v21 = vpop.permute.xlu1 %711 }
  0x93   : > { %4657 = vst [vmem:[#allocation49_spill] sm:$0xff] %v3357_v21  ;;  %v3362_v7 = vpop.permute.xlu0 %709 }
  0x94   : > { %4659 = vst [vmem:[#allocation51_spill] sm:$0xff] %v3362_v7  ;;  %859 = vrot.lane.b32.xlu1 %v3355_v20, %s2738_s30 }
  0x95   : > { %857 = vrot.lane.b32.xlu0 %v3360_v41, %s2738_s30 }
  0x96   : > { %v3368_v49 = vpop.permute.xlu1 %715 }
  0x97   : > { %4660 = vst [vmem:[#allocation52_spill] sm:$0xff] %v3368_v49  ;;  %v3370_v44 = vpop.permute.xlu0 %713  ;;  %v1734_v49 = vld [vmem:[%s4517_s2 + $0x8] sm:$0xff] }
  0x98   : > { %4661 = vst [vmem:[#allocation53_spill] sm:$0xff] %v3370_v44  ;;  %895 = vrot.lane.b32.xlu1 %v2812_v1, %s2739_s7  ;;  %v2631_v44 = vpack.c.bf16 %v1734_v49, %v1733_v61  ;;  %v2635_v61 = vpack.c.bf16 %v1736_v29, %v1735_v18  ;;  %v1738_v18 = vld [vmem:[%s4517_s2 + $0x28] sm:$0xff] }
  0x99   : > { %893 = vrot.lane.b32.xlu0 %v2809_v0, %s2739_s7  ;;  %v2639_v29 = vpack.c.bf16 %v1738_v18, %v1737_v63  ;;  %v1740_v63 = vld [vmem:[%s4517_s2 + $0x38] sm:$0xff] }
  0x9a   : > { %v3376_v33 = vpop.permute.xlu1 %719  ;;  %2632 = vmatprep.subr.bf16.mxu0 %v2631_v44  ;;  %2647 = vmatprep.subr.bf16.mxu1 %v2631_v44 }
  0x9b   : > { %v3378_v45 = vpop.permute.xlu0 %717  ;;  %2634 = vmatpush3.bf16.msra.mxu0 %v2631_v44  ;;  %2652 = vmatpush3.bf16.msra.mxu1 %v2631_v44 }
  0x9c   : > { %899 = vrot.lane.b32.xlu1 %v2832_v11, %s2739_s7  ;;  %2636 = vmatprep.subr.bf16.mxu0 %v2635_v61 }
  0x9d   : > { %897 = vrot.lane.b32.xlu0 %v2842_v15, %s2739_s7  ;;  %2648 = vmatprep.subr.bf16.mxu1 %v2635_v61 }
  0x9e   : > { %v3384_v9 = vpop.permute.xlu1 %723 }
  0x9f   : > { %v3386_v20 = vpop.permute.xlu0 %721  ;;  %2638 = vmatpush3.bf16.msra.mxu0 %v2635_v61  ;;  %2653 = vmatpush3.bf16.msra.mxu1 %v2635_v61 }
  0xa0   : > { %903 = vrot.lane.b32.xlu1 %v2856_v22, %s2739_s7  ;;  %2640 = vmatprep.subr.bf16.mxu0 %v2639_v29 }
  0xa1   : > { %901 = vrot.lane.b32.xlu0 %v2862_v24, %s2739_s7  ;;  %2649 = vmatprep.subr.bf16.mxu1 %v2639_v29 }
  0xa2   : > { %v3392_v0 = vpop.permute.xlu1 %727 }
  0xa3   : > { %v3394_v1 = vpop.permute.xlu0 %725  ;;  %2642 = vmatpush3.bf16.msra.mxu0 %v2639_v29  ;;  %2654 = vmatpush3.bf16.msra.mxu1 %v2639_v29 }
  0xa4   : > { %907 = vrot.lane.b32.xlu1 %v2877_v30, %s2739_s7 }
  0xa5   : > { %905 = vrot.lane.b32.xlu0 %v2883_v32, %s2739_s7 }
  0xa6   : > { %v3400_v41 = vpop.permute.xlu1 %731 }
  0xa7   : > { %v3402_v10 = vpop.permute.xlu0 %729 }
  0xa8   : > { %911 = vrot.lane.b32.xlu1 %v2899_v38, %s2739_s7 }
  0xa9   : > { %909 = vrot.lane.b32.xlu0 %v2905_v40, %s2739_s7 }
  0xaa   : > { %v3414_v21 = vpop.permute.xlu1 %735 }
  0xab   : > { %v3416_v7 = vpop.permute.xlu0 %733 }
  0xac   : > { %915 = vrot.lane.b32.xlu1 %v2921_v46, %s2739_s7 }
  0xad   : > { %913 = vrot.lane.b32.xlu0 %v2927_v48, %s2739_s7 }
  0xae   : > { %v3428_v49 = vpop.permute.xlu1 %739 }
  0xaf   : > { %v3430_v58 = vpop.permute.xlu0 %737 }
  0xb0   : > { %989 = vrot.lane.b32.xlu1 %v2835_v12, %s2740_s16  ;;  %v1739_v12 = vld [vmem:[%s4517_s2 + $0x30] sm:$0xff] }
  0xb1   : > { %917 = vrot.lane.b32.xlu0 %v2949_v56, %s2739_s7  ;;  %v2643_v61 = vpack.c.bf16 %v1740_v63, %v1739_v12 }
  0xb2   : > { %v3442_v44 = vpop.permute.xlu1 %743 }
  0xb3   : > { %v3444_v35 = vpop.permute.xlu0 %741  ;;  %2644 = vmatprep.subr.bf16.mxu0 %v2643_v61  ;;  %2650 = vmatprep.subr.bf16.mxu1 %v2643_v61 }
  0xb4   : > { %1085 = vrot.lane.b32.xlu1 %v3170_v51, %s2741_s26  ;;  %2646 = vmatpush3.bf16.msra.mxu0 %v2643_v61 }
  0xb5   : > { %991 = vrot.lane.b32.xlu0 %v2849_v17, %s2740_s16  ;;  %v1741_v17 = vld [vmem:[%s4517_s2 + $0x40] sm:$0xff]  ;;  %2655 = vmatpush3.bf16.msra.mxu1 %v2643_v61 }
  0xb6   : > { %v3456_v18 = vpop.permute.xlu1 %747  ;;  %2581 = vmatprep.subr.mxu0 %v1741_v17  ;;  %2651 = vmatprep.subr.mxu1 %v1741_v17 }
  0xb7   : > { %v3458_v4 = vpop.permute.xlu0 %745 }
  0xb8   : > { %1181 = vrot.lane.b32.xlu1 %v2842_v15, %s2742_s9  ;;  %2582 = vmatpush3.msra.mxu0 %v1741_v17 }
  0xb9   : > { %1087 = vrot.lane.b32.xlu0 %v3165_v2, %s2741_s26  ;;  %2656 = vmatpush3.msra.mxu1 %v1741_v17 }
  0xba   : > { %v3467_v51 = vpop.permute.xlu1 %751 }
  0xbb   : > { %v3469_v29 = vpop.permute.xlu0 %749 }
  0xbc   : > { %1277 = vrot.lane.b32.xlu1 %v2873_v28, %s2743_s12 }
  0xbd   : > { %1183 = vrot.lane.b32.xlu0 %v2832_v11, %s2742_s9 }
  0xbe   : > { %v3475_v15 = vpop.permute.xlu1 %755 }
  0xbf   : > { %v3477_v2 = vpop.permute.xlu0 %753 }
  0xc0   : > { %1279 = vrot.lane.b32.xlu1 %v2868_v25, %s2743_s12 }
  0xc1   : > { %993 = vrot.lane.b32.xlu0 %v2873_v28, %s2740_s16 }
  0xc2   : > { %v3483_v12 = vpop.permute.xlu1 %759 }
  0xc3   : > { %v3485_v63 = vpop.permute.xlu0 %757 }
  0xc4   : > { %995 = vrot.lane.b32.xlu1 %v2868_v25, %s2740_s16 }
  0xc5   : > { %1373 = vrot.lane.b32.xlu0 %v3183_v14, %s2744_s13 }
  0xc6   : > { %v3491_v11 = vpop.permute.xlu1 %763 }
  0xc7   : > { %v3493_v61 = vpop.permute.xlu0 %761 }
  0xc8   : > { %1375 = vrot.lane.b32.xlu1 %v3178_v43, %s2744_s13 }
  0xc9   : > { %1089 = vrot.lane.b32.xlu0 %v3183_v14, %s2741_s26 }
  0xca   : > { %v3499_v28 = vpop.permute.xlu1 %799 }
  0xcb   : > { %4662 = vst [vmem:[#allocation54_spill] sm:$0xff] %v3499_v28  ;;  %v3501_v17 = vpop.permute.xlu0 %797 }
  0xcc   : > { %4663 = vst [vmem:[#allocation55_spill] sm:$0xff] %v3501_v17  ;;  %1185 = vrot.lane.b32.xlu1 %v2862_v24, %s2742_s9  ;;  %v4666_v17 = vld [vmem:[#allocation2_spill] sm:$0xff] }
  0xcd   : > { %1091 = vrot.lane.b32.xlu0 %v3178_v43, %s2741_s26 }
  0xce   : > { %v3507_v25 = vpop.permute.xlu1 %803 }
  0xcf   : > { %v3509_v55 = vpop.permute.xlu0 %801 }
  0xd0   : > { %1281 = vrot.lane.b32.xlu1 %v2895_v36, %s2743_s12 }
  0xd1   : > { %1187 = vrot.lane.b32.xlu0 %v2856_v22, %s2742_s9  ;;  %v1479_v22 = vsel %vm1469_vm2, %v2877_v30, %v3376_v33  ;;  %v1481_v33 = vsel %vm1469_vm2, %v2899_v38, %v3384_v9 }
  0xd2   : > { %v3515_v14 = vpop.permute.xlu1 %807 }
  0xd3   : > { %4664 = vst [vmem:[#allocation56_spill] sm:$0xff] %v3515_v14  ;;  %v3517_v28 = vpop.permute.xlu0 %805 }
  0xd4   : > { %4665 = vst [vmem:[#allocation57_spill] sm:$0xff] %v3517_v28  ;;  %1283 = vrot.lane.b32.xlu1 %v4666_v17, %s2743_s12 }
  0xd5   : > { %997 = vrot.lane.b32.xlu0 %v2895_v36, %s2740_s16  ;;  %v1478_v36 = vsel %vm1469_vm2, %v2883_v32, %v3378_v45  ;;  %v1480_v45 = vsel %vm1469_vm2, %v2905_v40, %v3386_v20  ;;  %v1482_v20 = vsel %vm1469_vm2, %v2927_v48, %v3394_v1  ;;  %v1484_v1 = vsel %vm1469_vm2, %v2949_v56, %v3402_v10 }
  0xd6   : > { %v3523_v24 = vpop.permute.xlu1 %811  ;;  %v1486_v10 = vsel %vm1469_vm2, %v2971_v3, %v3416_v7  ;;  %v1488_v7 = vsel %vm1469_vm2, %v2993_v19, %v3430_v58  ;;  %v1490_v58 = vsel %vm1469_vm2, %v3015_v37, %v3444_v35  ;;  %v1492_v37 = vsel %vm1469_vm2, %v3037_v59, %v3458_v4 }
  0xd7   : > { %4667 = vst [vmem:[#allocation2_spill] sm:$0xff] %v3523_v24  ;;  %v3525_v43 = vpop.permute.xlu0 %809  ;;  %v1494_v59 = vsel %vm1469_vm2, %v3059_v42, %v3469_v29  ;;  %v1496_v42 = vsel %vm1469_vm2, %v3081_v13, %v3477_v2  ;;  %v1498_v13 = vsel %vm1469_vm2, %v3103_v50, %v3485_v63  ;;  %v1500_v50 = vsel %vm1469_vm2, %v3125_v8, %v3493_v61 }
  0xd8   : > { %4668 = vst [vmem:[#allocation58_spill] sm:$0xff] %v3525_v43  ;;  %999 = vrot.lane.b32.xlu1 %v4666_v17, %s2740_s16 }
  0xd9   : > { %1377 = vrot.lane.b32.xlu0 %v3196_v23, %s2744_s13 }
  0xda   : > { %v816_v14 = vpop.permute.xlu1 %815 }
  0xdb   : > { %v3538_v24 = vsel %vm1502_vm3, %v1479_v22, %v816_v14  ;;  %v814_v43 = vpop.permute.xlu0 %813 }
  0xdc   : > { %v3541_v17 = vsel %vm1502_vm3, %v1478_v36, %v814_v43  ;;  %1379 = vrot.lane.b32.xlu1 %v3191_v5, %s2744_s13 }
  0xdd   : > { %1093 = vrot.lane.b32.xlu0 %v3196_v23, %s2741_s26  ;;  %v1483_v23 = vsel %vm1469_vm2, %v2921_v46, %v3392_v0 }
  0xde   : > { %v820_v28 = vpop.permute.xlu1 %819 }
  0xdf   : > { %v3554_v14 = vsel %vm1502_vm3, %v1481_v33, %v820_v28  ;;  %v818_v43 = vpop.permute.xlu0 %817 }
  0xe0   : > { %v3557_v22 = vsel %vm1502_vm3, %v1480_v45, %v818_v43  ;;  %1189 = vrot.lane.b32.xlu1 %v2883_v32, %s2742_s9  ;;  %v4669_v32 = vld [vmem:[#allocation4_spill] sm:$0xff] }
  0xe1   : > { %1095 = vrot.lane.b32.xlu0 %v3191_v5, %s2741_s26  ;;  %v1485_v5 = vsel %vm1469_vm2, %v2943_v54, %v3400_v41 }
  0xe2   : > { %v824_v9 = vpop.permute.xlu1 %823 }
  0xe3   : > { %v3570_v28 = vsel %vm1502_vm3, %v1483_v23, %v824_v9  ;;  %v822_v36 = vpop.permute.xlu0 %821  ;;  %v4670_v9 = vld [vmem:[#allocation3_spill] sm:$0xff] }
  0xe4   : > { %v3573_v33 = vsel %vm1502_vm3, %v1482_v20, %v822_v36  ;;  %1285 = vrot.lane.b32.xlu1 %v4669_v32, %s2743_s12 }
  0xe5   : > { %1191 = vrot.lane.b32.xlu0 %v2877_v30, %s2742_s9  ;;  %v1487_v30 = vsel %vm1469_vm2, %v2965_v62, %v3414_v21  ;;  %v1489_v21 = vsel %vm1469_vm2, %v2987_v16, %v3428_v49  ;;  %v1491_v16 = vsel %vm1469_vm2, %v3009_v34, %v3442_v44  ;;  %v1493_v34 = vsel %vm1469_vm2, %v3031_v53, %v3456_v18 }
  0xe6   : > { %v828_v0 = vpop.permute.xlu1 %827  ;;  %v1495_v53 = vsel %vm1469_vm2, %v3053_v26, %v3467_v51 }
  0xe7   : > { %v3586_v45 = vsel %vm1502_vm3, %v1485_v5, %v828_v0  ;;  %v826_v43 = vpop.permute.xlu0 %825 }
  0xe8   : > { %v3589_v23 = vsel %vm1502_vm3, %v1484_v1, %v826_v43  ;;  %1287 = vrot.lane.b32.xlu1 %v4670_v9, %s2743_s12 }
  0xe9   : > { %1001 = vrot.lane.b32.xlu0 %v4669_v32, %s2740_s16 }
  0xea   : > { %v832_v41 = vpop.permute.xlu1 %831 }
  0xeb   : > { %v3602_v20 = vsel %vm1502_vm3, %v1487_v30, %v832_v41  ;;  %v830_v36 = vpop.permute.xlu0 %829 }
  0xec   : > { %v3605_v5 = vsel %vm1502_vm3, %v1486_v10, %v830_v36  ;;  %1003 = vrot.lane.b32.xlu1 %v4670_v9, %s2740_s16 }
  0xed   : > { %1381 = vrot.lane.b32.xlu0 %v3209_v31, %s2744_s13 }
  0xee   : > { %v836_v32 = vpop.permute.xlu1 %835 }
  0xef   : > { %v3618_v0 = vsel %vm1502_vm3, %v1489_v21, %v836_v32  ;;  %v834_v1 = vpop.permute.xlu0 %833  ;;  %v4672_v21 = vld [vmem:[#allocation5_spill] sm:$0xff] }
  0xf0   : > { %v3621_v43 = vsel %vm1502_vm3, %v1488_v7, %v834_v1  ;;  %1383 = vrot.lane.b32.xlu1 %v3204_v60, %s2744_s13 }
  0xf1   : > { %1097 = vrot.lane.b32.xlu0 %v3209_v31, %s2741_s26 }
  0xf2   : > { %v840_v49 = vpop.permute.xlu1 %839 }
  0xf3   : > { %v3634_v9 = vsel %vm1502_vm3, %v1491_v16, %v840_v49  ;;  %v838_v30 = vpop.permute.xlu0 %837 }
  0xf4   : > { %v3637_v41 = vsel %vm1502_vm3, %v1490_v58, %v838_v30  ;;  %1193 = vrot.lane.b32.xlu1 %v2905_v40, %s2742_s9  ;;  %v4671_v40 = vld [vmem:[#allocation6_spill] sm:$0xff]  ;;  %v4674_v58 = vld [vmem:[#allocation7_spill] sm:$0xff] }
  0xf5   : > { %1099 = vrot.lane.b32.xlu0 %v3204_v60, %s2741_s26 }
  0xf6   : > { %v844_v31 = vpop.permute.xlu1 %843 }
  0xf7   : > { %v3650_v35 = vsel %vm1502_vm3, %v1493_v34, %v844_v31  ;;  %v842_v44 = vpop.permute.xlu0 %841  ;;  %v4675_v34 = vld [vmem:[#allocation27_spill] sm:$0xff] }
  0xf8   : > { %v3653_v10 = vsel %vm1502_vm3, %v1492_v37, %v842_v44  ;;  %1289 = vrot.lane.b32.xlu1 %v4671_v40, %s2743_s12 }
  0xf9   : > { %1195 = vrot.lane.b32.xlu0 %v2899_v38, %s2742_s9  ;;  %v1497_v38 = vsel %vm1469_vm2, %v3075_v27, %v3475_v15  ;;  %v1499_v27 = vsel %vm1469_vm2, %v3097_v57, %v3483_v12  ;;  %v1501_v57 = vsel %vm1469_vm2, %v3119_v52, %v3491_v11  ;;  %v4673_v11 = vld [vmem:[#allocation8_spill] sm:$0xff] }
  0xfa   : > { %v848_v60 = vpop.permute.xlu1 %847 }
  0xfb   : > { %v3666_v4 = vsel %vm1502_vm3, %v1495_v53, %v848_v60  ;;  %v846_v18 = vpop.permute.xlu0 %845  ;;  %v4676_v53 = vld [vmem:[#allocation10_spill] sm:$0xff] }
  0xfc   : > { %v3669_v36 = vsel %vm1502_vm3, %v1494_v59, %v846_v18  ;;  %1291 = vrot.lane.b32.xlu1 %v4672_v21, %s2743_s12  ;;  %v4677_v18 = vld [vmem:[#allocation29_spill] sm:$0xff] }
  0xfd   : > { %1005 = vrot.lane.b32.xlu0 %v4671_v40, %s2740_s16 }
  0xfe   : > { %v852_v26 = vpop.permute.xlu1 %851 }
  0xff   : > { %v3682_v51 = vsel %vm1502_vm3, %v1497_v38, %v852_v26  ;;  %v850_v29 = vpop.permute.xlu0 %849 }
 0x100   : > { %v3685_v32 = vsel %vm1502_vm3, %v1496_v42, %v850_v29  ;;  %1007 = vrot.lane.b32.xlu1 %v4672_v21, %s2740_s16  ;;  %v4678_v21 = vld [vmem:[#allocation9_spill] sm:$0xff] }
 0x101   : > { %1385 = vrot.lane.b32.xlu0 %v3222_v39, %s2744_s13 }
 0x102   : > { %v856_v15 = vpop.permute.xlu1 %855 }
 0x103   : > { %v3698_v2 = vsel %vm1502_vm3, %v1499_v27, %v856_v15  ;;  %v854_v7 = vpop.permute.xlu0 %853  ;;  %v2692_v27 = vld [vmem:[%s2806_s28] sm:$0xff]  ;;  %v4680_v15 = vld [vmem:[#allocation43_spill] sm:$0xff] }
 0x104   : > { %v3701_v1 = vsel %vm1502_vm3, %v1498_v13, %v854_v7  ;;  %1387 = vrot.lane.b32.xlu1 %v3217_v6, %s2744_s13  ;;  %v1470_v13 = vsel %vm1469_vm2, %v2692_v27, %v4680_v15  ;;  %v4681_v7 = vld [vmem:[#allocation55_spill] sm:$0xff] }
 0x105   : > { %1101 = vrot.lane.b32.xlu0 %v3222_v39, %s2741_s26 }
 0x106   : > { %v860_v12 = vpop.permute.xlu1 %859 }
 0x107   : > { %v3714_v63 = vsel %vm1502_vm3, %v1501_v57, %v860_v12  ;;  %v858_v16 = vpop.permute.xlu0 %857  ;;  %v1503_v57 = vsel %vm1502_vm3, %v1470_v13, %v4681_v7 }
 0x108   : > { %v3717_v49 = vsel %vm1502_vm3, %v1500_v50, %v858_v16  ;;  %1197 = vrot.lane.b32.xlu1 %v2927_v48, %s2742_s9 }
 0x109   : > { %1103 = vrot.lane.b32.xlu0 %v3217_v6, %s2741_s26 }
 0x10a   : > { %v896_v39 = vpop.permute.xlu1 %895 }
 0x10b   : > { %v894_v52 = vpop.permute.xlu0 %893 }
 0x10c   : > { %1293 = vrot.lane.b32.xlu1 %v4673_v11, %s2743_s12  ;;  %v1536_v50 = vsel %vm1535_vm4, %v1503_v57, %v894_v52 }
 0x10d   : > { %1199 = vrot.lane.b32.xlu0 %v2921_v46, %s2742_s9 }
 0x10e   : > { %v3727_v8 = vpop.permute.xlu1 %899 }
 0x10f   : > { %v3729_v61 = vpop.permute.xlu0 %897 }
 0x110   : > { %1295 = vrot.lane.b32.xlu1 %v4674_v58, %s2743_s12 }
 0x111   : > { %1009 = vrot.lane.b32.xlu0 %v4673_v11, %s2740_s16  ;;  %v2693_v11 = vld [vmem:[%s2806_s28 + $0x8] sm:$0xff] }
 0x112   : > { %v3735_v48 = vpop.permute.xlu1 %903 }
 0x113   : > { %v3737_v6 = vpop.permute.xlu0 %901 }
 0x114   : > { %1011 = vrot.lane.b32.xlu1 %v4674_v58, %s2740_s16  ;;  %v4682_v58 = vld [vmem:[#allocation47_spill] sm:$0xff] }
 0x115   : > { %1389 = vrot.lane.b32.xlu0 %v3235_v47, %s2744_s13 }
 0x116   : > { %v3743_v46 = vpop.permute.xlu1 %907 }
 0x117   : > { %v3745_v30 = vpop.permute.xlu0 %905 }
 0x118   : > { %1391 = vrot.lane.b32.xlu1 %v4675_v34, %s2744_s13 }
 0x119   : > { %1105 = vrot.lane.b32.xlu0 %v3235_v47, %s2741_s26 }
 0x11a   : > { %v3751_v31 = vpop.permute.xlu1 %911 }
 0x11b   : > { %v3753_v37 = vpop.permute.xlu0 %909 }
 0x11c   : > { %1201 = vrot.lane.b32.xlu1 %v2949_v56, %s2742_s9 }
 0x11d   : > { %1107 = vrot.lane.b32.xlu0 %v4675_v34, %s2741_s26  ;;  %v1471_v34 = vsel %vm1469_vm2, %v2693_v11, %v4682_v58  ;;  %v4685_v11 = vld [vmem:[#allocation31_spill] sm:$0xff] }
 0x11e   : > { %v3759_v44 = vpop.permute.xlu1 %915 }
 0x11f   : > { %v3761_v40 = vpop.permute.xlu0 %913 }
 0x120   : > { %1297 = vrot.lane.b32.xlu1 %v4676_v53, %s2743_s12 }
 0x121   : > { %1203 = vrot.lane.b32.xlu0 %v2943_v54, %s2742_s9 }
 0x122   : > { %v990_v47 = vpop.permute.xlu1 %989 }
 0x123   : > { %v3767_v60 = vpop.permute.xlu0 %917 }
 0x124   : > { %1013 = vrot.lane.b32.xlu1 %v4676_v53, %s2740_s16  ;;  %v1569_v53 = vsel %vm1568_vm5, %v1536_v50, %v990_v47  ;;  %v4684_v50 = vld [vmem:[#allocation12_spill] sm:$0xff] }
 0x125   : > { %919 = vrot.lane.b32.xlu0 %v2943_v54, %s2739_s7  ;;  %v4679_v54 = vld [vmem:[#allocation28_spill] sm:$0xff] }
 0x126   : > { %v1086_v56 = vpop.permute.xlu1 %1085 }
 0x127   : > { %v992_v59 = vpop.permute.xlu0 %991 }
 0x128   : > { %1393 = vrot.lane.b32.xlu1 %v4677_v18, %s2744_s13 }
 0x129   : > { %1299 = vrot.lane.b32.xlu0 %v4678_v21, %s2743_s12 }
 0x12a   : > { %v1182_v38 = vpop.permute.xlu1 %1181 }
 0x12b   : > { %v1088_v26 = vpop.permute.xlu0 %1087 }
 0x12c   : > { %1109 = vrot.lane.b32.xlu1 %v4677_v18, %s2741_s26  ;;  %v4683_v18 = vld [vmem:[#allocation54_spill] sm:$0xff] }
 0x12d   : > { %1015 = vrot.lane.b32.xlu0 %v4678_v21, %s2740_s16  ;;  %v1504_v21 = vsel %vm1502_vm3, %v1471_v34, %v4683_v18  ;;  %v4687_v18 = vld [vmem:[#allocation41_spill] sm:$0xff] }
 0x12e   : > { %v1278_v42 = vpop.permute.xlu1 %1277  ;;  %v1537_v52 = vsel %vm1535_vm4, %v1504_v21, %v896_v39 }
 0x12f   : > { %v1184_v29 = vpop.permute.xlu0 %1183  ;;  %v1570_v47 = vsel %vm1568_vm5, %v1537_v52, %v992_v59 }
 0x130   : > { %1111 = vrot.lane.b32.xlu1 %v4679_v54, %s2741_s26  ;;  %v1603_v57 = vsel %vm1601_vm6, %v1570_v47, %v1088_v26  ;;  %v2695_v47 = vld [vmem:[%s2806_s28 + $0x20] sm:$0xff] }
 0x131   : > { %1395 = vrot.lane.b32.xlu0 %v4679_v54, %s2744_s13  ;;  %v1602_v54 = vsel %vm1601_vm6, %v1569_v53, %v1086_v56  ;;  %v2694_v53 = vld [vmem:[%s2806_s28 + $0x18] sm:$0xff] }
 0x132   : > { %v1280_v12 = vpop.permute.xlu1 %1279  ;;  %v1635_v27 = vsel %vm1634_vm7, %v1602_v54, %v1182_v38  ;;  %v1472_v21 = vsel %vm1469_vm2, %v2694_v53, %v4687_v18 }
 0x133   : > { %v994_v16 = vpop.permute.xlu0 %993  ;;  %v1668_v13 = vsel %vm1667_vm8, %v1635_v27, %v1278_v42 }
 0x134   : > { %921 = vrot.lane.b32.xlu1 %v2971_v3, %s2739_s7 }
 0x135   : > { %1205 = vrot.lane.b32.xlu0 %v2971_v3, %s2742_s9  ;;  %v1636_v3 = vsel %vm1634_vm7, %v1603_v57, %v1184_v29 }
 0x136   : > { %v996_v15 = vpop.permute.xlu1 %995  ;;  %v1669_v39 = vsel %vm1667_vm8, %v1636_v3, %v1280_v12  ;;  %v4686_v12 = vld [vmem:[#allocation11_spill] sm:$0xff] }
 0x137   : > { %v1374_v7 = vpop.permute.xlu0 %1373 }
 0x138   : > { %1301 = vrot.lane.b32.xlu1 %v4684_v50, %s2743_s12  ;;  %v1701_v56 = vsel %vm1700_vm9, %v1668_v13, %v1374_v7  ;;  %v4688_v13 = vld [vmem:[#allocation45_spill] sm:$0xff] }
 0x139   : > { %1207 = vrot.lane.b32.xlu0 %v2965_v62, %s2742_s9  ;;  %2583 = vmatprep.mubr.msk.f32.mxu0 %vm1749_vm10, %v1701_v56  ;;  %v1473_v7 = vsel %vm1469_vm2, %v2695_v47, %v4688_v13  ;;  %v4693_v47 = vld [vmem:[#allocation13_spill] sm:$0xff] }
 0x13a   : > { %v1376_v59 = vpop.permute.xlu1 %1375  ;;  %v1506_v56 = vsel %vm1502_vm3, %v1473_v7, %v3507_v25  ;;  %v4694_v13 = vld [vmem:[#allocation57_spill] sm:$0xff] }
 0x13b   : > { %v1702_v38 = vsel %vm1700_vm9, %v1669_v39, %v1376_v59  ;;  %v1090_v42 = vpop.permute.xlu0 %1089 }
 0x13c   : > { %1017 = vrot.lane.b32.xlu1 %v4684_v50, %s2740_s16  ;;  %2584 = vmatmul.mubr.msk.f32.vlgmr.msra.gmra.mrb[0].mxu0 %vm1749_vm10, %v1702_v38  ;;  %v4689_v50 = vld [vmem:[#allocation30_spill] sm:$0xff] }
 0x13d   : > { %923 = vrot.lane.b32.xlu0 %v2965_v62, %s2739_s7  ;;  %v1505_v62 = vsel %vm1502_vm3, %v1472_v21, %v3509_v55  ;;  %v1539_v55 = vsel %vm1535_vm4, %v1506_v56, %v3727_v8  ;;  %v4691_v21 = vld [vmem:[#allocation33_spill] sm:$0xff] }
 0x13e   : > { %v1186_v26 = vpop.permute.xlu1 %1185  ;;  %v1538_v52 = vsel %vm1535_vm4, %v1505_v62, %v3729_v61  ;;  %v2697_v62 = vld [vmem:[%s2806_s28 + $0x30] sm:$0xff] }
 0x13f   : > { %v1092_v29 = vpop.permute.xlu0 %1091  ;;  %v1571_v57 = vsel %vm1568_vm5, %v1538_v52, %v994_v16  ;;  %v1572_v16 = vsel %vm1568_vm5, %v1539_v55, %v996_v15  ;;  %v4695_v55 = vld [vmem:[#allocation49_spill] sm:$0xff] }
 0x140   : > { %1397 = vrot.lane.b32.xlu1 %v4685_v11, %s2744_s13  ;;  %v1604_v3 = vsel %vm1601_vm6, %v1571_v57, %v1090_v42 }
 0x141   : > { %1303 = vrot.lane.b32.xlu0 %v4686_v12, %s2743_s12  ;;  %v1637_v61 = vsel %vm1634_vm7, %v1604_v3, %v1186_v26  ;;  %v2698_v3 = vld [vmem:[%s2806_s28 + $0x38] sm:$0xff] }
 0x142   : > { %v1282_v58 = vpop.permute.xlu1 %1281 }
 0x143   : > { %v1188_v34 = vpop.permute.xlu0 %1187  ;;  %v1670_v59 = vsel %vm1667_vm8, %v1637_v61, %v1282_v58  ;;  %v2696_v58 = vld [vmem:[%s2806_s28 + $0xe0] sm:$0xff]  ;;  %v1475_v61 = vsel %vm1469_vm2, %v2698_v3, %v4695_v55 }
 0x144   : > { %1113 = vrot.lane.b32.xlu1 %v4685_v11, %s2741_s26  ;;  %v1605_v11 = vsel %vm1601_vm6, %v1572_v16, %v1092_v29  ;;  %v4690_v29 = vld [vmem:[#allocation14_spill] sm:$0xff] }
 0x145   : > { %1019 = vrot.lane.b32.xlu0 %v4686_v12, %s2740_s16  ;;  %v1638_v42 = vsel %vm1634_vm7, %v1605_v11, %v1188_v34 }
 0x146   : > { %v1284_v54 = vpop.permute.xlu1 %1283 }
 0x147   : > { %v998_v27 = vpop.permute.xlu0 %997  ;;  %v1671_v8 = vsel %vm1667_vm8, %v1638_v42, %v1284_v54  ;;  %v4692_v54 = vld [vmem:[#allocation51_spill] sm:$0xff] }
 0x148   : > { %1115 = vrot.lane.b32.xlu1 %v4689_v50, %s2741_s26  ;;  %v1474_v52 = vsel %vm1469_vm2, %v2697_v62, %v4692_v54  ;;  %v4698_v62 = vld [vmem:[#allocation16_spill] sm:$0xff]  ;;  %v2700_v54 = vld [vmem:[%s2806_s28 + $0xf8] sm:$0xff] }
 0x149   : > { %1399 = vrot.lane.b32.xlu0 %v4689_v50, %s2744_s13  ;;  %v1507_v7 = vsel %vm1502_vm3, %v1474_v52, %v4694_v13  ;;  %v2701_v13 = vld [vmem:[%s2806_s28 + $0x48] sm:$0xff] }
 0x14a   : > { %v1000_v39 = vpop.permute.xlu1 %999  ;;  %v1540_v50 = vsel %vm1535_vm4, %v1507_v7, %v3737_v6  ;;  %v4699_v7 = vld [vmem:[#allocation53_spill] sm:$0xff] }
 0x14b   : > { %v1378_v38 = vpop.permute.xlu0 %1377  ;;  %v1573_v16 = vsel %vm1568_vm5, %v1540_v50, %v998_v27  ;;  %v4700_v50 = vld [vmem:[#allocation58_spill] sm:$0xff] }
 0x14c   : > { %v1703_v25 = vsel %vm1700_vm9, %v1670_v59, %v1378_v38  ;;  %925 = vrot.lane.b32.xlu1 %v2993_v19, %s2739_s7  ;;  %v4696_v59 = vld [vmem:[#allocation56_spill] sm:$0xff] }
 0x14d   : > { %1209 = vrot.lane.b32.xlu0 %v2993_v19, %s2742_s9  ;;  %2586 = vmatprep.mubr.msk.f32.mxu0 %vm1749_vm10, %v1703_v25  ;;  %v1508_v38 = vsel %vm1502_vm3, %v1475_v61, %v4696_v59  ;;  %v2702_v59 = vld [vmem:[%s2806_s28 + $0x50] sm:$0xff] }
 0x14e   : > { %v1380_v15 = vpop.permute.xlu1 %1379  ;;  %v1541_v6 = vsel %vm1535_vm4, %v1508_v38, %v3735_v48  ;;  %v4701_v38 = vld [vmem:[#allocation52_spill] sm:$0xff] }
 0x14f   : > { %v1704_v26 = vsel %vm1700_vm9, %v1671_v8, %v1380_v15  ;;  %v1094_v12 = vpop.permute.xlu0 %1093  ;;  %v1574_v27 = vsel %vm1568_vm5, %v1541_v6, %v1000_v39 }
 0x150   : > { %1305 = vrot.lane.b32.xlu1 %v4690_v29, %s2743_s12  ;;  %2587 = vmatmul.mubr.msk.f32.gmra.mrb[2].mxu0 %vm1749_vm10, %v1704_v26  ;;  %v1606_v11 = vsel %vm1601_vm6, %v1573_v16, %v1094_v12  ;;  %v4697_v12 = vld [vmem:[#allocation32_spill] sm:$0xff] }
 0x151   : > { %1211 = vrot.lane.b32.xlu0 %v2696_v58, %s2742_s9 }
 0x152   : > { %v1190_v34 = vpop.permute.xlu1 %1189 }
 0x153   : > { %v1096_v19 = vpop.permute.xlu0 %1095  ;;  %v1639_v25 = vsel %vm1634_vm7, %v1606_v11, %v1190_v34  ;;  %v1477_v11 = vsel %vm1469_vm2, %v2702_v59, %v4701_v38  ;;  %v1545_v38 = vsel %vm1535_vm4, %v3538_v24, %v3751_v31 }
 0x154   : > { %1021 = vrot.lane.b32.xlu1 %v4690_v29, %s2740_s16  ;;  %v1607_v26 = vsel %vm1601_vm6, %v1574_v27, %v1096_v19  ;;  %v4703_v27 = vld [vmem:[#allocation2_spill] sm:$0xff] }
 0x155   : > { %927 = vrot.lane.b32.xlu0 %v2696_v58, %s2739_s7 }
 0x156   : > { %v1286_v53 = vpop.permute.xlu1 %1285 }
 0x157   : > { %v1192_v18 = vpop.permute.xlu0 %1191  ;;  %v1672_v8 = vsel %vm1667_vm8, %v1639_v25, %v1286_v53  ;;  %v2699_v53 = vld [vmem:[%s2806_s28 + $0xf0] sm:$0xff]  ;;  %v4702_v25 = vld [vmem:[#allocation35_spill] sm:$0xff] }
 0x158   : > { %1401 = vrot.lane.b32.xlu1 %v4691_v21, %s2744_s13  ;;  %v1640_v58 = vsel %vm1634_vm7, %v1607_v26, %v1192_v18  ;;  %v4704_v26 = vld [vmem:[#allocation15_spill] sm:$0xff] }
 0x159   : > { %1307 = vrot.lane.b32.xlu0 %v4693_v47, %s2743_s12 }
 0x15a   : > { %v1288_v57 = vpop.permute.xlu1 %1287 }
 0x15b   : > { %v1002_v56 = vpop.permute.xlu0 %1001  ;;  %v1673_v48 = vsel %vm1667_vm8, %v1640_v58, %v1288_v57  ;;  %v1476_v57 = vsel %vm1469_vm2, %v2701_v13, %v4699_v7  ;;  %v4706_v7 = vld [vmem:[#allocation18_spill] sm:$0xff] }
 0x15c   : > { %1117 = vrot.lane.b32.xlu1 %v4691_v21, %s2741_s26  ;;  %v1509_v3 = vsel %vm1502_vm3, %v1476_v57, %v4700_v50  ;;  %v2704_v57 = vld [vmem:[%s2806_s28 + $0x110] sm:$0xff] }
 0x15d   : > { %1023 = vrot.lane.b32.xlu0 %v4693_v47, %s2740_s16  ;;  %v1542_v61 = vsel %vm1535_vm4, %v1509_v3, %v3745_v30  ;;  %v1544_v3 = vsel %vm1535_vm4, %v3541_v17, %v3753_v37 }
 0x15e   : > { %v1004_v42 = vpop.permute.xlu1 %1003  ;;  %v1575_v6 = vsel %vm1568_vm5, %v1542_v61, %v1002_v56 }
 0x15f   : > { %v1382_v15 = vpop.permute.xlu0 %1381 }
 0x160   : > { %v1705_v29 = vsel %vm1700_vm9, %v1672_v8, %v1382_v15  ;;  %1119 = vrot.lane.b32.xlu1 %v4697_v12, %s2741_s26  ;;  %v1510_v8 = vsel %vm1502_vm3, %v1477_v11, %v4703_v27 }
 0x161   : > { %1403 = vrot.lane.b32.xlu0 %v4697_v12, %s2744_s13  ;;  %2589 = vmatprep.mubr.msk.f32.mxu0 %vm1749_vm10, %v1705_v29  ;;  %v1543_v30 = vsel %vm1535_vm4, %v1510_v8, %v3743_v46  ;;  %v4707_v8 = vld [vmem:[#allocation37_spill] sm:$0xff] }
 0x162   : > { %v1384_v39 = vpop.permute.xlu1 %1383  ;;  %v1576_v58 = vsel %vm1568_vm5, %v1543_v30, %v1004_v42 }
 0x163   : > { %v1706_v34 = vsel %vm1700_vm9, %v1673_v48, %v1384_v39  ;;  %v1098_v19 = vpop.permute.xlu0 %1097 }
 0x164   : > { %929 = vrot.lane.b32.xlu1 %v2699_v53, %s2739_s7  ;;  %2590 = vmatmul.mubr.msk.f32.gmra.mrb[4].mxu0 %vm1749_vm10, %v1706_v34  ;;  %v1608_v15 = vsel %vm1601_vm6, %v1575_v6, %v1098_v19 }
 0x165   : > { %1213 = vrot.lane.b32.xlu0 %v2699_v53, %s2742_s9 }
 0x166   : > { %v1194_v18 = vpop.permute.xlu1 %1193 }
 0x167   : > { %v1100_v21 = vpop.permute.xlu0 %1099  ;;  %v1641_v29 = vsel %vm1634_vm7, %v1608_v15, %v1194_v18 }
 0x168   : > { %1309 = vrot.lane.b32.xlu1 %v4698_v62, %s2743_s12  ;;  %v1609_v39 = vsel %vm1601_vm6, %v1576_v58, %v1100_v21  ;;  %v4705_v21 = vld [vmem:[#allocation34_spill] sm:$0xff] }
 0x169   : > { %1215 = vrot.lane.b32.xlu0 %v2700_v54, %s2742_s9 }
 0x16a   : > { %v1290_v52 = vpop.permute.xlu1 %1289 }
 0x16b   : > { %v1196_v47 = vpop.permute.xlu0 %1195  ;;  %v1674_v56 = vsel %vm1667_vm8, %v1641_v29, %v1290_v52  ;;  %v2703_v52 = vld [vmem:[%s2806_s28 + $0x108] sm:$0xff] }
 0x16c   : > { %1025 = vrot.lane.b32.xlu1 %v4698_v62, %s2740_s16  ;;  %v1642_v19 = vsel %vm1634_vm7, %v1609_v39, %v1196_v47 }
 0x16d   : > { %931 = vrot.lane.b32.xlu0 %v2700_v54, %s2739_s7 }
 0x16e   : > { %v1292_v55 = vpop.permute.xlu1 %1291 }
 0x16f   : > { %v1006_v16 = vpop.permute.xlu0 %1005  ;;  %v1675_v46 = vsel %vm1667_vm8, %v1642_v19, %v1292_v55  ;;  %v1546_v19 = vsel %vm1535_vm4, %v3557_v22, %v3761_v40 }
 0x170   : > { %1405 = vrot.lane.b32.xlu1 %v4702_v25, %s2744_s13  ;;  %v1577_v61 = vsel %vm1568_vm5, %v1544_v3, %v1006_v16  ;;  %v4711_v3 = vld [vmem:[#allocation39_spill] sm:$0xff] }
 0x171   : > { %1311 = vrot.lane.b32.xlu0 %v4704_v26, %s2743_s12 }
 0x172   : > { %v1008_v12 = vpop.permute.xlu1 %1007 }
 0x173   : > { %v1386_v48 = vpop.permute.xlu0 %1385 }
 0x174   : > { %v1707_v34 = vsel %vm1700_vm9, %v1674_v56, %v1386_v48  ;;  %1121 = vrot.lane.b32.xlu1 %v4702_v25, %s2741_s26  ;;  %v1578_v25 = vsel %vm1568_vm5, %v1545_v38, %v1008_v12  ;;  %v4709_v56 = vld [vmem:[#allocation36_spill] sm:$0xff] }
 0x175   : > { %1027 = vrot.lane.b32.xlu0 %v4704_v26, %s2740_s16  ;;  %2592 = vmatprep.mubr.msk.f32.mxu0 %vm1749_vm10, %v1707_v34  ;;  %v4708_v26 = vld [vmem:[#allocation17_spill] sm:$0xff]  ;;  %v2705_v34 = vld [vmem:[%s2806_s28 + $0x120] sm:$0xff] }
 0x176   : > { %v1388_v42 = vpop.permute.xlu1 %1387 }
 0x177   : > { %v1708_v53 = vsel %vm1700_vm9, %v1675_v46, %v1388_v42  ;;  %v1102_v18 = vpop.permute.xlu0 %1101 }
 0x178   : > { %1123 = vrot.lane.b32.xlu1 %v4705_v21, %s2741_s26  ;;  %2593 = vmatmul.mubr.msk.f32.gmra.mrb[6].mxu0 %vm1749_vm10, %v1708_v53  ;;  %v1610_v59 = vsel %vm1601_vm6, %v1577_v61, %v1102_v18  ;;  %v4712_v61 = vld [vmem:[#allocation19_spill] sm:$0xff] }
 0x179   : > { %1407 = vrot.lane.b32.xlu0 %v4705_v21, %s2744_s13  ;;  %v4710_v21 = vld [vmem:[#allocation20_spill] sm:$0xff] }
 0x17a   : > { %v1198_v62 = vpop.permute.xlu1 %1197 }
 0x17b   : > { %v1104_v54 = vpop.permute.xlu0 %1103  ;;  %v1643_v11 = vsel %vm1634_vm7, %v1610_v59, %v1198_v62 }
 0x17c   : > { %933 = vrot.lane.b32.xlu1 %v2703_v52, %s2739_s7  ;;  %v1611_v16 = vsel %vm1601_vm6, %v1578_v25, %v1104_v54  ;;  %v2706_v54 = vld [vmem:[%s2806_s28 + $0x128] sm:$0xff] }
 0x17d   : > { %1217 = vrot.lane.b32.xlu0 %v2703_v52, %s2742_s9 }
 0x17e   : > { %v1294_v47 = vpop.permute.xlu1 %1293 }
 0x17f   : > { %v1200_v13 = vpop.permute.xlu0 %1199  ;;  %v1676_v17 = vsel %vm1667_vm8, %v1643_v11, %v1294_v47 }
 0x180   : > { %1313 = vrot.lane.b32.xlu1 %v4706_v7, %s2743_s12  ;;  %v1644_v15 = vsel %vm1634_vm7, %v1611_v16, %v1200_v13 }
 0x181   : > { %1219 = vrot.lane.b32.xlu0 %v2704_v57, %s2742_s9 }
 0x182   : > { %v1296_v50 = vpop.permute.xlu1 %1295 }
 0x183   : > { %v1010_v55 = vpop.permute.xlu0 %1009  ;;  %v1677_v24 = vsel %vm1667_vm8, %v1644_v15, %v1296_v50 }
 0x184   : > { %1029 = vrot.lane.b32.xlu1 %v4706_v7, %s2740_s16  ;;  %v1579_v42 = vsel %vm1568_vm5, %v1546_v19, %v1010_v55  ;;  %v1547_v7 = vsel %vm1535_vm4, %v3554_v14, %v3759_v44 }
 0x185   : > { %935 = vrot.lane.b32.xlu0 %v2704_v57, %s2739_s7 }
 0x186   : > { %v1012_v6 = vpop.permute.xlu1 %1011 }
 0x187   : > { %v1390_v37 = vpop.permute.xlu0 %1389  ;;  %v1580_v50 = vsel %vm1568_vm5, %v1547_v7, %v1012_v6  ;;  %v2709_v7 = vld [vmem:[%s2806_s28 + $0x150] sm:$0xff] }
 0x188   : > { %v1709_v27 = vsel %vm1700_vm9, %v1676_v17, %v1390_v37  ;;  %1409 = vrot.lane.b32.xlu1 %v4707_v8, %s2744_s13  ;;  %v4713_v17 = vld [vmem:[#allocation38_spill] sm:$0xff] }
 0x189   : > { %1315 = vrot.lane.b32.xlu0 %v4708_v26, %s2743_s12  ;;  %2595 = vmatprep.mubr.msk.f32.mxu0 %vm1749_vm10, %v1709_v27  ;;  %v2707_v27 = vld [vmem:[%s2806_s28 + $0x138] sm:$0xff] }
 0x18a   : > { %v1392_v31 = vpop.permute.xlu1 %1391 }
 0x18b   : > { %v1710_v30 = vsel %vm1700_vm9, %v1677_v24, %v1392_v31  ;;  %v1106_v29 = vpop.permute.xlu0 %1105 }
 0x18c   : > { %1125 = vrot.lane.b32.xlu1 %v4707_v8, %s2741_s26  ;;  %2596 = vmatmul.mubr.msk.f32.gmra.mrb[8].mxu0 %vm1749_vm10, %v1710_v30  ;;  %v1612_v18 = vsel %vm1601_vm6, %v1579_v42, %v1106_v29  ;;  %v1548_v8 = vsel %vm1535_vm4, %v3573_v33, %v3767_v60  ;;  %v4714_v30 = vld [vmem:[#allocation22_spill] sm:$0xff] }
 0x18d   : > { %1031 = vrot.lane.b32.xlu0 %v4708_v26, %s2740_s16 }
 0x18e   : > { %v1202_v12 = vpop.permute.xlu1 %1201 }
 0x18f   : > { %v1108_v58 = vpop.permute.xlu0 %1107  ;;  %v1645_v62 = vsel %vm1634_vm7, %v1612_v18, %v1202_v12  ;;  %v2708_v12 = vld [vmem:[%s2806_s28 + $0x140] sm:$0xff]  ;;  %v4716_v18 = vld [vmem:[#allocation21_spill] sm:$0xff] }
 0x190   : > { %1127 = vrot.lane.b32.xlu1 %v4709_v56, %s2741_s26  ;;  %v1613_v55 = vsel %vm1601_vm6, %v1580_v50, %v1108_v58 }
 0x191   : > { %1411 = vrot.lane.b32.xlu0 %v4709_v56, %s2744_s13 }
 0x192   : > { %v1298_v48 = vpop.permute.xlu1 %1297 }
 0x193   : > { %v1204_v39 = vpop.permute.xlu0 %1203  ;;  %v1678_v52 = vsel %vm1667_vm8, %v1645_v62, %v1298_v48 }
 0x194   : > { %937 = vrot.lane.b32.xlu1 %v2705_v34, %s2739_s7  ;;  %v1646_v59 = vsel %vm1634_vm7, %v1613_v55, %v1204_v39 }
 0x195   : > { %1221 = vrot.lane.b32.xlu0 %v2705_v34, %s2742_s9 }
 0x196   : > { %v1014_v46 = vpop.permute.xlu1 %1013 }
 0x197   : > { %v920_v53 = vpop.permute.xlu0 %919  ;;  %v1581_v26 = vsel %vm1568_vm5, %v1548_v8, %v1014_v46  ;;  %v4715_v46 = vld [vmem:[#allocation42_spill] sm:$0xff] }
 0x198   : > { %1317 = vrot.lane.b32.xlu1 %v4710_v21, %s2743_s12  ;;  %v1549_v39 = vsel %vm1535_vm4, %v3570_v28, %v920_v53 }
 0x199   : > { %1223 = vrot.lane.b32.xlu0 %v2706_v54, %s2742_s9 }
 0x19a   : > { %v1394_v47 = vpop.permute.xlu1 %1393 }
 0x19b   : > { %v1711_v13 = vsel %vm1700_vm9, %v1678_v52, %v1394_v47  ;;  %v1300_v22 = vpop.permute.xlu0 %1299 }
 0x19c   : > { %1033 = vrot.lane.b32.xlu1 %v4710_v21, %s2740_s16  ;;  %2598 = vmatprep.mubr.msk.f32.mxu0 %vm1749_vm10, %v1711_v13  ;;  %v1679_v11 = vsel %vm1667_vm8, %v1646_v59, %v1300_v22  ;;  %v4717_v13 = vld [vmem:[#allocation40_spill] sm:$0xff] }
 0x19d   : > { %939 = vrot.lane.b32.xlu0 %v2706_v54, %s2739_s7  ;;  %v4718_v59 = vld [vmem:[#allocation24_spill] sm:$0xff] }
 0x19e   : > { %v1110_v40 = vpop.permute.xlu1 %1109 }
 0x19f   : > { %v1016_v57 = vpop.permute.xlu0 %1015  ;;  %v1614_v31 = vsel %vm1601_vm6, %v1581_v26, %v1110_v40 }
 0x1a0   : > { %1413 = vrot.lane.b32.xlu1 %v4711_v3, %s2744_s13  ;;  %v1582_v19 = vsel %vm1568_vm5, %v1549_v39, %v1016_v57 }
 0x1a1   : > { %1319 = vrot.lane.b32.xlu0 %v4712_v61, %s2743_s12 }
 0x1a2   : > { %v1112_v38 = vpop.permute.xlu1 %1111 }
 0x1a3   : > { %v1396_v25 = vpop.permute.xlu0 %1395  ;;  %v1615_v42 = vsel %vm1601_vm6, %v1582_v19, %v1112_v38 }
 0x1a4   : > { %v1712_v14 = vsel %vm1700_vm9, %v1679_v11, %v1396_v25  ;;  %1129 = vrot.lane.b32.xlu1 %v4711_v3, %s2741_s26  ;;  %v2710_v11 = vld [vmem:[%s2806_s28 + $0x158] sm:$0xff] }
 0x1a5   : > { %1035 = vrot.lane.b32.xlu0 %v4712_v61, %s2740_s16  ;;  %2599 = vmatmul.mubr.msk.f32.gmra.mrb[10].mxu0 %vm1749_vm10, %v1712_v14 }
 0x1a6   : > { %v922_v44 = vpop.permute.xlu1 %921 }
 0x1a7   : > { %v1206_v6 = vpop.permute.xlu0 %1205  ;;  %v1550_v57 = vsel %vm1535_vm4, %v3589_v23, %v922_v44 }
 0x1a8   : > { %1131 = vrot.lane.b32.xlu1 %v4713_v17, %s2741_s26  ;;  %v1647_v29 = vsel %vm1634_vm7, %v1614_v31, %v1206_v6 }
 0x1a9   : > { %1415 = vrot.lane.b32.xlu0 %v4713_v17, %s2744_s13 }
 0x1aa   : > { %v1302_v37 = vpop.permute.xlu1 %1301 }
 0x1ab   : > { %v1208_v16 = vpop.permute.xlu0 %1207  ;;  %v1680_v58 = vsel %vm1667_vm8, %v1647_v29, %v1302_v37 }
 0x1ac   : > { %941 = vrot.lane.b32.xlu1 %v2707_v27, %s2739_s7  ;;  %v1648_v21 = vsel %vm1634_vm7, %v1615_v42, %v1208_v16  ;;  %v4722_v42 = vld [vmem:[#allocation26_spill] sm:$0xff] }
 0x1ad   : > { %1225 = vrot.lane.b32.xlu0 %v2707_v27, %s2742_s9  ;;  %v4719_v27 = vld [vmem:[#allocation46_spill] sm:$0xff] }
 0x1ae   : > { %v1018_v15 = vpop.permute.xlu1 %1017 }
 0x1af   : > { %v924_v24 = vpop.permute.xlu0 %923  ;;  %v1583_v3 = vsel %vm1568_vm5, %v1550_v57, %v1018_v15  ;;  %v4720_v15 = vld [vmem:[#allocation23_spill] sm:$0xff] }
 0x1b0   : > { %1321 = vrot.lane.b32.xlu1 %v4714_v30, %s2743_s12  ;;  %v1551_v17 = vsel %vm1535_vm4, %v3586_v45, %v924_v24 }
 0x1b1   : > { %1227 = vrot.lane.b32.xlu0 %v2708_v12, %s2742_s9 }
 0x1b2   : > { %v1398_v56 = vpop.permute.xlu1 %1397 }
 0x1b3   : > { %v1713_v48 = vsel %vm1700_vm9, %v1680_v58, %v1398_v56  ;;  %v1304_v33 = vpop.permute.xlu0 %1303  ;;  %v4721_v58 = vld [vmem:[#allocation44_spill] sm:$0xff] }
 0x1b4   : > { %1037 = vrot.lane.b32.xlu1 %v4714_v30, %s2740_s16  ;;  %2601 = vmatprep.mubr.msk.f32.mxu0 %vm1749_vm10, %v1713_v48  ;;  %v1681_v54 = vsel %vm1667_vm8, %v1648_v21, %v1304_v33  ;;  %v2711_v33 = vld [vmem:[%s2806_s28 + $0x168] sm:$0xff]  ;;  %v2712_v21 = vld [vmem:[%s2806_s28 + $0x170] sm:$0xff]  ;;  %s2522_s28 = sadd.s32 384, %s2657_s25  ;;  %s2523_s25 = sshll.u32 %s4731_s21, 8 }
 0x1b5   : > { %943 = vrot.lane.b32.xlu0 %v2708_v12, %s2739_s7  ;;  %s4148_s17 = scalar_lea.vmem %s4516_s1, %s2522_s28  ;;  %s4228_s20 = scalar_lea.vmem %s4519_s4, %s2523_s25 }
 0x1b6   : > { %v1114_v60 = vpop.permute.xlu1 %1113 }
 0x1b7   : > { %v1020_v34 = vpop.permute.xlu0 %1019  ;;  %v1616_v61 = vsel %vm1601_vm6, %v1583_v3, %v1114_v60 }
 0x1b8   : > { %1417 = vrot.lane.b32.xlu1 %v4715_v46, %s2744_s13  ;;  %v1584_v16 = vsel %vm1568_vm5, %v1551_v17, %v1020_v34 }
 0x1b9   : > { %1323 = vrot.lane.b32.xlu0 %v4716_v18, %s2743_s12 }
 0x1ba   : > { %v1116_v62 = vpop.permute.xlu1 %1115 }
 0x1bb   : > { %v1400_v52 = vpop.permute.xlu0 %1399  ;;  %v1617_v8 = vsel %vm1601_vm6, %v1584_v16, %v1116_v62 }
 0x1bc   : > { %v1714_v28 = vsel %vm1700_vm9, %v1681_v54, %v1400_v52  ;;  %1133 = vrot.lane.b32.xlu1 %v4715_v46, %s2741_s26 }
 0x1bd   : > { %1039 = vrot.lane.b32.xlu0 %v4716_v18, %s2740_s16  ;;  %2602 = vmatmul.mubr.msk.f32.gmra.mrb[12].mxu0 %vm1749_vm10, %v1714_v28 }
 0x1be   : > { %v926_v53 = vpop.permute.xlu1 %925 }
 0x1bf   : > { %v1210_v47 = vpop.permute.xlu0 %1209  ;;  %v1552_v60 = vsel %vm1535_vm4, %v3605_v5, %v926_v53 }
 0x1c0   : > { %1135 = vrot.lane.b32.xlu1 %v4717_v13, %s2741_s26  ;;  %v1649_v38 = vsel %vm1634_vm7, %v1616_v61, %v1210_v47 }
 0x1c1   : > { %1419 = vrot.lane.b32.xlu0 %v4717_v13, %s2744_s13 }
 0x1c2   : > { %v1306_v22 = vpop.permute.xlu1 %1305 }
 0x1c3   : > { %v1212_v40 = vpop.permute.xlu0 %1211  ;;  %v1682_v25 = vsel %vm1667_vm8, %v1649_v38, %v1306_v22  ;;  %v4723_v22 = vld [vmem:[#allocation50_spill] sm:$0xff]  ;;  %v460_v38 = vld [vmem:[%s4148_s17 + $0x8] sm:$0xff] }
 0x1c4   : > { %945 = vrot.lane.b32.xlu1 %v2709_v7, %s2739_s7  ;;  %v1650_v26 = vsel %vm1634_vm7, %v1617_v8, %v1212_v40 }
 0x1c5   : > { %1229 = vrot.lane.b32.xlu0 %v2709_v7, %s2742_s9  ;;  %v4724_v7 = vld [vmem:[#allocation25_spill] sm:$0xff] }
 0x1c6   : > { %v1022_v50 = vpop.permute.xlu1 %1021 }
 0x1c7   : > { %v928_v55 = vpop.permute.xlu0 %927  ;;  %v1585_v34 = vsel %vm1568_vm5, %v1552_v60, %v1022_v50 }
 0x1c8   : > { %1325 = vrot.lane.b32.xlu1 %v4718_v59, %s2743_s12  ;;  %v1553_v53 = vsel %vm1535_vm4, %v3602_v20, %v928_v55 }
 0x1c9   : > { %1231 = vrot.lane.b32.xlu0 %v2710_v11, %s2742_s9 }
 0x1ca   : > { %v1402_v14 = vpop.permute.xlu1 %1401 }
 0x1cb   : > { %v1715_v6 = vsel %vm1700_vm9, %v1682_v25, %v1402_v14  ;;  %v1308_v23 = vpop.permute.xlu0 %1307  ;;  %v4725_v25 = vld [vmem:[#allocation48_spill] sm:$0xff] }
 0x1cc   : > { %1041 = vrot.lane.b32.xlu1 %v4718_v59, %s2740_s16  ;;  %2604 = vmatprep.mubr.msk.f32.mxu0 %vm1749_vm10, %v1715_v6  ;;  %v1683_v30 = vsel %vm1667_vm8, %v1650_v26, %v1308_v23  ;;  %v459_v59 = vld [vmem:[%s4148_s17] sm:$0xff]  ;;  %v679_v6 = vrot.slane %v460_v38, 1 }
 0x1cd   : > { %947 = vrot.lane.b32.xlu0 %v2710_v11, %s2739_s7  ;;  %v678_v14 = vrot.slane %v459_v59, 1 }
 0x1ce   : > { %v1118_v44 = vpop.permute.xlu1 %1117 }
 0x1cf   : > { %v1024_v37 = vpop.permute.xlu0 %1023  ;;  %v1618_v46 = vsel %vm1601_vm6, %v1585_v34, %v1118_v44  ;;  %v680_v17 = vsel %vm513_vm0, %v678_v14, %v679_v6 }
 0x1d0   : > { %1421 = vrot.lane.b32.xlu1 %v4719_v27, %s2744_s13  ;;  %v1586_v13 = vsel %vm1568_vm5, %v1553_v53, %v1024_v37 }
 0x1d1   : > { %1327 = vrot.lane.b32.xlu0 %v4720_v15, %s2743_s12 }
 0x1d2   : > { %v1120_v31 = vpop.permute.xlu1 %1119 }
 0x1d3   : > { %v1404_v29 = vpop.permute.xlu0 %1403  ;;  %v1619_v40 = vsel %vm1601_vm6, %v1586_v13, %v1120_v31 }
 0x1d4   : > { %v1716_v45 = vsel %vm1700_vm9, %v1683_v30, %v1404_v29  ;;  %1137 = vrot.lane.b32.xlu1 %v4719_v27, %s2741_s26  ;;  %v683_v30 = vrot.slane %v459_v59, 2  ;;  %v684_v29 = vrot.slane %v460_v38, 2 }
 0x1d5   : > { %1043 = vrot.lane.b32.xlu0 %v4720_v15, %s2740_s16  ;;  %2605 = vmatmul.mubr.msk.f32.gmra.mrb[14].mxu0 %vm1749_vm10, %v1716_v45  ;;  %v461_v15 = vld [vmem:[%s4148_s17 + $0x10] sm:$0x3] }
 0x1d6   : > { %v930_v24 = vpop.permute.xlu1 %929 }
 0x1d7   : > { %v1214_v12 = vpop.permute.xlu0 %1213  ;;  %v1554_v37 = vsel %vm1535_vm4, %v3621_v43, %v930_v24  ;;  %v681_v43 = vrot.slane %v461_v15, 1 }
 0x1d8   : > { %1139 = vrot.lane.b32.xlu1 %v4721_v58, %s2741_s26  ;;  %v1651_v18 = vsel %vm1634_vm7, %v1618_v46, %v1214_v12 }
 0x1d9   : > { %1423 = vrot.lane.b32.xlu0 %v4721_v58, %s2744_s13 }
 0x1da   : > { %v1310_v56 = vpop.permute.xlu1 %1309 }
 0x1db   : > { %v1216_v48 = vpop.permute.xlu0 %1215  ;;  %v1684_v62 = vsel %vm1667_vm8, %v1651_v18, %v1310_v56  ;;  %v685_v56 = vsel %vm594_vm1, %v683_v30, %v684_v29 }
 0x1dc   : > { %949 = vrot.lane.b32.xlu1 %v2711_v33, %s2739_s7  ;;  %v1652_v57 = vsel %vm1634_vm7, %v1619_v40, %v1216_v48 }
 0x1dd   : > { %1233 = vrot.lane.b32.xlu0 %v2711_v33, %s2742_s9  ;;  %v682_v33 = vsel %vm513_vm0, %v679_v6, %v681_v43 }
 0x1de   : > { %v1026_v39 = vpop.permute.xlu1 %1025 }
 0x1df   : > { %v4119_v19 = vpop.permute.xlu0 %931  ;;  %v1587_v27 = vsel %vm1568_vm5, %v1554_v37, %v1026_v39 }
 0x1e0   : > { %1329 = vrot.lane.b32.xlu1 %v4722_v42, %s2743_s12  ;;  %v1555_v60 = vsel %vm1535_vm4, %v3618_v0, %v4119_v19 }
 0x1e1   : > { %1235 = vrot.lane.b32.xlu0 %v2712_v21, %s2742_s9 }
 0x1e2   : > { %v1406_v54 = vpop.permute.xlu1 %1405 }
 0x1e3   : > { %v1312_v5 = vpop.permute.xlu0 %1311  ;;  %v1717_v52 = vsel %vm1700_vm9, %v1684_v62, %v1406_v54 }
 0x1e4   : > { %1045 = vrot.lane.b32.xlu1 %v4722_v42, %s2740_s16  ;;  %2607 = vmatprep.mubr.msk.f32.mxu1 %vm1749_vm10, %v1717_v52  ;;  %v1685_v3 = vsel %vm1667_vm8, %v1652_v57, %v1312_v5  ;;  %v686_v42 = vrot.slane %v461_v15, 2  ;;  %v463_v52 = vld [vmem:[%s4148_s17 + $0x20] sm:$0xff] }
 0x1e5   : > { %951 = vrot.lane.b32.xlu0 %v2712_v21, %s2739_s7  ;;  %v692_v13 = vrot.slane %v463_v52, 1 }
 0x1e6   : > { %v1122_v28 = vpop.permute.xlu1 %1121  ;;  %v687_v54 = vsel %vm594_vm1, %v684_v29, %v686_v42 }
 0x1e7   : > { %v1028_v47 = vpop.permute.xlu0 %1027  ;;  %v1620_v26 = vsel %vm1601_vm6, %v1587_v27, %v1122_v28  ;;  %v464_v28 = vld [vmem:[%s4148_s17 + $0x28] sm:$0x3] }
 0x1e8   : > { %1425 = vrot.lane.b32.xlu1 %v4723_v22, %s2744_s13  ;;  %v1588_v34 = vsel %vm1568_vm5, %v1555_v60, %v1028_v47  ;;  %v462_v47 = vld [vmem:[%s4148_s17 + $0x18] sm:$0xff] }
 0x1e9   : > { %1331 = vrot.lane.b32.xlu0 %v4724_v7, %s2743_s12 }
 0x1ea   : > { %v1124_v50 = vpop.permute.xlu1 %1123 }
 0x1eb   : > { %v1408_v61 = vpop.permute.xlu0 %1407  ;;  %v1621_v46 = vsel %vm1601_vm6, %v1588_v34, %v1124_v50  ;;  %v697_v50 = vrot.slane %v463_v52, 2 }
 0x1ec   : > { %v1718_v20 = vsel %vm1700_vm9, %v1685_v3, %v1408_v61  ;;  %1141 = vrot.lane.b32.xlu1 %v4723_v22, %s2741_s26  ;;  %v694_v22 = vrot.slane %v464_v28, 1  ;;  %v4215_v3 = vld [vmem:[%s4518_s3] ss:$0 sm:$0xff] }
 0x1ed   : > { %1047 = vrot.lane.b32.xlu0 %v4724_v7, %s2740_s16  ;;  %2608 = vmatmul.mubr.msk.f32.vlgmr.msra.gmra.mrb[0].mxu1 %vm1749_vm10, %v1718_v20  ;;  %v691_v7 = vrot.slane %v462_v47, 1  ;;  %v699_v20 = vrot.slane %v464_v28, 2 }
 0x1ee   : > { %v4156_v55 = vpop.permute.xlu1 %933  ;;  %v695_v61 = vsel %vm513_vm0, %v692_v13, %v694_v22 }
 0x1ef   : > { %v1218_v11 = vpop.permute.xlu0 %1217 }
 0x1f0   : > { %1143 = vrot.lane.b32.xlu1 %v4725_v25, %s2741_s26  ;;  %v1653_v31 = vsel %vm1634_vm7, %v1620_v26, %v1218_v11 }
 0x1f1   : > { %1427 = vrot.lane.b32.xlu0 %v4725_v25, %s2744_s13  ;;  %v693_v25 = vsel %vm513_vm0, %v691_v7, %v692_v13 }
 0x1f2   : > { %v1314_v23 = vpop.permute.xlu1 %1313 }
 0x1f3   : > { %v1220_v44 = vpop.permute.xlu0 %1219  ;;  %v1686_v45 = vsel %vm1667_vm8, %v1653_v31, %v1314_v23 }
 0x1f4   : > { %953 = vrot.lane.b32.xlu1 %v459_v59, %s2739_s7  ;;  %v1654_v18 = vsel %vm1634_vm7, %v1621_v46, %v1220_v44 }
 0x1f5   : > { %1237 = vrot.lane.b32.xlu0 %v459_v59, %s2742_s9  ;;  %v1556_v59 = vsel %vm1535_vm4, %v3637_v41, %v4156_v55 }
 0x1f6   : > { %v1030_v16 = vpop.permute.xlu1 %1029 }
 0x1f7   : > { %v4170_v8 = vpop.permute.xlu0 %935  ;;  %v1589_v14 = vsel %vm1568_vm5, %v1556_v59, %v1030_v16  ;;  %v700_v16 = vsel %vm594_vm1, %v697_v50, %v699_v20 }
 0x1f8   : > { %1333 = vrot.lane.b32.xlu1 %v680_v17, %s2743_s12  ;;  %v1557_v60 = vsel %vm1535_vm4, %v3634_v9, %v4170_v8 }
 0x1f9   : > { %1239 = vrot.lane.b32.xlu0 %v460_v38, %s2742_s9 }
 0x1fa   : > { %v1410_v12 = vpop.permute.xlu1 %1409 }
 0x1fb   : > { %v1719_v24 = vsel %vm1700_vm9, %v1686_v45, %v1410_v12  ;;  %v1316_v58 = vpop.permute.xlu0 %1315 }
 0x1fc   : > { %1049 = vrot.lane.b32.xlu1 %v680_v17, %s2740_s16  ;;  %2610 = vmatprep.mubr.msk.f32.mxu1 %vm1749_vm10, %v1719_v24  ;;  %v1687_v0 = vsel %vm1667_vm8, %v1654_v18, %v1316_v58 }
 0x1fd   : > { %955 = vrot.lane.b32.xlu0 %v460_v38, %s2739_s7  ;;  %v696_v38 = vrot.slane %v462_v47, 2 }
 0x1fe   : > { %v1126_v48 = vpop.permute.xlu1 %1125 }
 0x1ff   : > { %v4187_v39 = vpop.permute.xlu0 %1031  ;;  %v1622_v44 = vsel %vm1601_vm6, %v1589_v14, %v1126_v48  ;;  %v698_v30 = vsel %vm594_vm1, %v696_v38, %v697_v50 }
 0x200   : > { %1429 = vrot.lane.b32.xlu1 %v685_v56, %s2744_s13  ;;  %v1590_v46 = vsel %vm1568_vm5, %v1557_v60, %v4187_v39 }
 0x201   : > { %1335 = vrot.lane.b32.xlu0 %v682_v33, %s2743_s12 }
 0x202   : > { %v4194_v21 = vpop.permute.xlu1 %1127 }
 0x203   : > { %v1412_v19 = vpop.permute.xlu0 %1411  ;;  %v1623_v42 = vsel %vm1601_vm6, %v1590_v46, %v4194_v21 }
 0x204   : > { %v1720_v62 = vsel %vm1700_vm9, %v1687_v0, %v1412_v19  ;;  %1145 = vrot.lane.b32.xlu1 %v685_v56, %s2741_s26 }
 0x205   : > { %1051 = vrot.lane.b32.xlu0 %v682_v33, %s2740_s16  ;;  %2611 = vmatmul.mubr.msk.f32.gmra.mrb[2].mxu1 %vm1749_vm10, %v1720_v62 }
 0x206   : > { %v4202_v5 = vpop.permute.xlu1 %937 }
 0x207   : > { %v1222_v53 = vpop.permute.xlu0 %1221  ;;  %v1558_v13 = vsel %vm1535_vm4, %v3653_v10, %v4202_v5 }
 0x208   : > { %1147 = vrot.lane.b32.xlu1 %v687_v54, %s2741_s26  ;;  %v1655_v17 = vsel %vm1634_vm7, %v1622_v44, %v1222_v53  ;;  %s2484_s26 = sshll.u32 %s4731_s21, 3 }
 0x209   : > { %1431 = vrot.lane.b32.xlu0 %v687_v54, %s2744_s13  ;;  %s403_s30 = scalar_lea.vmem %s4520_s5, %s2484_s26  ;;  %s410_s10 = scalar_lea.vmem %s4521_s6, %s2484_s26 }
 0x20a   : > { %v1318_v40 = vpop.permute.xlu1 %1317 }
 0x20b   : > { %v1224_v57 = vpop.permute.xlu0 %1223  ;;  %v1688_v27 = vsel %vm1667_vm8, %v1655_v17, %v1318_v40 }
 0x20c   : > { %1243 = vrot.lane.b32.xlu1 %v463_v52, %s2742_s9  ;;  %v1656_v18 = vsel %vm1634_vm7, %v1623_v42, %v1224_v57 }
 0x20d   : > { %1241 = vrot.lane.b32.xlu0 %v462_v47, %s2742_s9 }
 0x20e   : > { %v1034_v11 = vpop.permute.xlu1 %1033 }
 0x20f   : > { %v4223_v6 = vpop.permute.xlu0 %939  ;;  %v2585_v23 = vpop.f32.mrb[0].mxu0  ;;  %v1591_v40 = vsel %vm1568_vm5, %v1558_v13, %v1034_v11 }
 0x210   : > { %v1918_v41 = vadd.f32 %v2585_v23, %v4215_v3  ;;  %1339 = vrot.lane.b32.xlu1 %v695_v61, %s2743_s12  ;;  %v1912_v55 = vpop.f32.mrb[1].mxu0 }
 0x211   : > { %v1913_v37 = vadd.f32 %v4215_v3, %v1912_v55  ;;  %1337 = vrot.lane.b32.xlu0 %v693_v25, %s2743_s12 }
 0x212   : > { %2073 = vst.msk [vmem:[%s4228_s20 + $0x8] sm:$0xff] %vm2071_vm11, %v1918_v41  ;;  %v2105_v15 = vsel %vm2071_vm11, %v1918_v41, 0.0  ;;  %v2174_v26 = vmul.f32 %v1918_v41, %v1918_v41  ;;  %v1414_v31 = vpop.permute.xlu1 %1413 }
 0x213   : > { %2072 = vst.msk [vmem:[%s4228_s20] sm:$0xff] %vm2071_vm11, %v1913_v37  ;;  %v2104_v29 = vsel %vm2071_vm11, %v1913_v37, 0.0  ;;  %v2173_v45 = vmul.f32 %v1913_v37, %v1913_v37  ;;  %v1721_v12 = vsel %vm1700_vm9, %v1688_v27, %v1414_v31  ;;  %v1320_v43 = vpop.permute.xlu0 %1319 }
 0x214   : > { %v2206_v24 = vsel %vm2071_vm11, %v2174_v26, 0.0  ;;  %v2106_v58 = vadd.f32 %v2105_v15, %v2104_v29  ;;  %1435 = vrot.lane.b32.xlu1 %v700_v16, %s2744_s13  ;;  %2613 = vmatprep.mubr.msk.f32.mxu1 %vm1749_vm10, %v1721_v12  ;;  %v1689_v19 = vsel %vm1667_vm8, %v1656_v18, %v1320_v43  ;;  %v1559_v16 = vsel %vm1535_vm4, %v3650_v35, %v4223_v6 }
 0x215   : > { %v2205_v56 = vsel %vm2071_vm11, %v2173_v45, 0.0  ;;  %1433 = vrot.lane.b32.xlu0 %v698_v30, %s2744_s13 }
 0x216   : > { %v2207_v48 = vadd.f32 %v2206_v24, %v2205_v56  ;;  %v1130_v33 = vpop.permute.xlu1 %1129 }
 0x217   : > { %v1036_v34 = vpop.permute.xlu0 %1035  ;;  %v1624_v20 = vsel %vm1601_vm6, %v1591_v40, %v1130_v33 }
 0x218   : > { %v1592_v15 = vsel %vm1568_vm5, %v1559_v16, %v1036_v34 }
 0x21a   : > { %v1132_v0 = vpop.permute.xlu1 %1131 }
 0x21b   : > { %v1416_v62 = vpop.permute.xlu0 %1415  ;;  %v1625_v26 = vsel %vm1601_vm6, %v1592_v15, %v1132_v0 }
 0x21c   : > { %v1722_v54 = vsel %vm1700_vm9, %v1689_v19, %v1416_v62 }
 0x21d   : > { %2614 = vmatmul.mubr.msk.f32.gmra.mrb[4].mxu1 %vm1749_vm10, %v1722_v54 }
 0x21e   : > { %v942_v9 = vpop.permute.xlu1 %941 }
 0x21f   : > { %v1226_v8 = vpop.permute.xlu0 %1225  ;;  %v1560_v19 = vsel %vm1535_vm4, %v3669_v36, %v942_v9 }
 0x220   : > { %v1657_v38 = vsel %vm1634_vm7, %v1624_v20, %v1226_v8 }
 0x222   : > { %v1322_v52 = vpop.permute.xlu1 %1321 }
 0x223   : > { %v1228_v28 = vpop.permute.xlu0 %1227  ;;  %v2588_v39 = vpop.f32.mrb[2].mxu0  ;;  %v1690_v5 = vsel %vm1667_vm8, %v1657_v38, %v1322_v52 }
 0x224   : > { %v1928_v53 = vadd.f32 %v2588_v39, %v4215_v3  ;;  %v1922_v21 = vpop.f32.mrb[3].mxu0  ;;  %v1658_v31 = vsel %vm1634_vm7, %v1625_v26, %v1228_v28 }
 0x225   : > { %v1923_v47 = vadd.f32 %v4215_v3, %v1922_v21 }
 0x226   : > { %2075 = vst.msk [vmem:[%s4228_s20 + $0x18] sm:$0xff] %vm2071_vm11, %v1928_v53  ;;  %v1038_v22 = vpop.permute.xlu1 %1037  ;;  %v2176_v7 = vmul.f32 %v1928_v53, %v1928_v53  ;;  %v2109_v25 = vsel %vm2071_vm11, %v1928_v53, 0.0 }
 0x227   : > { %2074 = vst.msk [vmem:[%s4228_s20 + $0x10] sm:$0xff] %vm2071_vm11, %v1923_v47  ;;  %v2107_v57 = vsel %vm2071_vm11, %v1923_v47, 0.0  ;;  %v2175_v50 = vmul.f32 %v1923_v47, %v1923_v47  ;;  %v944_v61 = vpop.permute.xlu0 %943  ;;  %v1593_v52 = vsel %vm1568_vm5, %v1560_v19, %v1038_v22 }
 0x228   : > { %v2108_v59 = vadd.f32 %v2107_v57, %v2106_v58  ;;  %v2210_v44 = vsel %vm2071_vm11, %v2176_v7, 0.0  ;;  %v1561_v9 = vsel %vm1535_vm4, %v3666_v4, %v944_v61 }
 0x229   : > { %v2208_v10 = vsel %vm2071_vm11, %v2175_v50, 0.0 }
 0x22a   : > { %v2209_v14 = vadd.f32 %v2208_v10, %v2207_v48  ;;  %v1418_v11 = vpop.permute.xlu1 %1417  ;;  %v2110_v23 = vadd.f32 %v2109_v25, %v2108_v59 }
 0x22b   : > { %v1723_v41 = vsel %vm1700_vm9, %v1690_v5, %v1418_v11  ;;  %v1324_v55 = vpop.permute.xlu0 %1323 }
 0x22c   : > { %2616 = vmatprep.mubr.msk.f32.mxu1 %vm1749_vm10, %v1723_v41  ;;  %v2211_v17 = vadd.f32 %v2210_v44, %v2209_v14  ;;  %v1691_v29 = vsel %vm1667_vm8, %v1658_v31, %v1324_v55 }
 0x22e   : > { %v1134_v37 = vpop.permute.xlu1 %1133 }
 0x22f   : > { %v1040_v27 = vpop.permute.xlu0 %1039  ;;  %v1626_v53 = vsel %vm1601_vm6, %v1593_v52, %v1134_v37 }
 0x230   : > { %v1594_v50 = vsel %vm1568_vm5, %v1561_v9, %v1040_v27 }
 0x232   : > { %v1136_v30 = vpop.permute.xlu1 %1135 }
 0x233   : > { %v1420_v45 = vpop.permute.xlu0 %1419  ;;  %v1627_v20 = vsel %vm1601_vm6, %v1594_v50, %v1136_v30 }
 0x234   : > { %v1724_v12 = vsel %vm1700_vm9, %v1691_v29, %v1420_v45 }
 0x235   : > { %2617 = vmatmul.mubr.msk.f32.gmra.mrb[6].mxu1 %vm1749_vm10, %v1724_v12 }
 0x236   : > { %v4290_v43 = vpop.permute.xlu1 %945 }
 0x237   : > { %v1230_v35 = vpop.permute.xlu0 %1229  ;;  %v2591_v6 = vpop.f32.mrb[4].mxu0  ;;  %v1562_v12 = vsel %vm1535_vm4, %v3685_v32, %v4290_v43 }
 0x238   : > { %v1938_v24 = vadd.f32 %v2591_v6, %v4215_v3  ;;  %v1932_v58 = vpop.f32.mrb[5].mxu0  ;;  %v1659_v47 = vsel %vm1634_vm7, %v1626_v53, %v1230_v35 }
 0x239   : > { %v1933_v56 = vadd.f32 %v4215_v3, %v1932_v58 }
 0x23a   : > { %2077 = vst.msk [vmem:[%s4228_s20 + $0x28] sm:$0xff] %vm2071_vm11, %v1938_v24  ;;  %v1326_v48 = vpop.permute.xlu1 %1325  ;;  %v2178_v33 = vmul.f32 %v1938_v24, %v1938_v24  ;;  %v2113_v18 = vsel %vm2071_vm11, %v1938_v24, 0.0 }
 0x23b   : > { %2076 = vst.msk [vmem:[%s4228_s20 + $0x20] sm:$0xff] %vm2071_vm11, %v1933_v56  ;;  %v2111_v60 = vsel %vm2071_vm11, %v1933_v56, 0.0  ;;  %v2177_v34 = vmul.f32 %v1933_v56, %v1933_v56  ;;  %v1232_v46 = vpop.permute.xlu0 %1231  ;;  %v1692_v13 = vsel %vm1667_vm8, %v1659_v47, %v1326_v48 }
 0x23c   : > { %v2112_v42 = vadd.f32 %v2111_v60, %v2110_v23  ;;  %v2214_v28 = vsel %vm2071_vm11, %v2178_v33, 0.0  ;;  %v1660_v59 = vsel %vm1634_vm7, %v1627_v20, %v1232_v46 }
 0x23d   : > { %v2212_v0 = vsel %vm2071_vm11, %v2177_v34, 0.0 }
 0x23e   : > { %v2213_v62 = vadd.f32 %v2212_v0, %v2211_v17  ;;  %v1042_v54 = vpop.permute.xlu1 %1041  ;;  %v2114_v8 = vadd.f32 %v2113_v18, %v2112_v42 }
 0x23f   : > { %v948_v39 = vpop.permute.xlu0 %947  ;;  %v1595_v6 = vsel %vm1568_vm5, %v1562_v12, %v1042_v54 }
 0x240   : > { %v2215_v21 = vadd.f32 %v2214_v28, %v2213_v62  ;;  %v1563_v32 = vsel %vm1535_vm4, %v3682_v51, %v948_v39 }
 0x242   : > { %v1422_v40 = vpop.permute.xlu1 %1421 }
 0x243   : > { %v1725_v7 = vsel %vm1700_vm9, %v1692_v13, %v1422_v40  ;;  %v1328_v57 = vpop.permute.xlu0 %1327 }
 0x244   : > { %2619 = vmatprep.mubr.msk.f32.mxu1 %vm1749_vm10, %v1725_v7  ;;  %v1693_v25 = vsel %vm1667_vm8, %v1660_v59, %v1328_v57 }
 0x246   : > { %v1138_v36 = vpop.permute.xlu1 %1137 }
 0x247   : > { %v1044_v22 = vpop.permute.xlu0 %1043  ;;  %v1628_v58 = vsel %vm1601_vm6, %v1595_v6, %v1138_v36 }
 0x248   : > { %v1596_v18 = vsel %vm1568_vm5, %v1563_v32, %v1044_v22 }
 0x24a   : > { %v1140_v38 = vpop.permute.xlu1 %1139 }
 0x24b   : > { %v1424_v10 = vpop.permute.xlu0 %1423  ;;  %v2594_v5 = vpop.f32.mrb[6].mxu0  ;;  %v1629_v62 = vsel %vm1601_vm6, %v1596_v18, %v1140_v38 }
 0x24c   : > { %v1726_v14 = vsel %vm1700_vm9, %v1693_v25, %v1424_v10  ;;  %v1948_v11 = vadd.f32 %v2594_v5, %v4215_v3  ;;  %v1942_v23 = vpop.f32.mrb[7].mxu0 }
 0x24d   : > { %v1943_v4 = vadd.f32 %v4215_v3, %v1942_v23  ;;  %2620 = vmatmul.mubr.msk.f32.gmra.mrb[8].mxu1 %vm1749_vm10, %v1726_v14 }
 0x24e   : > { %2079 = vst.msk [vmem:[%s4228_s20 + $0x38] sm:$0xff] %vm2071_vm11, %v1948_v11  ;;  %v950_v61 = vpop.permute.xlu1 %949  ;;  %v2180_v44 = vmul.f32 %v1948_v11, %v1948_v11  ;;  %v2117_v16 = vsel %vm2071_vm11, %v1948_v11, 0.0 }
 0x24f   : > { %2078 = vst.msk [vmem:[%s4228_s20 + $0x30] sm:$0xff] %vm2071_vm11, %v1943_v4  ;;  %v2115_v41 = vsel %vm2071_vm11, %v1943_v4, 0.0  ;;  %v2179_v55 = vmul.f32 %v1943_v4, %v1943_v4  ;;  %v1234_v17 = vpop.permute.xlu0 %1233  ;;  %v1564_v25 = vsel %vm1535_vm4, %v3701_v1, %v950_v61 }
 0x250   : > { %v2116_v37 = vadd.f32 %v2115_v41, %v2114_v8  ;;  %v2218_v30 = vsel %vm2071_vm11, %v2180_v44, 0.0  ;;  %v1661_v56 = vsel %vm1634_vm7, %v1628_v58, %v1234_v17 }
 0x251   : > { %v2216_v27 = vsel %vm2071_vm11, %v2179_v55, 0.0 }
 0x252   : > { %v2217_v15 = vadd.f32 %v2216_v27, %v2215_v21  ;;  %v1330_v26 = vpop.permute.xlu1 %1329  ;;  %v2118_v31 = vadd.f32 %v2117_v16, %v2116_v37 }
 0x253   : > { %v1236_v29 = vpop.permute.xlu0 %1235  ;;  %v1694_v48 = vsel %vm1667_vm8, %v1661_v56, %v1330_v26 }
 0x254   : > { %v2219_v45 = vadd.f32 %v2218_v30, %v2217_v15  ;;  %v1662_v8 = vsel %vm1634_vm7, %v1629_v62, %v1236_v29 }
 0x256   : > { %v1046_v35 = vpop.permute.xlu1 %1045 }
 0x257   : > { %v952_v24 = vpop.permute.xlu0 %951  ;;  %v1597_v5 = vsel %vm1568_vm5, %v1564_v25, %v1046_v35 }
 0x258   : > { %v1565_v1 = vsel %vm1535_vm4, %v3698_v2, %v952_v24 }
 0x25a   : > { %v1426_v33 = vpop.permute.xlu1 %1425 }
 0x25b   : > { %v1727_v60 = vsel %vm1700_vm9, %v1694_v48, %v1426_v33  ;;  %v1332_v34 = vpop.permute.xlu0 %1331 }
 0x25c   : > { %2622 = vmatprep.mubr.msk.f32.mxu1 %vm1749_vm10, %v1727_v60  ;;  %v1695_v28 = vsel %vm1667_vm8, %v1662_v8, %v1332_v34 }
 0x25e   : > { %v1142_v46 = vpop.permute.xlu1 %1141 }
 0x25f   : > { %v1048_v43 = vpop.permute.xlu0 %1047  ;;  %v2597_v42 = vpop.f32.mrb[8].mxu0  ;;  %v1630_v11 = vsel %vm1601_vm6, %v1597_v5, %v1142_v46 }
 0x260   : > { %v1958_v0 = vadd.f32 %v2597_v42, %v4215_v3  ;;  %v1952_v19 = vpop.f32.mrb[9].mxu0  ;;  %v1598_v37 = vsel %vm1568_vm5, %v1565_v1, %v1048_v43 }
 0x261   : > { %v1953_v54 = vadd.f32 %v4215_v3, %v1952_v19 }
 0x262   : > { %2081 = vst.msk [vmem:[%s4228_s20 + $0x48] sm:$0xff] %vm2071_vm11, %v1958_v0  ;;  %v1144_v52 = vpop.permute.xlu1 %1143  ;;  %v2182_v53 = vmul.f32 %v1958_v0, %v1958_v0  ;;  %v2121_v40 = vsel %vm2071_vm11, %v1958_v0, 0.0 }
 0x263   : > { %2080 = vst.msk [vmem:[%s4228_s20 + $0x40] sm:$0xff] %vm2071_vm11, %v1953_v54  ;;  %v2119_v51 = vsel %vm2071_vm11, %v1953_v54, 0.0  ;;  %v2181_v39 = vmul.f32 %v1953_v54, %v1953_v54  ;;  %v1428_v21 = vpop.permute.xlu0 %1427  ;;  %v1631_v27 = vsel %vm1601_vm6, %v1598_v37, %v1144_v52 }
 0x264   : > { %v2120_v47 = vadd.f32 %v2119_v51, %v2118_v31  ;;  %v1728_v13 = vsel %vm1700_vm9, %v1695_v28, %v1428_v21  ;;  %v2222_v22 = vsel %vm2071_vm11, %v2182_v53, 0.0 }
 0x265   : > { %v2220_v7 = vsel %vm2071_vm11, %v2181_v39, 0.0  ;;  %2623 = vmatmul.mubr.msk.f32.gmra.mrb[10].mxu1 %vm1749_vm10, %v1728_v13 }
 0x266   : > { %v2221_v57 = vadd.f32 %v2220_v7, %v2219_v45  ;;  %v954_v36 = vpop.permute.xlu1 %953  ;;  %v2122_v9 = vadd.f32 %v2121_v40, %v2120_v47 }
 0x267   : > { %v1238_v50 = vpop.permute.xlu0 %1237  ;;  %v1566_v0 = vsel %vm1535_vm4, %v3717_v49, %v954_v36 }
 0x268   : > { %v2223_v20 = vadd.f32 %v2222_v22, %v2221_v57  ;;  %v1663_v23 = vsel %vm1634_vm7, %v1630_v11, %v1238_v50 }
 0x26a   : > { %v1334_v59 = vpop.permute.xlu1 %1333 }
 0x26b   : > { %v1240_v38 = vpop.permute.xlu0 %1239  ;;  %v1696_v4 = vsel %vm1667_vm8, %v1663_v23, %v1334_v59 }
 0x26c   : > { %v1664_v31 = vsel %vm1634_vm7, %v1631_v27, %v1240_v38 }
 0x26e   : > { %v1050_v10 = vpop.permute.xlu1 %1049 }
 0x26f   : > { %v956_v14 = vpop.permute.xlu0 %955  ;;  %v1599_v54 = vsel %vm1568_vm5, %v1566_v0, %v1050_v10 }
 0x270   : > { %v1567_v42 = vsel %vm1535_vm4, %v3714_v63, %v956_v14 }
 0x272   : > { %v1430_v44 = vpop.permute.xlu1 %1429 }
 0x273   : > { %v1729_v41 = vsel %vm1700_vm9, %v1696_v4, %v1430_v44  ;;  %v1336_v55 = vpop.permute.xlu0 %1335 }
 0x274   : > { %2625 = vmatprep.mubr.msk.f32.mxu1 %vm1749_vm10, %v1729_v41  ;;  %v1697_v45 = vsel %vm1667_vm8, %v1664_v31, %v1336_v55 }
 0x276   : > { %v1146_v17 = vpop.permute.xlu1 %1145 }
 0x277   : > { %v1052_v61 = vpop.permute.xlu0 %1051  ;;  %v1632_v52 = vsel %vm1601_vm6, %v1599_v54, %v1146_v17 }
 0x278   : > { %v2600_v16 = vpop.f32.mrb[10].mxu0  ;;  %v1600_v19 = vsel %vm1568_vm5, %v1567_v42, %v1052_v61 }
 0x279   : > { %v1968_v15 = vadd.f32 %v2600_v16, %v4215_v3  ;;  %v1962_v26 = vpop.f32.mrb[11].mxu0 }
 0x27a   : > { %v1963_v30 = vadd.f32 %v4215_v3, %v1962_v26  ;;  %v1148_v29 = vpop.permute.xlu1 %1147 }
 0x27b   : > { %2083 = vst.msk [vmem:[%s4228_s20 + $0x58] sm:$0xff] %vm2071_vm11, %v1968_v15  ;;  %v1432_v12 = vpop.permute.xlu0 %1431  ;;  %v2184_v2 = vmul.f32 %v1968_v15, %v1968_v15  ;;  %v2125_v56 = vsel %vm2071_vm11, %v1968_v15, 0.0  ;;  %v1633_v8 = vsel %vm1601_vm6, %v1600_v19, %v1148_v29 }
 0x27c   : > { %2082 = vst.msk [vmem:[%s4228_s20 + $0x50] sm:$0xff] %vm2071_vm11, %v1963_v30  ;;  %v2123_v35 = vsel %vm2071_vm11, %v1963_v30, 0.0  ;;  %v2183_v6 = vmul.f32 %v1963_v30, %v1963_v30  ;;  %v1730_v24 = vsel %vm1700_vm9, %v1697_v45, %v1432_v12 }
 0x27d   : > { %v2124_v58 = vadd.f32 %v2123_v35, %v2122_v9  ;;  %2626 = vmatmul.mubr.msk.f32.gmra.mrb[12].mxu1 %vm1749_vm10, %v1730_v24  ;;  %v2226_v32 = vsel %vm2071_vm11, %v2184_v2, 0.0 }
 0x27e   : > { %v2224_v48 = vsel %vm2071_vm11, %v2183_v6, 0.0  ;;  %v1244_v33 = vpop.permute.xlu1 %1243 }
 0x27f   : > { %v2225_v60 = vadd.f32 %v2224_v48, %v2223_v20  ;;  %v1242_v34 = vpop.permute.xlu0 %1241  ;;  %v2126_v46 = vadd.f32 %v2125_v56, %v2124_v58  ;;  %v1666_v28 = vsel %vm1634_vm7, %v1633_v8, %v1244_v33 }
 0x280   : > { %v1665_v53 = vsel %vm1634_vm7, %v1632_v52, %v1242_v34 }
 0x281   : > { %v2227_v43 = vadd.f32 %v2226_v32, %v2225_v60 }
 0x282   : > { %v1340_v18 = vpop.permute.xlu1 %1339 }
 0x283   : > { %v1338_v62 = vpop.permute.xlu0 %1337  ;;  %v1699_v63 = vsel %vm1667_vm8, %v1666_v28, %v1340_v18 }
 0x284   : > { %v1698_v49 = vsel %vm1667_vm8, %v1665_v53, %v1338_v62 }
 0x286   : > { %v1436_v51 = vpop.permute.xlu1 %1435 }
 0x287   : > { %v1732_v39 = vsel %vm1700_vm9, %v1699_v63, %v1436_v51  ;;  %v1434_v21 = vpop.permute.xlu0 %1433 }
 0x288   : > { %v1731_v47 = vsel %vm1700_vm9, %v1698_v49, %v1434_v21 }
 0x289   : > { %2628 = vmatprep.mubr.msk.f32.mxu1 %vm1749_vm10, %v1731_v47 }
 0x28a   : > { %2629 = vmatmul.mubr.msk.f32.gmra.mrb[14].mxu1 %vm1749_vm10, %v1732_v39 }
 0x290   : > { %v2603_v13 = vpop.f32.mrb[12].mxu0 }
 0x291   : > { %v1978_v40 = vadd.f32 %v2603_v13, %v4215_v3  ;;  %v1972_v7 = vpop.f32.mrb[13].mxu0 }
 0x292   : > { %v1973_v57 = vadd.f32 %v4215_v3, %v1972_v7 }
 0x293   : > { %2085 = vst.msk [vmem:[%s4228_s20 + $0x68] sm:$0xff] %vm2071_vm11, %v1978_v40  ;;  %v2186_v36 = vmul.f32 %v1978_v40, %v1978_v40  ;;  %v2129_v20 = vsel %vm2071_vm11, %v1978_v40, 0.0 }
 0x294   : > { %2084 = vst.msk [vmem:[%s4228_s20 + $0x60] sm:$0xff] %vm2071_vm11, %v1973_v57  ;;  %v2127_v9 = vsel %vm2071_vm11, %v1973_v57, 0.0  ;;  %v2185_v22 = vmul.f32 %v1973_v57, %v1973_v57 }
 0x295   : > { %v2128_v50 = vadd.f32 %v2127_v9, %v2126_v46  ;;  %v2230_v10 = vsel %vm2071_vm11, %v2186_v36, 0.0 }
 0x296   : > { %v2228_v59 = vsel %vm2071_vm11, %v2185_v22, 0.0 }
 0x297   : > { %v2229_v38 = vadd.f32 %v2228_v59, %v2227_v43  ;;  %v2130_v25 = vadd.f32 %v2129_v20, %v2128_v50 }
 0x299   : > { %v2231_v5 = vadd.f32 %v2230_v10, %v2229_v38 }
 0x2a8   : > { %v2606_v14 = vpop.f32.mrb[14].mxu0 }
 0x2a9   : > { %v1988_v11 = vadd.f32 %v2606_v14, %v4215_v3  ;;  %v1982_v23 = vpop.f32.mrb[15].mxu0 }
 0x2aa   : > { %v1983_v4 = vadd.f32 %v4215_v3, %v1982_v23 }
 0x2ab   : > { %2087 = vst.msk [vmem:[%s4228_s20 + $0x78] sm:$0xff] %vm2071_vm11, %v1988_v11  ;;  %v2188_v44 = vmul.f32 %v1988_v11, %v1988_v11  ;;  %v2133_v1 = vsel %vm2071_vm11, %v1988_v11, 0.0 }
 0x2ac   : > { %2086 = vst.msk [vmem:[%s4228_s20 + $0x70] sm:$0xff] %vm2071_vm11, %v1983_v4  ;;  %v2131_v41 = vsel %vm2071_vm11, %v1983_v4, 0.0  ;;  %v2187_v55 = vmul.f32 %v1983_v4, %v1983_v4 }
 0x2ad   : > { %v2132_v17 = vadd.f32 %v2131_v41, %v2130_v25  ;;  %v2234_v27 = vsel %vm2071_vm11, %v2188_v44, 0.0 }
 0x2ae   : > { %v2232_v61 = vsel %vm2071_vm11, %v2187_v55, 0.0 }
 0x2af   : > { %v2233_v37 = vadd.f32 %v2232_v61, %v2231_v5  ;;  %v2134_v16 = vadd.f32 %v2133_v1, %v2132_v17 }
 0x2b1   : > { %v2235_v15 = vadd.f32 %v2234_v27, %v2233_v37 }
 0x2c0   : > { %v2609_v26 = vpop.f32.mrb[0].mxu1 }
 0x2c1   : > { %v1998_v31 = vadd.f32 %v2609_v26, %v4215_v3  ;;  %v1992_v30 = vpop.f32.mrb[1].mxu1 }
 0x2c2   : > { %v1993_v29 = vadd.f32 %v4215_v3, %v1992_v30 }
 0x2c3   : > { %2089 = vst.msk [vmem:[%s4228_s20 + $0x88] sm:$0xff] %vm2071_vm11, %v1998_v31  ;;  %v2190_v45 = vmul.f32 %v1998_v31, %v1998_v31  ;;  %v2137_v6 = vsel %vm2071_vm11, %v1998_v31, 0.0 }
 0x2c4   : > { %2088 = vst.msk [vmem:[%s4228_s20 + $0x80] sm:$0xff] %vm2071_vm11, %v1993_v29  ;;  %v2135_v12 = vsel %vm2071_vm11, %v1993_v29, 0.0  ;;  %v2189_v2 = vmul.f32 %v1993_v29, %v1993_v29 }
 0x2c5   : > { %v2136_v35 = vadd.f32 %v2135_v12, %v2134_v16  ;;  %v2238_v48 = vsel %vm2071_vm11, %v2190_v45, 0.0 }
 0x2c6   : > { %v2236_v24 = vsel %vm2071_vm11, %v2189_v2, 0.0 }
 0x2c7   : > { %v2237_v58 = vadd.f32 %v2236_v24, %v2235_v15  ;;  %v2138_v56 = vadd.f32 %v2137_v6, %v2136_v35 }
 0x2c9   : > { %v2239_v33 = vadd.f32 %v2238_v48, %v2237_v58 }
 0x2d8   : > { %v2612_v60 = vpop.f32.mrb[2].mxu1 }
 0x2d9   : > { %v2008_v34 = vadd.f32 %v2612_v60, %v4215_v3  ;;  %v2002_v46 = vpop.f32.mrb[3].mxu1 }
 0x2da   : > { %v2003_v32 = vadd.f32 %v4215_v3, %v2002_v46 }
 0x2db   : > { %2091 = vst.msk [vmem:[%s4228_s20 + $0x98] sm:$0xff] %vm2071_vm11, %v2008_v34  ;;  %v2192_v43 = vmul.f32 %v2008_v34, %v2008_v34  ;;  %v2141_v19 = vsel %vm2071_vm11, %v2008_v34, 0.0 }
 0x2dc   : > { %2090 = vst.msk [vmem:[%s4228_s20 + $0x90] sm:$0xff] %vm2071_vm11, %v2003_v32  ;;  %v2139_v42 = vsel %vm2071_vm11, %v2003_v32, 0.0  ;;  %v2191_v18 = vmul.f32 %v2003_v32, %v2003_v32 }
 0x2dd   : > { %v2140_v0 = vadd.f32 %v2139_v42, %v2138_v56  ;;  %v2242_v52 = vsel %vm2071_vm11, %v2192_v43, 0.0 }
 0x2de   : > { %v2240_v62 = vsel %vm2071_vm11, %v2191_v18, 0.0 }
 0x2df   : > { %v2241_v54 = vadd.f32 %v2240_v62, %v2239_v33  ;;  %v2142_v8 = vadd.f32 %v2141_v19, %v2140_v0 }
 0x2e1   : > { %v2243_v28 = vadd.f32 %v2242_v52, %v2241_v54 }
 0x2f0   : > { %v2615_v53 = vpop.f32.mrb[4].mxu1 }
 0x2f1   : > { %v2018_v63 = vadd.f32 %v2615_v53, %v4215_v3  ;;  %v2012_v51 = vpop.f32.mrb[5].mxu1 }
 0x2f2   : > { %v2013_v49 = vadd.f32 %v4215_v3, %v2012_v51 }
 0x2f3   : > { %2093 = vst.msk [vmem:[%s4228_s20 + $0xa8] sm:$0xff] %vm2071_vm11, %v2018_v63  ;;  %v2194_v39 = vmul.f32 %v2018_v63, %v2018_v63  ;;  %v2145_v40 = vsel %vm2071_vm11, %v2018_v63, 0.0 }
 0x2f4   : > { %2092 = vst.msk [vmem:[%s4228_s20 + $0xa0] sm:$0xff] %vm2071_vm11, %v2013_v49  ;;  %v2143_v21 = vsel %vm2071_vm11, %v2013_v49, 0.0  ;;  %v2193_v47 = vmul.f32 %v2013_v49, %v2013_v49 }
 0x2f5   : > { %v2144_v13 = vadd.f32 %v2143_v21, %v2142_v8  ;;  %v2246_v9 = vsel %vm2071_vm11, %v2194_v39, 0.0 }
 0x2f6   : > { %v2244_v7 = vsel %vm2071_vm11, %v2193_v47, 0.0 }
 0x2f7   : > { %v2245_v57 = vadd.f32 %v2244_v7, %v2243_v28  ;;  %v2146_v36 = vadd.f32 %v2145_v40, %v2144_v13 }
 0x2f9   : > { %v2247_v22 = vadd.f32 %v2246_v9, %v2245_v57 }
 0x308   : > { %v2618_v50 = vpop.f32.mrb[6].mxu1 }
 0x309   : > { %v2028_v20 = vadd.f32 %v2618_v50, %v4215_v3  ;;  %v2022_v59 = vpop.f32.mrb[7].mxu1 }
 0x30a   : > { %v2023_v38 = vadd.f32 %v4215_v3, %v2022_v59 }
 0x30b   : > { %2095 = vst.msk [vmem:[%s4228_s20 + $0xb8] sm:$0xff] %vm2071_vm11, %v2028_v20  ;;  %v2196_v25 = vmul.f32 %v2028_v20, %v2028_v20  ;;  %v2149_v11 = vsel %vm2071_vm11, %v2028_v20, 0.0 }
 0x30c   : > { %2094 = vst.msk [vmem:[%s4228_s20 + $0xb0] sm:$0xff] %vm2071_vm11, %v2023_v38  ;;  %v2147_v10 = vsel %vm2071_vm11, %v2023_v38, 0.0  ;;  %v2195_v5 = vmul.f32 %v2023_v38, %v2023_v38 }
 0x30d   : > { %v2148_v14 = vadd.f32 %v2147_v10, %v2146_v36  ;;  %v2250_v41 = vsel %vm2071_vm11, %v2196_v25, 0.0 }
 0x30e   : > { %v2248_v23 = vsel %vm2071_vm11, %v2195_v5, 0.0 }
 0x30f   : > { %v2249_v4 = vadd.f32 %v2248_v23, %v2247_v22  ;;  %v2150_v44 = vadd.f32 %v2149_v11, %v2148_v14 }
 0x311   : > { %v2251_v55 = vadd.f32 %v2250_v41, %v2249_v4 }
 0x320   : > { %v2621_v17 = vpop.f32.mrb[8].mxu1 }
 0x321   : > { %v2038_v1 = vadd.f32 %v2621_v17, %v4215_v3  ;;  %v2032_v61 = vpop.f32.mrb[9].mxu1 }
 0x322   : > { %v2033_v37 = vadd.f32 %v4215_v3, %v2032_v61 }
 0x323   : > { %2097 = vst.msk [vmem:[%s4228_s20 + $0xc8] sm:$0xff] %vm2071_vm11, %v2038_v1  ;;  %v2198_v16 = vmul.f32 %v2038_v1, %v2038_v1  ;;  %v2153_v31 = vsel %vm2071_vm11, %v2038_v1, 0.0 }
 0x324   : > { %2096 = vst.msk [vmem:[%s4228_s20 + $0xc0] sm:$0xff] %vm2071_vm11, %v2033_v37  ;;  %v2151_v27 = vsel %vm2071_vm11, %v2033_v37, 0.0  ;;  %v2197_v15 = vmul.f32 %v2033_v37, %v2033_v37 }
 0x325   : > { %v2152_v26 = vadd.f32 %v2151_v27, %v2150_v44  ;;  %v2254_v12 = vsel %vm2071_vm11, %v2198_v16, 0.0 }
 0x326   : > { %v2252_v30 = vsel %vm2071_vm11, %v2197_v15, 0.0 }
 0x327   : > { %v2253_v29 = vadd.f32 %v2252_v30, %v2251_v55  ;;  %v2154_v45 = vadd.f32 %v2153_v31, %v2152_v26 }
 0x329   : > { %v2255_v2 = vadd.f32 %v2254_v12, %v2253_v29 }
 0x338   : > { %v2624_v35 = vpop.f32.mrb[10].mxu1 }
 0x339   : > { %v2048_v6 = vadd.f32 %v2624_v35, %v4215_v3  ;;  %v2042_v24 = vpop.f32.mrb[11].mxu1 }
 0x33a   : > { %v2043_v58 = vadd.f32 %v4215_v3, %v2042_v24 }
 0x33b   : > { %2099 = vst.msk [vmem:[%s4228_s20 + $0xd8] sm:$0xff] %vm2071_vm11, %v2048_v6  ;;  %v2200_v56 = vmul.f32 %v2048_v6, %v2048_v6  ;;  %v2157_v34 = vsel %vm2071_vm11, %v2048_v6, 0.0 }
 0x33c   : > { %2098 = vst.msk [vmem:[%s4228_s20 + $0xd0] sm:$0xff] %vm2071_vm11, %v2043_v58  ;;  %v2155_v48 = vsel %vm2071_vm11, %v2043_v58, 0.0  ;;  %v2199_v33 = vmul.f32 %v2043_v58, %v2043_v58 }
 0x33d   : > { %v2156_v60 = vadd.f32 %v2155_v48, %v2154_v45  ;;  %v2258_v42 = vsel %vm2071_vm11, %v2200_v56, 0.0 }
 0x33e   : > { %v2256_v46 = vsel %vm2071_vm11, %v2199_v33, 0.0 }
 0x33f   : > { %v2257_v32 = vadd.f32 %v2256_v46, %v2255_v2  ;;  %v2158_v43 = vadd.f32 %v2157_v34, %v2156_v60 }
 0x341   : > { %v2259_v18 = vadd.f32 %v2258_v42, %v2257_v32 }
 0x350   : > { %v2627_v0 = vpop.f32.mrb[12].mxu1 }
 0x351   : > { %v2058_v19 = vadd.f32 %v2627_v0, %v4215_v3  ;;  %v2052_v62 = vpop.f32.mrb[13].mxu1 }
 0x352   : > { %v2053_v54 = vadd.f32 %v4215_v3, %v2052_v62 }
 0x353   : > { %2101 = vst.msk [vmem:[%s4228_s20 + $0xe8] sm:$0xff] %vm2071_vm11, %v2058_v19  ;;  %v2202_v8 = vmul.f32 %v2058_v19, %v2058_v19  ;;  %v2161_v63 = vsel %vm2071_vm11, %v2058_v19, 0.0 }
 0x354   : > { %2100 = vst.msk [vmem:[%s4228_s20 + $0xe0] sm:$0xff] %vm2071_vm11, %v2053_v54  ;;  %v2159_v52 = vsel %vm2071_vm11, %v2053_v54, 0.0  ;;  %v2201_v28 = vmul.f32 %v2053_v54, %v2053_v54 }
 0x355   : > { %v2160_v53 = vadd.f32 %v2159_v52, %v2158_v43  ;;  %v2262_v21 = vsel %vm2071_vm11, %v2202_v8, 0.0 }
 0x356   : > { %v2260_v51 = vsel %vm2071_vm11, %v2201_v28, 0.0 }
 0x357   : > { %v2261_v49 = vadd.f32 %v2260_v51, %v2259_v18  ;;  %v2162_v39 = vadd.f32 %v2161_v63, %v2160_v53 }
 0x359   : > { %v2263_v47 = vadd.f32 %v2262_v21, %v2261_v49 }
 0x35d   : > { %v2630_v13 = vpop.f32.mrb[14].mxu1 }
 0x35e   : > { %v2068_v40 = vadd.f32 %v2630_v13, %v4215_v3  ;;  %v2062_v7 = vpop.f32.mrb[15].mxu1 }
 0x35f   : > { %v2063_v57 = vadd.f32 %v4215_v3, %v2062_v7 }
 0x360   : > { %2103 = vst.msk [vmem:[%s4228_s20 + $0xf8] sm:$0xff] %vm2071_vm11, %v2068_v40  ;;  %v2204_v36 = vmul.f32 %v2068_v40, %v2068_v40  ;;  %v2165_v20 = vsel %vm2071_vm11, %v2068_v40, 0.0 }
 0x361   : > { %2102 = vst.msk [vmem:[%s4228_s20 + $0xf0] sm:$0xff] %vm2071_vm11, %v2063_v57  ;;  %v2163_v9 = vsel %vm2071_vm11, %v2063_v57, 0.0  ;;  %v2203_v22 = vmul.f32 %v2063_v57, %v2063_v57 }
 0x362   : > { %v2164_v50 = vadd.f32 %v2163_v9, %v2162_v39  ;;  %v2266_v10 = vsel %vm2071_vm11, %v2204_v36, 0.0 }
 0x363   : > { %v2264_v59 = vsel %vm2071_vm11, %v2203_v22, 0.0 }
 0x364   : > { %v2166_v38 = vadd.f32 %v2165_v20, %v2164_v50  ;;  %v2265_v25 = vadd.f32 %v2264_v59, %v2263_v47 }
 0x366   : > { %v2167_v5 = vrot.slane %v2166_v38, 4  ;;  %v2267_v3 = vadd.f32 %v2266_v10, %v2265_v25 }
 0x368   : > { %v2168_v14 = vadd.f32 %v2167_v5, %v2166_v38  ;;  %v2268_v11 = vrot.slane %v2267_v3, 4 }
 0x36a   : > { %v2169_v23 = vrot.slane %v2168_v14, 2  ;;  %v2269_v4 = vadd.f32 %v2268_v11, %v2267_v3 }
 0x36c   : > { %v2170_v44 = vadd.f32 %v2169_v23, %v2168_v14  ;;  %v2270_v41 = vrot.slane %v2269_v4, 2 }
 0x36e   : > { %v2171_v55 = vrot.slane %v2170_v44, 1  ;;  %v2271_v17 = vadd.f32 %v2270_v41, %v2269_v4 }
 0x370   : > { %v2172_v1 = vadd.f32 %v2171_v55, %v2170_v44  ;;  %v2272_v61 = vrot.slane %v2271_v17, 1 }
 0x372   : > { %v2273_v37 = vadd.f32 %v2272_v61, %v2271_v17  ;;  %2274 = vst.msk [vmem:[%s403_s30] sm:$0xff] %vm2071_vm11, %v2172_v1 }
 0x374   : > { %2275 = vst.msk [vmem:[%s410_s10] sm:$0xff] %vm2071_vm11, %v2273_v37 }
 0x375 PF: > { %s17_s23 = sadd.s32 1, %s2735_s23   ;;  %s4726_s21 = smov %s2731_s22 }
 0x376   : > { %p14_p5 = scmp.ge.s32.totalorder %s17_s23, 4   ;;  %s4727_s22 = smov %s4729_s24 }
 0x378   :  { %16 = sbr.rel (!%p14_p5) target bundleno = 2 (0x2), region = 93 }

</bundles_post_ra>
